<compile_context>
chip_gen: v7x
topology: tpu7x:2x2x1
jax: 0.10.0
libtpu: 0.0.40
codegen_flags: <defaults>
</compile_context>

<pallas_src>
from dataclasses import dataclass
from typing import Dict, List, Tuple, Union

import numpy as np
import jax
import jax.numpy as jnp
from jax.experimental import pallas as pl
from jax.experimental.pallas import tpu as pltpu

# ----------------------------- configuration --------------------------------
VOCAB = 64                                   # fake tokenizer vocabulary
VOCAB_PAD = 128                              # lane-dense head / one-hot width
HIDDEN = 128                                 # embedding / hidden dim
IMAGE_SIZE = 16                              # self.image_size
PATCH = 8
CHANNELS = 3
PATCH_DIM = PATCH * PATCH * CHANNELS         # 192
PATCH_DIM_PAD = 256                          # padded contraction dim (x128)
NUM_PATCHES = (IMAGE_SIZE // PATCH) ** 2     # 4
PAD_ID = 0                                   # fake tokenizer pad id
B_BLOCK = 8                                  # batch rows per grid step (x8 sublanes)


def _round_up(x: int, m: int) -> int:
    return ((x + m - 1) // m) * m


# ----------------------------- data structures ------------------------------
@dataclass
class MixedPrompt:
    sequence: List[Union[str, np.ndarray]]
    mapping: Dict[str, Union[str, np.ndarray, None]]

    def __getitem__(self, index: int):
        return self.sequence[index]

    def __iter__(self):
        return iter(self.sequence)


# ----------------------------- fused Pallas kernel --------------------------
def _fused_forward_kernel(ids_ref, tmask_ref, patches_ref, n_text_ref,
                          pcount_ref, table_ref, w_patch_ref, b_patch_ref,
                          w_head_ref, out_ref):
    """One batch tile: embeddings + patch projection + pack/pool + head."""
    f32, bf16 = jnp.float32, jnp.bfloat16
    bb = out_ref.shape[0]                       # batch rows in this tile (8)
    bbl = ids_ref.shape[0]                      # bb * packed text length
    bbp = patches_ref.shape[0]                  # bb * NUM_PATCHES
    l_pad = bbl // bb
    p_per = bbp // bb

    ids = ids_ref[...]                          # (bbl, 1) int32 token ids
    tmask = tmask_ref[...]                      # (bbl, 1) f32 token validity

    # -- tokens_to_embedding: masked one-hot (V padded to 128) on the MXU ----
    v_iota = jax.lax.broadcasted_iota(jnp.int32, (bbl, VOCAB_PAD), 1)
    onehot = (ids == v_iota).astype(f32) * tmask                    # (bbl, Vp)
    tok_embs = jnp.dot(onehot.astype(bf16), table_ref[...].astype(bf16),
                       preferred_element_type=f32)                  # (bbl, D)

    # -- images_to_embedding: per-patch projection on the MXU ----------------
    patch_embs = jnp.dot(patches_ref[...].astype(bf16),
                         w_patch_ref[...].astype(bf16),
                         preferred_element_type=f32) + b_patch_ref[...]  # (bbp, D)

    # -- pack + masked mean pool: segment-sum matrices routed to the MXU -----
    trow = jax.lax.broadcasted_iota(jnp.int32, (bb, bbl), 0)
    tcol = jax.lax.broadcasted_iota(jnp.int32, (bb, bbl), 1)
    seg_t = ((tcol >= trow * l_pad) & (tcol < (trow + 1) * l_pad)).astype(bf16)

    irow = jax.lax.broadcasted_iota(jnp.int32, (bb, bbp), 0)
    icol = jax.lax.broadcasted_iota(jnp.int32, (bb, bbp), 1)
    has_img = (pcount_ref[...] > 0.0).astype(f32)                   # (bb, 1)
    seg_i = (((icol >= irow * p_per) & (icol < (irow + 1) * p_per)).astype(f32)
             * has_img).astype(bf16)

    text_sum = jnp.dot(seg_t, tok_embs.astype(bf16),
                       preferred_element_type=f32)                  # (bb, D)
    img_sum = jnp.dot(seg_i, patch_embs.astype(bf16),
                      preferred_element_type=f32)                   # (bb, D)

    denom = jnp.maximum(n_text_ref[...] + pcount_ref[...], 1.0)     # (bb, 1)
    pooled = (text_sum + img_sum) * pl.reciprocal(denom, approx=True)

    # -- linear head: lane-dense 128-wide output ------------------------------
    out_ref[...] = jnp.dot(pooled.astype(bf16), w_head_ref[...].astype(bf16),
                           preferred_element_type=f32)              # (bb, Vp)


def _device_forward_impl(ids, tmask, n_text, pcount, images,
                         table, w_patch, b_patch, w_head):
    """All device-side work (patchify + param padding + fused kernel)."""
    b_pad, l_pad = ids.shape

    # patchify NCHW -> (b_pad*NUM_PATCHES, PATCH_DIM), (prow, pcol, channel)-minor.
    # NOTE: real PyTorch Conv2d patchify weights are channel-major and would
    # need a permutation before being used as w_patch here.
    gh = IMAGE_SIZE // PATCH
    x = jnp.transpose(images, (0, 2, 3, 1))
    x = x.reshape(b_pad, gh, PATCH, gh, PATCH, CHANNELS)
    x = jnp.transpose(x, (0, 1, 3, 2, 4, 5)).reshape(b_pad * NUM_PATCHES, PATCH_DIM)
    patches = jnp.pad(x, ((0, 0), (0, PATCH_DIM_PAD - PATCH_DIM)))

    # zero-pad parameters to MXU/lane friendly shapes
    table_p = jnp.pad(table, ((0, VOCAB_PAD - VOCAB), (0, 0)))
    w_patch_p = jnp.pad(w_patch, ((0, PATCH_DIM_PAD - PATCH_DIM), (0, 0)))
    w_head_p = jnp.pad(w_head, ((0, 0), (0, VOCAB_PAD - VOCAB)))

    ids_col = ids.reshape(b_pad * l_pad, 1)
    tmask_col = tmask.reshape(b_pad * l_pad, 1)

    num_tiles = b_pad // B_BLOCK
    bbl = B_BLOCK * l_pad
    bbp = B_BLOCK * NUM_PATCHES

    return pl.pallas_call(
        _fused_forward_kernel,
        out_shape=jax.ShapeDtypeStruct((b_pad, VOCAB_PAD), jnp.float32),
        grid=(num_tiles,),
        in_specs=[
            pl.BlockSpec((bbl, 1), lambda t: (t, 0)),                  # ids
            pl.BlockSpec((bbl, 1), lambda t: (t, 0)),                  # text mask
            pl.BlockSpec((bbp, PATCH_DIM_PAD), lambda t: (t, 0)),      # patches
            pl.BlockSpec((B_BLOCK, 1), lambda t: (t, 0)),              # n_text
            pl.BlockSpec((B_BLOCK, 1), lambda t: (t, 0)),              # patch count
            pl.BlockSpec((VOCAB_PAD, HIDDEN), lambda t: (0, 0)),       # table
            pl.BlockSpec((PATCH_DIM_PAD, HIDDEN), lambda t: (0, 0)),   # w_patch
            pl.BlockSpec((1, HIDDEN), lambda t: (0, 0)),               # b_patch
            pl.BlockSpec((HIDDEN, VOCAB_PAD), lambda t: (0, 0)),       # w_head
        ],
        out_specs=pl.BlockSpec((B_BLOCK, VOCAB_PAD), lambda t: (t, 0)),
        compiler_params=pltpu.CompilerParams(
            dimension_semantics=("parallel",)),
    )(ids_col, tmask_col, patches, n_text, pcount,
      table_p, w_patch_p, b_patch, w_head_p)


_device_forward = jax.jit(_device_forward_impl)


# ----------------------------- Python glue -----------------------------------
def fake_tokenize(texts: List[str]) -> Tuple[np.ndarray, np.ndarray]:
    ids = [[(ord(c) % (VOCAB - 1)) + 1 for c in t] for t in texts]
    L = max(1, max(len(i) for i in ids))
    input_ids = np.full((len(texts), L), PAD_ID, dtype=np.int32)
    attn = np.zeros((len(texts), L), dtype=np.int32)
    for r, row in enumerate(ids):
        input_ids[r, :len(row)] = row
        attn[r, :len(row)] = 1
    return input_ids, attn


def format_prompt(question, suffix, image, response):
    seq = [question, image]
    if suffix is not None:
        seq.append(suffix)
    return seq


def format_prompts(questions, suffixes, images, responses=None) -> List[MixedPrompt]:
    bs = len(questions)
    responses = responses if responses is not None else [None] * bs
    prompts = []
    for q, s, i, r in zip(questions, suffixes, images, responses):
        seq = list(format_prompt(q, s, i, r))
        prompts.append(MixedPrompt(seq, {"question": q, "suffix": s,
                                         "image": i, "response": r}))
    return prompts


def _to_mixed_attrs(mixed_prompts):
    text_prompts, image_prompts, mixed_attrs = [], [], []
    for mp in mixed_prompts:
        ma = []
        for p in mp:
            if isinstance(p, str):
                ma.append(("text", len(text_prompts)))
                text_prompts.append(p)
            else:
                ma.append(("image", len(image_prompts)))
                p = np.asarray(p, np.float32)
                if p.ndim == 3:
                    p = p[None]
                image_prompts.append(p)
        mixed_attrs.append(ma)
    return mixed_attrs, text_prompts, image_prompts


def _pack_host_metadata(mixed_attrs, input_ids, text_attns):
    """Integer-only packing metadata (host data from the tokenizer, no device sync)."""
    B = len(mixed_attrs)
    L = input_ids.shape[1]
    max_segs = max(sum(1 for t, _ in ma if t == "text") for ma in mixed_attrs)
    l_pad = _round_up(max(max_segs * L, 1), 128)
    b_pad = _round_up(B, B_BLOCK)

    ids = np.zeros((b_pad, l_pad), np.int32)
    tmask = np.zeros((b_pad, l_pad), np.float32)
    n_text = np.zeros((b_pad, 1), np.float32)
    pcount = np.zeros((b_pad, 1), np.float32)
    img_index = np.full((b_pad,), -1, np.int32)
    for b, ma in enumerate(mixed_attrs):
        pos = 0
        n_img = 0
        for t, i in ma:
            if t == "text":
                ids[b, pos:pos + L] = input_ids[i]
                tmask[b, pos:pos + L] = text_attns[i]
                pos += L
            else:
                n_img += 1
                img_index[b] = i
        # TODO(synk): multi-image-per-prompt packing not implemented
        # (this concrete format_prompt emits at most one image per prompt).
        assert n_img <= 1
        pcount[b, 0] = NUM_PATCHES * n_img
        n_text[b, 0] = tmask[b].sum()
    return ids, tmask, n_text, pcount, img_index, b_pad, l_pad


def forward(mixed_prompts, params):
    """MultiModalModelBase.forward: to_embedding + embedding_forward, fused on TPU."""
    mixed_attrs, texts, images = _to_mixed_attrs(mixed_prompts)
    input_ids, text_attns = fake_tokenize(texts)
    ids, tmask, n_text, pcount, img_index, b_pad, _ = _pack_host_metadata(
        mixed_attrs, input_ids, text_attns)

    imgs = np.zeros((b_pad, CHANNELS, IMAGE_SIZE, IMAGE_SIZE), np.float32)
    for b, idx in enumerate(img_index):
        if idx >= 0:
            imgs[b] = images[idx].reshape(CHANNELS, IMAGE_SIZE, IMAGE_SIZE)

    logits_pad = _device_forward(
        jnp.asarray(ids), jnp.asarray(tmask), jnp.asarray(n_text),
        jnp.asarray(pcount), jnp.asarray(imgs),
        params["table"], params["w_patch"], params["b_patch"], params["w_head"])
    B = len(mixed_attrs)
    return logits_pad[:B, :VOCAB]


# ----------------------------- pure NumPy reference ---------------------------
def _reference_forward(mixed_prompts, params):
    """Literal (unfused, f32) replica of the original pack/pool/head flow."""
    mixed_attrs, texts, images = _to_mixed_attrs(mixed_prompts)
    input_ids, text_attns = fake_tokenize(texts)
    table = np.asarray(params["table"], np.float32)
    w_patch = np.asarray(params["w_patch"], np.float32)
    b_patch = np.asarray(params["b_patch"], np.float32)
    w_head = np.asarray(params["w_head"], np.float32)

    text_embs = table[input_ids]                                  # (n_texts, L, D)

    def patchify(img_nchw):
        gh = IMAGE_SIZE // PATCH
        x = np.transpose(img_nchw, (0, 2, 3, 1))
        x = x.reshape(-1, gh, PATCH, gh, PATCH, CHANNELS)
        return np.transpose(x, (0, 1, 3, 2, 4, 5)).reshape(-1, PATCH_DIM)

    image_embs = [patchify(img) @ w_patch + b_patch for img in images]

    logits = []
    for ma in mixed_attrs:
        embs = []
        for t, i in ma:
            if t == "text":
                att = text_attns[i].astype(bool)
                embs.append(text_embs[i][att])
            else:
                embs.append(image_embs[i])
        seq = np.concatenate(embs, axis=0)
        pooled = seq.sum(axis=0) / max(seq.shape[0], 1)
        logits.append(pooled @ w_head)
    return np.stack(logits, axis=0)


# ----------------------------- main -------------------------------------------
if __name__ == "__main__":
    key = jax.random.PRNGKey(0)
    k1, k2, k3, k4, k5 = jax.random.split(key, 5)

    params = {
        "table":   jax.random.normal(k1, (VOCAB, HIDDEN), jnp.float32) * 0.02,
        "w_patch": jax.random.normal(k2, (PATCH_DIM, HIDDEN), jnp.float32) * 0.02,
        "b_patch": jax.random.normal(k3, (1, HIDDEN), jnp.float32) * 0.02,
        "w_head":  jax.random.normal(k4, (HIDDEN, VOCAB), jnp.float32) * 0.02,
    }

    # batch of 2 mixed prompts, each: [question text, image (C,H,W), suffix text]
    images = np.asarray(
        jax.random.normal(k5, (2, CHANNELS, IMAGE_SIZE, IMAGE_SIZE), jnp.float32))
    questions = ["What is in the picture?", "Describe the scene now."]
    suffixes = ["Answer:", "Answer:"]

    prompts = format_prompts(questions, suffixes, [images[0], images[1]])
    logits = jax.block_until_ready(forward(prompts, params))

    assert logits.shape == (2, VOCAB)
    ref = _reference_forward(prompts, params)
    assert np.allclose(np.asarray(logits), ref, rtol=5e-2, atol=2e-4), (
        float(np.max(np.abs(np.asarray(logits) - ref))))
    print("KERNEL_OK")
</pallas_src>

<mosaic_0001>
module attributes {stable_mosaic.version = 11 : i64} {
  func.func @_fused_forward_kernel(%arg0: i32, %arg1: memref<1024x1xi32, #tpu.memory_space<vmem>>, %arg2: memref<1024x1xf32, #tpu.memory_space<vmem>>, %arg3: memref<32x256xf32, #tpu.memory_space<vmem>>, %arg4: memref<8x1xf32, #tpu.memory_space<vmem>>, %arg5: memref<8x1xf32, #tpu.memory_space<vmem>>, %arg6: memref<128x128xf32, #tpu.memory_space<vmem>>, %arg7: memref<256x128xf32, #tpu.memory_space<vmem>>, %arg8: memref<1x128xf32, #tpu.memory_space<vmem>>, %arg9: memref<128x128xf32, #tpu.memory_space<vmem>>, %arg10: memref<8x128xf32, #tpu.memory_space<vmem>>) attributes {dimension_semantics = [#tpu.dimension_semantics<parallel>], iteration_bounds = array<i64: 1>, scalar_prefetch = 0 : i64, scratch_operands = 0 : i64, tpu.core_type = #tpu.core_type<tc>, window_params = [{transform_indices = @transform_0, window_bounds = array<i64: 1024, 1>}, {transform_indices = @transform_1, window_bounds = array<i64: 1024, 1>}, {transform_indices = @transform_2, window_bounds = array<i64: 32, 256>}, {transform_indices = @transform_3, window_bounds = array<i64: 8, 1>}, {transform_indices = @transform_4, window_bounds = array<i64: 8, 1>}, {pipeline_mode = #tpu.pipeline_mode<synchronous>, transform_indices = @transform_5, window_bounds = array<i64: 128, 128>}, {pipeline_mode = #tpu.pipeline_mode<synchronous>, transform_indices = @transform_6, window_bounds = array<i64: 256, 128>}, {pipeline_mode = #tpu.pipeline_mode<synchronous>, transform_indices = @transform_7, window_bounds = array<i64: 1, 128>}, {pipeline_mode = #tpu.pipeline_mode<synchronous>, transform_indices = @transform_8, window_bounds = array<i64: 128, 128>}, {transform_indices = @transform_9, window_bounds = array<i64: 8, 128>}]} {
    %c0 = arith.constant 0 : index
    %c0_0 = arith.constant 0 : index
    %0 = vector.load %arg1[%c0, %c0_0] : memref<1024x1xi32, #tpu.memory_space<vmem>>, vector<1024x1xi32>
    %c0_1 = arith.constant 0 : index
    %c0_2 = arith.constant 0 : index
    %1 = vector.load %arg2[%c0_1, %c0_2] : memref<1024x1xf32, #tpu.memory_space<vmem>>, vector<1024x1xf32>
    %2 = tpu.iota {dimensions = array<i32: 1>} : vector<1024x128xi32>
    %3 = vector.broadcast %0 : vector<1024x1xi32> to vector<1024x128xi32>
    %4 = arith.cmpi eq, %3, %2 : vector<1024x128xi32>
    %5 = arith.extui %4 : vector<1024x128xi1> to vector<1024x128xi32>
    %6 = arith.sitofp %5 : vector<1024x128xi32> to vector<1024x128xf32>
    %7 = vector.broadcast %1 : vector<1024x1xf32> to vector<1024x128xf32>
    %8 = arith.mulf %6, %7 : vector<1024x128xf32>
    %9 = arith.truncf %8 : vector<1024x128xf32> to vector<1024x128xbf16>
    %c0_3 = arith.constant 0 : index
    %c0_4 = arith.constant 0 : index
    %10 = vector.load %arg6[%c0_3, %c0_4] : memref<128x128xf32, #tpu.memory_space<vmem>>, vector<128x128xf32>
    %11 = arith.truncf %10 : vector<128x128xf32> to vector<128x128xbf16>
    %cst = arith.constant dense<0.000000e+00> : vector<1024x128xf32>
    %12 = tpu.matmul %9, %11, %cst {dimension_numbers = #tpu.dot_dimension_numbers<[1], [0], [0], [1], [0, 0, 1, 1], [], []>} : vector<1024x128xbf16>, vector<128x128xbf16>, vector<1024x128xf32> -> vector<1024x128xf32>
    %c0_5 = arith.constant 0 : index
    %c0_6 = arith.constant 0 : index
    %13 = vector.load %arg3[%c0_5, %c0_6] : memref<32x256xf32, #tpu.memory_space<vmem>>, vector<32x256xf32>
    %14 = arith.truncf %13 : vector<32x256xf32> to vector<32x256xbf16>
    %c0_7 = arith.constant 0 : index
    %c0_8 = arith.constant 0 : index
    %15 = vector.load %arg7[%c0_7, %c0_8] : memref<256x128xf32, #tpu.memory_space<vmem>>, vector<256x128xf32>
    %16 = arith.truncf %15 : vector<256x128xf32> to vector<256x128xbf16>
    %cst_9 = arith.constant dense<0.000000e+00> : vector<32x128xf32>
    %17 = tpu.matmul %14, %16, %cst_9 {dimension_numbers = #tpu.dot_dimension_numbers<[1], [0], [0], [1], [0, 0, 1, 1], [], []>} : vector<32x256xbf16>, vector<256x128xbf16>, vector<32x128xf32> -> vector<32x128xf32>
    %c0_10 = arith.constant 0 : index
    %c0_11 = arith.constant 0 : index
    %18 = vector.load %arg8[%c0_10, %c0_11] : memref<1x128xf32, #tpu.memory_space<vmem>>, vector<1x128xf32>
    %19 = vector.broadcast %18 : vector<1x128xf32> to vector<32x128xf32>
    %20 = arith.addf %17, %19 : vector<32x128xf32>
    %21 = tpu.iota {dimensions = array<i32: 0>} : vector<8x1024xi32>
    %22 = tpu.iota {dimensions = array<i32: 1>} : vector<8x1024xi32>
    %c128_i32 = arith.constant 128 : i32
    %23 = vector.broadcast %c128_i32 : i32 to vector<8x1024xi32>
    %24 = arith.muli %21, %23 : vector<8x1024xi32>
    %25 = arith.cmpi sge, %22, %24 : vector<8x1024xi32>
    %c1_i32 = arith.constant 1 : i32
    %26 = vector.broadcast %c1_i32 : i32 to vector<8x1024xi32>
    %27 = arith.addi %21, %26 : vector<8x1024xi32>
    %c128_i32_12 = arith.constant 128 : i32
    %28 = vector.broadcast %c128_i32_12 : i32 to vector<8x1024xi32>
    %29 = arith.muli %27, %28 : vector<8x1024xi32>
    %30 = arith.cmpi slt, %22, %29 : vector<8x1024xi32>
    %31 = arith.andi %25, %30 : vector<8x1024xi1>
    %32 = arith.extui %31 : vector<8x1024xi1> to vector<8x1024xi32>
    %33 = arith.sitofp %32 : vector<8x1024xi32> to vector<8x1024xf32>
    %34 = arith.truncf %33 : vector<8x1024xf32> to vector<8x1024xbf16>
    %35 = tpu.iota {dimensions = array<i32: 0>} : vector<8x32xi32>
    %36 = tpu.iota {dimensions = array<i32: 1>} : vector<8x32xi32>
    %c0_13 = arith.constant 0 : index
    %c0_14 = arith.constant 0 : index
    %37 = vector.load %arg5[%c0_13, %c0_14] : memref<8x1xf32, #tpu.memory_space<vmem>>, vector<8x1xf32>
    %cst_15 = arith.constant 0.000000e+00 : f32
    %38 = vector.broadcast %cst_15 : f32 to vector<8x1xf32>
    %39 = arith.cmpf ogt, %37, %38 : vector<8x1xf32>
    %40 = arith.extui %39 : vector<8x1xi1> to vector<8x1xi32>
    %41 = arith.sitofp %40 : vector<8x1xi32> to vector<8x1xf32>
    %c4_i32 = arith.constant 4 : i32
    %42 = vector.broadcast %c4_i32 : i32 to vector<8x32xi32>
    %43 = arith.muli %35, %42 : vector<8x32xi32>
    %44 = arith.cmpi sge, %36, %43 : vector<8x32xi32>
    %c1_i32_16 = arith.constant 1 : i32
    %45 = vector.broadcast %c1_i32_16 : i32 to vector<8x32xi32>
    %46 = arith.addi %35, %45 : vector<8x32xi32>
    %c4_i32_17 = arith.constant 4 : i32
    %47 = vector.broadcast %c4_i32_17 : i32 to vector<8x32xi32>
    %48 = arith.muli %46, %47 : vector<8x32xi32>
    %49 = arith.cmpi slt, %36, %48 : vector<8x32xi32>
    %50 = arith.andi %44, %49 : vector<8x32xi1>
    %51 = arith.extui %50 : vector<8x32xi1> to vector<8x32xi32>
    %52 = arith.sitofp %51 : vector<8x32xi32> to vector<8x32xf32>
    %53 = vector.broadcast %41 : vector<8x1xf32> to vector<8x32xf32>
    %54 = arith.mulf %52, %53 : vector<8x32xf32>
    %55 = arith.truncf %54 : vector<8x32xf32> to vector<8x32xbf16>
    %56 = arith.truncf %12 : vector<1024x128xf32> to vector<1024x128xbf16>
    %cst_18 = arith.constant dense<0.000000e+00> : vector<8x128xf32>
    %57 = tpu.matmul %34, %56, %cst_18 {dimension_numbers = #tpu.dot_dimension_numbers<[1], [0], [0], [1], [0, 0, 1, 1], [], []>} : vector<8x1024xbf16>, vector<1024x128xbf16>, vector<8x128xf32> -> vector<8x128xf32>
    %58 = arith.truncf %20 : vector<32x128xf32> to vector<32x128xbf16>
    %cst_19 = arith.constant dense<0.000000e+00> : vector<8x128xf32>
    %59 = tpu.matmul %55, %58, %cst_19 {dimension_numbers = #tpu.dot_dimension_numbers<[1], [0], [0], [1], [0, 0, 1, 1], [], []>} : vector<8x32xbf16>, vector<32x128xbf16>, vector<8x128xf32> -> vector<8x128xf32>
    %c0_20 = arith.constant 0 : index
    %c0_21 = arith.constant 0 : index
    %60 = vector.load %arg4[%c0_20, %c0_21] : memref<8x1xf32, #tpu.memory_space<vmem>>, vector<8x1xf32>
    %c0_22 = arith.constant 0 : index
    %c0_23 = arith.constant 0 : index
    %61 = vector.load %arg5[%c0_22, %c0_23] : memref<8x1xf32, #tpu.memory_space<vmem>>, vector<8x1xf32>
    %62 = arith.addf %60, %61 : vector<8x1xf32>
    %cst_24 = arith.constant 1.000000e+00 : f32
    %63 = vector.broadcast %cst_24 : f32 to vector<8x1xf32>
    %64 = arith.maximumf %62, %63 : vector<8x1xf32>
    %65 = arith.addf %57, %59 : vector<8x128xf32>
    %66 = tpu.reciprocal %64 {approx = true} : vector<8x1xf32> -> vector<8x1xf32>
    %67 = vector.broadcast %66 : vector<8x1xf32> to vector<8x128xf32>
    %68 = arith.mulf %65, %67 : vector<8x128xf32>
    %69 = arith.truncf %68 : vector<8x128xf32> to vector<8x128xbf16>
    %c0_25 = arith.constant 0 : index
    %c0_26 = arith.constant 0 : index
    %70 = vector.load %arg9[%c0_25, %c0_26] : memref<128x128xf32, #tpu.memory_space<vmem>>, vector<128x128xf32>
    %71 = arith.truncf %70 : vector<128x128xf32> to vector<128x128xbf16>
    %cst_27 = arith.constant dense<0.000000e+00> : vector<8x128xf32>
    %72 = tpu.matmul %69, %71, %cst_27 {dimension_numbers = #tpu.dot_dimension_numbers<[1], [0], [0], [1], [0, 0, 1, 1], [], []>} : vector<8x128xbf16>, vector<128x128xbf16>, vector<8x128xf32> -> vector<8x128xf32>
    %c0_28 = arith.constant 0 : index
    %c0_29 = arith.constant 0 : index
    %73 = vector.load %arg10[%c0_28, %c0_29] : memref<8x128xf32, #tpu.memory_space<vmem>>, vector<8x128xf32>
    tpu.vector_store %arg10[%c0_28, %c0_29], %72 {strides = array<i32>} : memref<8x128xf32, #tpu.memory_space<vmem>>, vector<8x128xf32>,
    return
  }
  func.func @transform_0(%arg0: i32) -> (i32, i32) {
    %c0_i32 = arith.constant 0 : i32
    %c0_i32_0 = arith.constant 0 : i32
    return %arg0, %c0_i32 : i32, i32
  }
  func.func @transform_1(%arg0: i32) -> (i32, i32) {
    %c0_i32 = arith.constant 0 : i32
    %c0_i32_0 = arith.constant 0 : i32
    return %arg0, %c0_i32 : i32, i32
  }
  func.func @transform_2(%arg0: i32) -> (i32, i32) {
    %c0_i32 = arith.constant 0 : i32
    %c0_i32_0 = arith.constant 0 : i32
    return %arg0, %c0_i32 : i32, i32
  }
  func.func @transform_3(%arg0: i32) -> (i32, i32) {
    %c0_i32 = arith.constant 0 : i32
    %c0_i32_0 = arith.constant 0 : i32
    return %arg0, %c0_i32 : i32, i32
  }
  func.func @transform_4(%arg0: i32) -> (i32, i32) {
    %c0_i32 = arith.constant 0 : i32
    %c0_i32_0 = arith.constant 0 : i32
    return %arg0, %c0_i32 : i32, i32
  }
  func.func @transform_5(%arg0: i32) -> (i32, i32) {
    %c0_i32 = arith.constant 0 : i32
    %c0_i32_0 = arith.constant 0 : i32
    %c0_i32_1 = arith.constant 0 : i32
    return %c0_i32, %c0_i32_0 : i32, i32
  }
  func.func @transform_6(%arg0: i32) -> (i32, i32) {
    %c0_i32 = arith.constant 0 : i32
    %c0_i32_0 = arith.constant 0 : i32
    %c0_i32_1 = arith.constant 0 : i32
    return %c0_i32, %c0_i32_0 : i32, i32
  }
  func.func @transform_7(%arg0: i32) -> (i32, i32) {
    %c0_i32 = arith.constant 0 : i32
    %c0_i32_0 = arith.constant 0 : i32
    %c0_i32_1 = arith.constant 0 : i32
    return %c0_i32, %c0_i32_0 : i32, i32
  }
  func.func @transform_8(%arg0: i32) -> (i32, i32) {
    %c0_i32 = arith.constant 0 : i32
    %c0_i32_0 = arith.constant 0 : i32
    %c0_i32_1 = arith.constant 0 : i32
    return %c0_i32, %c0_i32_0 : i32, i32
  }
  func.func @transform_9(%arg0: i32) -> (i32, i32) {
    %c0_i32 = arith.constant 0 : i32
    %c0_i32_0 = arith.constant 0 : i32
    return %arg0, %c0_i32 : i32, i32
  }
}

</mosaic_0001>

<bundles_post_ra>
// kernel: _device_forward_impl.1
= control target key start
LH: loop header
LB: loop body
LE: loop exit
PB: predicated region body
PF: predicated region fallthrough
CT: control target
= control target key end

     0   :  { %v3592_v2 = vmov 0   ;;  %s5424_s0 = inlined_call_operand.vmem [shape: s32[1024,1], index: 0, kind: input, shape index: {}]   ;;  %s5425_s1 = inlined_call_operand.vmem [shape: f32[1024,1], index: 1, kind: input, shape index: {}]   ;;  %s5426_s2 = inlined_call_operand.vmem [shape: f32[32,256], index: 2, kind: input, shape index: {}]   ;;  %s5427_s3 = inlined_call_operand.vmem [shape: f32[8,1], index: 3, kind: input, shape index: {}]   ;;  %s5428_s4 = inlined_call_operand.vmem [shape: f32[8,1], index: 4, kind: input, shape index: {}]   ;;  %s5429_s5 = inlined_call_operand.vmem [shape: f32[128,128], index: 5, kind: input, shape index: {}]   ;;  %s5430_s6 = inlined_call_operand.vmem [shape: f32[256,128], index: 6, kind: input, shape index: {}]   ;;  %s5431_s7 = inlined_call_operand.vmem [shape: f32[1,128], index: 7, kind: input, shape index: {}]   ;;  %s5432_s8 = inlined_call_operand.vmem [shape: f32[128,128], index: 8, kind: input, shape index: {}]   ;;  %s5433_s9 = inlined_call_operand.hbm [shape: f32[8,128], index: 9, kind: output, shape index: {}]  }
   0x1   :  { %v36_v0 = vld [vmem:[%s5424_s0 + $0x10] sm:$0xff]  ;;  %v34_v1 = vld [vmem:[%s5424_s0] sm:$0xff]  ;;  %3565 = vset.pattern.permute.xlu1 %v3592_v2  ;;  %3564 = vset.pattern.permute.xlu0 %v3592_v2  ;;  %v37_v3 = vld [vmem:[%s5424_s0 + $0x18] sm:$0xff] }
   0x2   :  { %299 = vperm.xlu1 %3565, %v36_v0   ;;  %293 = vperm.xlu0 %3564, %v34_v1   ;;  %v35_v4 = vld [vmem:[%s5424_s0 + $0x8] sm:$0xff]  ;;  %v38_v6 = vld [vmem:[%s5424_s0 + $0x20] sm:$0xff]  ;;  %v41_v7 = vld [vmem:[%s5424_s0 + $0x38] sm:$0xff] }
   0x3   :  { %v39_v5 = vld [vmem:[%s5424_s0 + $0x28] sm:$0xff]  ;;  %v40_v8 = vld [vmem:[%s5424_s0 + $0x30] sm:$0xff]  ;;  %v42_v10 = vld [vmem:[%s5424_s0 + $0x40] sm:$0xff] }
   0x4   :  { %v43_v9 = vld [vmem:[%s5424_s0 + $0x48] sm:$0xff]  ;;  %v45_v11 = vld [vmem:[%s5424_s0 + $0x58] sm:$0xff]  ;;  %v44_v12 = vld [vmem:[%s5424_s0 + $0x50] sm:$0xff] }
   0x5   :  { %v47_v13 = vld [vmem:[%s5424_s0 + $0x68] sm:$0xff]  ;;  %v46_v14 = vld [vmem:[%s5424_s0 + $0x60] sm:$0xff]  ;;  %v1894_v18 = vld [vmem:[%s5429_s5 + $0x10] sm:$0xff] }
   0x6   :  { %302 = vperm.xlu1 %3565, %v37_v3   ;;  %296 = vperm.xlu0 %3564, %v35_v4   ;;  %v1892_v15 = vld [vmem:[%s5429_s5] sm:$0xff]  ;;  %v1893_v16 = vld [vmem:[%s5429_s5 + $0x8] sm:$0xff]  ;;  %v1895_v19 = vld [vmem:[%s5429_s5 + $0x18] sm:$0xff] }
   0x7   :  { %v1908_v17 = vpack.c.bf16 %v1893_v16, %v1892_v15  ;;  %v49_v20 = vld [vmem:[%s5424_s0 + $0x78] sm:$0xff]  ;;  %v48_v21 = vld [vmem:[%s5424_s0 + $0x70] sm:$0xff]  ;;  %v1909_v22 = vpack.c.bf16 %v1895_v19, %v1894_v18  ;;  %v1896_v23 = vld [vmem:[%s5429_s5 + $0x20] sm:$0xff] }
   0x8   :  { %v1897_v24 = vld [vmem:[%s5429_s5 + $0x28] sm:$0xff] }
   0x9   :  { %3371 = vmatprep.subr.bf16.mxu0 %v1908_v17  ;;  %3543 = vmatprep.subr.bf16.mxu1 %v1908_v17 }
   0xa   :  { %308 = vperm.xlu1 %3565, %v39_v5   ;;  %305 = vperm.xlu0 %3564, %v38_v6  }
   0xe   :  { %314 = vperm.xlu1 %3565, %v41_v7   ;;  %311 = vperm.xlu0 %3564, %v40_v8  }
  0x12   :  { %320 = vperm.xlu1 %3565, %v43_v9   ;;  %317 = vperm.xlu0 %3564, %v42_v10  }
  0x16   :  { %326 = vperm.xlu1 %3565, %v45_v11   ;;  %323 = vperm.xlu0 %3564, %v44_v12  }
  0x1a   :  { %332 = vperm.xlu1 %3565, %v47_v13   ;;  %329 = vperm.xlu0 %3564, %v46_v14  }
  0x1b   :  { %14 = vsyncpa [#allocation3], 0  ;;  %3372 = vmatpush3.bf16.msra.mxu0 %v1908_v17  ;;  %3551 = vmatpush3.bf16.msra.mxu1 %v1908_v17  ;;  %v51_v25 = vld [vmem:[%s5424_s0 + $0x88] sm:$0xff]  ;;  %v50_v26 = vld [vmem:[%s5424_s0 + $0x80] sm:$0xff]  ;;  %v1910_v27 = vpack.c.bf16 %v1897_v24, %v1896_v23 }
  0x1c   :  { %3373 = vmatprep.subr.bf16.mxu0 %v1909_v22  ;;  %3544 = vmatprep.subr.bf16.mxu1 %v1909_v22  ;;  %v1898_v28 = vld [vmem:[%s5429_s5 + $0x30] sm:$0xff]  ;;  %v1899_v29 = vld [vmem:[%s5429_s5 + $0x38] sm:$0xff]  ;;  %v1900_v33 = vld [vmem:[%s5429_s5 + $0x40] sm:$0xff] }
  0x1d   :  { %v53_v30 = vld [vmem:[%s5424_s0 + $0x98] sm:$0xff]  ;;  %v52_v31 = vld [vmem:[%s5424_s0 + $0x90] sm:$0xff]  ;;  %v1911_v32 = vpack.c.bf16 %v1899_v29, %v1898_v28  ;;  %v1901_v34 = vld [vmem:[%s5429_s5 + $0x48] sm:$0xff] }
  0x1e   :  { %338 = vperm.xlu1 %3565, %v49_v20   ;;  %335 = vperm.xlu0 %3564, %v48_v21   ;;  %v55_v35 = vld [vmem:[%s5424_s0 + $0xa8] sm:$0xff]  ;;  %v54_v36 = vld [vmem:[%s5424_s0 + $0xa0] sm:$0xff]  ;;  %v1912_v37 = vpack.c.bf16 %v1901_v34, %v1900_v33  ;;  %v1902_v38 = vld [vmem:[%s5429_s5 + $0x50] sm:$0xff] }
  0x1f   :  { %3374 = vmatpush3.bf16.msra.mxu0 %v1909_v22  ;;  %3552 = vmatpush3.bf16.msra.mxu1 %v1909_v22  ;;  %v1903_v39 = vld [vmem:[%s5429_s5 + $0x58] sm:$0xff]  ;;  %v163_v40 = vld [vmem:[%s5425_s1 + $0x8] sm:$0xff]  ;;  %v162_v41 = vld [vmem:[%s5425_s1] sm:$0xff] }
  0x20   :  { %3375 = vmatprep.subr.bf16.mxu0 %v1910_v27  ;;  %3545 = vmatprep.subr.bf16.mxu1 %v1910_v27  ;;  %v1913_v42 = vpack.c.bf16 %v1903_v39, %v1902_v38  ;;  %v1904_v43 = vld [vmem:[%s5429_s5 + $0x60] sm:$0xff]  ;;  %v1905_v44 = vld [vmem:[%s5429_s5 + $0x68] sm:$0xff]  ;;  %v165_v45 = vld [vmem:[%s5425_s1 + $0x18] sm:$0xff] }
  0x21   :  { %v164_v46 = vld [vmem:[%s5425_s1 + $0x10] sm:$0xff]  ;;  %v1914_v47 = vpack.c.bf16 %v1905_v44, %v1904_v43  ;;  %v1907_v49 = vld [vmem:[%s5429_s5 + $0x78] sm:$0xff]  ;;  %v167_v50 = vld [vmem:[%s5425_s1 + $0x28] sm:$0xff] }
  0x22   :  { %344 = vperm.xlu1 %3565, %v51_v25   ;;  %341 = vperm.xlu0 %3564, %v50_v26   ;;  %v1906_v48 = vld [vmem:[%s5429_s5 + $0x70] sm:$0xff]  ;;  %v166_v51 = vld [vmem:[%s5425_s1 + $0x20] sm:$0xff]  ;;  %v169_v53 = vld [vmem:[%s5425_s1 + $0x38] sm:$0xff] }
  0x23   :  { %3376 = vmatpush3.bf16.msra.mxu0 %v1910_v27  ;;  %3553 = vmatpush3.bf16.msra.mxu1 %v1910_v27  ;;  %v1915_v52 = vpack.c.bf16 %v1907_v49, %v1906_v48  ;;  %v168_v54 = vld [vmem:[%s5425_s1 + $0x30] sm:$0xff]  ;;  %v171_v55 = vld [vmem:[%s5425_s1 + $0x48] sm:$0xff]  ;;  %v170_v56 = vld [vmem:[%s5425_s1 + $0x40] sm:$0xff] }
  0x24   :  { %3377 = vmatprep.subr.bf16.mxu0 %v1911_v32  ;;  %3546 = vmatprep.subr.bf16.mxu1 %v1911_v32  ;;  %v173_v57 = vld [vmem:[%s5425_s1 + $0x58] sm:$0xff]  ;;  %v172_v58 = vld [vmem:[%s5425_s1 + $0x50] sm:$0xff]  ;;  %v175_v59 = vld [vmem:[%s5425_s1 + $0x68] sm:$0xff] }
  0x25   :  { %v174_v60 = vld [vmem:[%s5425_s1 + $0x60] sm:$0xff]  ;;  %v177_v61 = vld [vmem:[%s5425_s1 + $0x78] sm:$0xff]  ;;  %v176_v62 = vld [vmem:[%s5425_s1 + $0x70] sm:$0xff] }
  0x26   :  { %350 = vperm.xlu1 %3565, %v53_v30   ;;  %347 = vperm.xlu0 %3564, %v52_v31   ;;  %v179_v63 = vld [vmem:[%s5425_s1 + $0x88] sm:$0xff]  ;;  %v178_v0 = vld [vmem:[%s5425_s1 + $0x80] sm:$0xff]  ;;  %v181_v1 = vld [vmem:[%s5425_s1 + $0x98] sm:$0xff] }
  0x27   :  { %3378 = vmatpush3.bf16.msra.mxu0 %v1911_v32  ;;  %3554 = vmatpush3.bf16.msra.mxu1 %v1911_v32  ;;  %v180_v2 = vld [vmem:[%s5425_s1 + $0x90] sm:$0xff]  ;;  %v57_v3 = vld [vmem:[%s5424_s0 + $0xb8] sm:$0xff]  ;;  %v183_v5 = vld [vmem:[%s5425_s1 + $0xa8] sm:$0xff] }
  0x28   :  { %3379 = vmatprep.subr.bf16.mxu0 %v1912_v37  ;;  %3547 = vmatprep.subr.bf16.mxu1 %v1912_v37  ;;  %v56_v4 = vld [vmem:[%s5424_s0 + $0xb0] sm:$0xff]  ;;  %v182_v6 = vld [vmem:[%s5425_s1 + $0xa0] sm:$0xff]  ;;  %v185_v7 = vld [vmem:[%s5425_s1 + $0xb8] sm:$0xff] }
  0x29   :  { %v184_v8 = vld [vmem:[%s5425_s1 + $0xb0] sm:$0xff]  ;;  %v59_v9 = vld [vmem:[%s5424_s0 + $0xc8] sm:$0xff]  ;;  %v58_v10 = vld [vmem:[%s5424_s0 + $0xc0] sm:$0xff] }
  0x2a   :  { %356 = vperm.xlu1 %3565, %v55_v35   ;;  %353 = vperm.xlu0 %3564, %v54_v36   ;;  %v61_v11 = vld [vmem:[%s5424_s0 + $0xd8] sm:$0xff]  ;;  %v60_v12 = vld [vmem:[%s5424_s0 + $0xd0] sm:$0xff]  ;;  %v147_v13 = vld [vmem:[%s5424_s0 + $0x388] sm:$0xff] }
  0x2b   :  { %3380 = vmatpush3.bf16.msra.mxu0 %v1912_v37  ;;  %3555 = vmatpush3.bf16.msra.mxu1 %v1912_v37  ;;  %v146_v14 = vld [vmem:[%s5424_s0 + $0x380] sm:$0xff]  ;;  %v149_v15 = vld [vmem:[%s5424_s0 + $0x398] sm:$0xff]  ;;  %v148_v16 = vld [vmem:[%s5424_s0 + $0x390] sm:$0xff] }
  0x2c   :  { %3381 = vmatprep.subr.bf16.mxu0 %v1913_v42  ;;  %3548 = vmatprep.subr.bf16.mxu1 %v1913_v42  ;;  %v187_v17 = vld [vmem:[%s5425_s1 + $0xc8] sm:$0xff]  ;;  %v186_v18 = vld [vmem:[%s5425_s1 + $0xc0] sm:$0xff]  ;;  %v189_v19 = vld [vmem:[%s5425_s1 + $0xd8] sm:$0xff] }
  0x2d   :  { %v188_v20 = vld [vmem:[%s5425_s1 + $0xd0] sm:$0xff]  ;;  %v275_v21 = vld [vmem:[%s5425_s1 + $0x388] sm:$0xff]  ;;  %v274_v22 = vld [vmem:[%s5425_s1 + $0x380] sm:$0xff] }
  0x2e   :  { %1067 = vperm.xlu1 %3565, %v163_v40   ;;  %1062 = vperm.xlu0 %3564, %v162_v41   ;;  %v277_v23 = vld [vmem:[%s5425_s1 + $0x398] sm:$0xff]  ;;  %v276_v24 = vld [vmem:[%s5425_s1 + $0x390] sm:$0xff]  ;;  %v63_v25 = vld [vmem:[%s5424_s0 + $0xe8] sm:$0xff] }
  0x2f   :  { %3382 = vmatpush3.bf16.msra.mxu0 %v1913_v42  ;;  %3556 = vmatpush3.bf16.msra.mxu1 %v1913_v42  ;;  %v62_v26 = vld [vmem:[%s5424_s0 + $0xe0] sm:$0xff]  ;;  %v65_v29 = vld [vmem:[%s5424_s0 + $0xf8] sm:$0xff]  ;;  %v64_v30 = vld [vmem:[%s5424_s0 + $0xf0] sm:$0xff] }
  0x30   :  { %3383 = vmatprep.subr.bf16.mxu0 %v1914_v47  ;;  %3549 = vmatprep.subr.bf16.mxu1 %v1914_v47  ;;  %v151_v33 = vld [vmem:[%s5424_s0 + $0x3a8] sm:$0xff]  ;;  %v150_v34 = vld [vmem:[%s5424_s0 + $0x3a0] sm:$0xff]  ;;  %v153_v37 = vld [vmem:[%s5424_s0 + $0x3b8] sm:$0xff] }
  0x31   :  { %v152_v38 = vld [vmem:[%s5424_s0 + $0x3b0] sm:$0xff]  ;;  %v191_v41 = vld [vmem:[%s5425_s1 + $0xe8] sm:$0xff]  ;;  %v190_v42 = vld [vmem:[%s5425_s1 + $0xe0] sm:$0xff] }
  0x32   :  { %1077 = vperm.xlu1 %3565, %v165_v45   ;;  %1072 = vperm.xlu0 %3564, %v164_v46   ;;  %v193_v45 = vld [vmem:[%s5425_s1 + $0xf8] sm:$0xff]  ;;  %v192_v46 = vld [vmem:[%s5425_s1 + $0xf0] sm:$0xff]  ;;  %v279_v49 = vld [vmem:[%s5425_s1 + $0x3a8] sm:$0xff] }
  0x33   :  { %3384 = vmatpush3.bf16.msra.mxu0 %v1914_v47  ;;  %3557 = vmatpush3.bf16.msra.mxu1 %v1914_v47 }
  0x34   :  { %3385 = vmatprep.subr.bf16.mxu0 %v1915_v52  ;;  %3550 = vmatprep.subr.bf16.mxu1 %v1915_v52 }
  0x36   :  { %1087 = vperm.xlu1 %3565, %v167_v50   ;;  %1082 = vperm.xlu0 %3564, %v166_v51   ;;  %v278_v50 = vld [vmem:[%s5425_s1 + $0x3a0] sm:$0xff] }
  0x37   :  { %3386 = vmatpush3.bf16.msra.mxu0 %v1915_v52  ;;  %3558 = vmatpush3.bf16.msra.mxu1 %v1915_v52 }
  0x3a   :  { %1097 = vperm.xlu1 %3565, %v169_v53   ;;  %1092 = vperm.xlu0 %3564, %v168_v54   ;;  %v281_v53 = vld [vmem:[%s5425_s1 + $0x3b8] sm:$0xff]  ;;  %v280_v54 = vld [vmem:[%s5425_s1 + $0x3b0] sm:$0xff] }
  0x3e   :  { %1107 = vperm.xlu1 %3565, %v171_v55   ;;  %1102 = vperm.xlu0 %3564, %v170_v56  }
  0x42   :  { %1117 = vperm.xlu1 %3565, %v173_v57   ;;  %1112 = vperm.xlu0 %3564, %v172_v58   ;;  %v67_v57 = vld [vmem:[%s5424_s0 + $0x108] sm:$0xff]  ;;  %v66_v58 = vld [vmem:[%s5424_s0 + $0x100] sm:$0xff] }
  0x46   :  { %1127 = vperm.xlu1 %3565, %v175_v59   ;;  %1122 = vperm.xlu0 %3564, %v174_v60  }
  0x4a   :  { %1137 = vperm.xlu1 %3565, %v177_v61   ;;  %1132 = vperm.xlu0 %3564, %v176_v62   ;;  %v5434_v61 = vlaneseq  ;;  %v69_v62 = vld [vmem:[%s5424_s0 + $0x118] sm:$0xff] }
  0x4e   :  { %1147 = vperm.xlu1 %3565, %v179_v63   ;;  %1142 = vperm.xlu0 %3564, %v178_v0   ;;  %v68_v63 = vld [vmem:[%s5424_s0 + $0x110] sm:$0xff] }
  0x52   :  { %1157 = vperm.xlu1 %3565, %v181_v1   ;;  %1152 = vperm.xlu0 %3564, %v180_v2   ;;  %v3988_v2 = vand.u32 127, %v5434_v61 }
  0x56   :  { %362 = vperm.xlu1 %3565, %v57_v3   ;;  %359 = vperm.xlu0 %3564, %v56_v4   ;;  %v155_v3 = vld [vmem:[%s5424_s0 + $0x3c8] sm:$0xff]  ;;  %v154_v4 = vld [vmem:[%s5424_s0 + $0x3c0] sm:$0xff] }
  0x5a   :  { %1167 = vperm.xlu1 %3565, %v183_v5   ;;  %1162 = vperm.xlu0 %3564, %v182_v6  }
  0x5e   :  { %1177 = vperm.xlu1 %3565, %v185_v7   ;;  %1172 = vperm.xlu0 %3564, %v184_v8   ;;  %v157_v7 = vld [vmem:[%s5424_s0 + $0x3d8] sm:$0xff]  ;;  %v156_v8 = vld [vmem:[%s5424_s0 + $0x3d0] sm:$0xff] }
  0x62   :  { %368 = vperm.xlu1 %3565, %v59_v9   ;;  %365 = vperm.xlu0 %3564, %v58_v10   ;;  %v5447_v10 = vmov 0.0  }
  0x66   :  { %374 = vperm.xlu1 %3565, %v61_v11   ;;  %371 = vperm.xlu0 %3564, %v60_v12  }
  0x6a   :  { %632 = vperm.xlu1 %3565, %v147_v13   ;;  %629 = vperm.xlu0 %3564, %v146_v14  }
  0x6e   :  { %638 = vperm.xlu1 %3565, %v149_v15   ;;  %635 = vperm.xlu0 %3564, %v148_v16   ;;  %v195_v16 = vld [vmem:[%s5425_s1 + $0x108] sm:$0xff] }
  0x72   :  { %1187 = vperm.xlu1 %3565, %v187_v17   ;;  %1182 = vperm.xlu0 %3564, %v186_v18   ;;  %v194_v17 = vld [vmem:[%s5425_s1 + $0x100] sm:$0xff] }
  0x76   :  { %1197 = vperm.xlu1 %3565, %v189_v19   ;;  %1192 = vperm.xlu0 %3564, %v188_v20  }
  0x7a   :  { %1627 = vperm.xlu1 %3565, %v275_v21   ;;  %1622 = vperm.xlu0 %3564, %v274_v22  }
  0x7e   :  { %1637 = vperm.xlu1 %3565, %v277_v23   ;;  %1632 = vperm.xlu0 %3564, %v276_v24  }
  0x81   :  { %v3893_v27 = vpop.permute.xlu1 %299  ;;  %v3895_v28 = vpop.permute.xlu0 %293 }
  0x82   :  { %380 = vperm.xlu1 %3565, %v63_v25   ;;  %377 = vperm.xlu0 %3564, %v62_v26   ;;  %vm676_vm0 = vcmp.eq.s32.totalorder %v3895_v28, %v3988_v2  ;;  %vm678_vm2 = vcmp.eq.s32.totalorder %v3893_v27, %v3988_v2  ;;  %v197_v25 = vld [vmem:[%s5425_s1 + $0x118] sm:$0xff]  ;;  %v196_v26 = vld [vmem:[%s5425_s1 + $0x110] sm:$0xff] }
  0x83   :  { %v3015_v12 = vsel %vm676_vm0, 1.0, %v5447_v10  ;;  %v3017_v21 = vsel %vm678_vm2, 1.0, %v5447_v10 }
  0x85   :  { %v3903_v31 = vpop.permute.xlu1 %302  ;;  %v3905_v32 = vpop.permute.xlu0 %296 }
  0x86   :  { %386 = vperm.xlu1 %3565, %v65_v29   ;;  %383 = vperm.xlu0 %3564, %v64_v30   ;;  %vm677_vm1 = vcmp.eq.s32.totalorder %v3905_v32, %v3988_v2  ;;  %vm679_vm3 = vcmp.eq.s32.totalorder %v3903_v31, %v3988_v2 }
  0x87   :  { %v3016_v11 = vsel %vm677_vm1, 1.0, %v5447_v10  ;;  %v3018_v19 = vsel %vm679_vm3, 1.0, %v5447_v10 }
  0x89   :  { %v3913_v35 = vpop.permute.xlu1 %308  ;;  %v3915_v36 = vpop.permute.xlu0 %305 }
  0x8a   :  { %644 = vperm.xlu1 %3565, %v151_v33   ;;  %641 = vperm.xlu0 %3564, %v150_v34   ;;  %vm681_vm4 = vcmp.eq.s32.totalorder %v3913_v35, %v3988_v2  ;;  %vm680_vm5 = vcmp.eq.s32.totalorder %v3915_v36, %v3988_v2  ;;  %v283_v34 = vld [vmem:[%s5425_s1 + $0x3c8] sm:$0xff]  ;;  %v282_v35 = vld [vmem:[%s5425_s1 + $0x3c0] sm:$0xff] }
  0x8b   :  { %v3020_v27 = vsel %vm681_vm4, 1.0, %v5447_v10  ;;  %v3019_v30 = vsel %vm680_vm5, 1.0, %v5447_v10 }
  0x8d   :  { %v3923_v39 = vpop.permute.xlu1 %314  ;;  %v3925_v40 = vpop.permute.xlu0 %311 }
  0x8e   :  { %650 = vperm.xlu1 %3565, %v153_v37   ;;  %647 = vperm.xlu0 %3564, %v152_v38   ;;  %vm683_vm6 = vcmp.eq.s32.totalorder %v3923_v39, %v3988_v2  ;;  %vm682_vm7 = vcmp.eq.s32.totalorder %v3925_v40, %v3988_v2 }
  0x8f   :  { %v3022_v37 = vsel %vm683_vm6, 1.0, %v5447_v10  ;;  %v3021_v39 = vsel %vm682_vm7, 1.0, %v5447_v10 }
  0x91   :  { %v3933_v43 = vpop.permute.xlu1 %320  ;;  %v3935_v44 = vpop.permute.xlu0 %317 }
  0x92   :  { %1207 = vperm.xlu1 %3565, %v191_v41   ;;  %1202 = vperm.xlu0 %3564, %v190_v42   ;;  %vm685_vm8 = vcmp.eq.s32.totalorder %v3933_v43, %v3988_v2  ;;  %vm684_vm9 = vcmp.eq.s32.totalorder %v3935_v44, %v3988_v2  ;;  %v284_v43 = vld [vmem:[%s5425_s1 + $0x3d0] sm:$0xff] }
  0x95   :  { %v3943_v47 = vpop.permute.xlu1 %326  ;;  %v3945_v48 = vpop.permute.xlu0 %323 }
  0x96   :  { %1217 = vperm.xlu1 %3565, %v193_v45   ;;  %1212 = vperm.xlu0 %3564, %v192_v46   ;;  %v285_v45 = vld [vmem:[%s5425_s1 + $0x3d8] sm:$0xff]  ;;  %vm687_vm10 = vcmp.eq.s32.totalorder %v3943_v47, %v3988_v2  ;;  %vm686_vm11 = vcmp.eq.s32.totalorder %v3945_v48, %v3988_v2  ;;  %v70_v47 = vld [vmem:[%s5424_s0 + $0x120] sm:$0xff] }
  0x99   :  { %v3953_v51 = vpop.permute.xlu1 %332  ;;  %v3955_v52 = vpop.permute.xlu0 %329 }
  0x9a   :  { %1647 = vperm.xlu1 %3565, %v279_v49   ;;  %1642 = vperm.xlu0 %3564, %v278_v50   ;;  %v3024_v49 = vsel %vm685_vm8, 1.0, %v5447_v10  ;;  %v3023_v50 = vsel %vm684_vm9, 1.0, %v5447_v10  ;;  %vm689_vm12 = vcmp.eq.s32.totalorder %v3953_v51, %v3988_v2  ;;  %vm688_vm13 = vcmp.eq.s32.totalorder %v3955_v52, %v3988_v2  ;;  %v72_v51 = vld [vmem:[%s5424_s0 + $0x130] sm:$0xff] }
  0x9d   :  { %v3963_v55 = vpop.permute.xlu1 %338  ;;  %v3965_v56 = vpop.permute.xlu0 %335 }
  0x9e   :  { %1657 = vperm.xlu1 %3565, %v281_v53   ;;  %1652 = vperm.xlu0 %3564, %v280_v54   ;;  %vm691_vm14 = vcmp.eq.s32.totalorder %v3963_v55, %v3988_v2  ;;  %vm690_vm15 = vcmp.eq.s32.totalorder %v3965_v56, %v3988_v2  ;;  %v2490_v56 = vld [vmem:[%s5430_s6 + $0x88] sm:$0xff]  ;;  %v160_v55 = vld [vmem:[%s5424_s0 + $0x3f0] sm:$0xff] }
  0xa1   :  { %v3973_v59 = vpop.permute.xlu1 %344  ;;  %v3975_v60 = vpop.permute.xlu0 %341 }
  0xa2   :  { %392 = vperm.xlu1 %3565, %v67_v57   ;;  %389 = vperm.xlu0 %3564, %v66_v58   ;;  %v71_v58 = vld [vmem:[%s5424_s0 + $0x128] sm:$0xff]  ;;  %vm693_vm0 = vcmp.eq.s32.totalorder %v3973_v59, %v3988_v2  ;;  %vm692_vm1 = vcmp.eq.s32.totalorder %v3975_v60, %v3988_v2  ;;  %v198_v59 = vld [vmem:[%s5425_s1 + $0x120] sm:$0xff] }
  0xa3   :  { %v3032_v60 = vsel %vm693_vm0, 1.0, %v5447_v10 }
  0xa5   :  { %v3983_v0 = vpop.permute.xlu1 %350  ;;  %v3985_v1 = vpop.permute.xlu0 %347 }
  0xa6   :  { %398 = vperm.xlu1 %3565, %v69_v62   ;;  %395 = vperm.xlu0 %3564, %v68_v63   ;;  %v3026_v63 = vsel %vm687_vm10, 1.0, %v5447_v10  ;;  %vm695_vm2 = vcmp.eq.s32.totalorder %v3983_v0, %v3988_v2  ;;  %vm694_vm3 = vcmp.eq.s32.totalorder %v3985_v1, %v3988_v2  ;;  %v199_v0 = vld [vmem:[%s5425_s1 + $0x128] sm:$0xff] }
  0xa9   :  { %v3996_v5 = vpop.permute.xlu1 %356  ;;  %v3998_v6 = vpop.permute.xlu0 %353 }
  0xaa   :  { %656 = vperm.xlu1 %3565, %v155_v3   ;;  %653 = vperm.xlu0 %3564, %v154_v4   ;;  %v3025_v3 = vsel %vm686_vm11, 1.0, %v5447_v10  ;;  %vm697_vm4 = vcmp.eq.s32.totalorder %v3996_v5, %v3988_v2  ;;  %vm696_vm5 = vcmp.eq.s32.totalorder %v3998_v6, %v3988_v2 }
  0xab   :  { %v3035_v5 = vsel %vm696_vm5, 1.0, %v5447_v10 }
  0xad   :  { %v1068_v9 = vpop.permute.xlu1 %1067  ;;  %v1063_v13 = vpop.permute.xlu0 %1062 }
  0xae   :  { %v1701_v14 = vmul.f32 %v3016_v11, %v1068_v9  ;;  %v1700_v15 = vmul.f32 %v3015_v12, %v1063_v13  ;;  %662 = vperm.xlu1 %3565, %v157_v7   ;;  %659 = vperm.xlu0 %3564, %v156_v8   ;;  %v73_v9 = vld [vmem:[%s5424_s0 + $0x138] sm:$0xff]  ;;  %v3028_v12 = vsel %vm689_vm12, 1.0, %v5447_v10  ;;  %v3027_v13 = vsel %vm688_vm13, 1.0, %v5447_v10 }
  0xb0   :  { %v1828_v18 = vpack.c.bf16 %v1701_v14, %v1700_v15 }
  0xb1   :  { %v1078_v20 = vpop.permute.xlu1 %1077  ;;  %v1073_v22 = vpop.permute.xlu0 %1072 }
  0xb2   :  { %v1703_v23 = vmul.f32 %v3018_v19, %v1078_v20  ;;  %v1702_v24 = vmul.f32 %v3017_v21, %v1073_v22  ;;  %1227 = vperm.xlu1 %3565, %v195_v16   ;;  %1222 = vperm.xlu0 %3564, %v194_v17   ;;  %v159_v17 = vld [vmem:[%s5424_s0 + $0x3e8] sm:$0xff]  ;;  %v2489_v20 = vld [vmem:[%s5430_s6 + $0x80] sm:$0xff]  ;;  %v3030_v21 = vsel %vm691_vm14, 1.0, %v5447_v10 }
  0xb3   :  { %3387 = vmatprep.mubr.bf16.mxu0 %v1828_v18  ;;  %v158_v18 = vld [vmem:[%s5424_s0 + $0x3e0] sm:$0xff] }
  0xb4   :  { %v1829_v28 = vpack.c.bf16 %v1703_v23, %v1702_v24  ;;  %v3029_v23 = vsel %vm690_vm15, 1.0, %v5447_v10 }
  0xb5   :  { %v1088_v29 = vpop.permute.xlu1 %1087  ;;  %v1083_v31 = vpop.permute.xlu0 %1082 }
  0xb6   :  { %v1705_v32 = vmul.f32 %v3020_v27, %v1088_v29  ;;  %v1704_v33 = vmul.f32 %v3019_v30, %v1083_v31  ;;  %1237 = vperm.xlu1 %3565, %v197_v25   ;;  %1232 = vperm.xlu0 %3564, %v196_v26   ;;  %v2513_v25 = vpack.c.bf16 %v2490_v56, %v2489_v20  ;;  %v161_v27 = vld [vmem:[%s5424_s0 + $0x3f8] sm:$0xff]  ;;  %v3031_v31 = vsel %vm692_vm1, 1.0, %v5447_v10 }
  0xb7   :  { %3388 = vmatmul.mubr.bf16.vlgmr.msra.gmra.mrb[0].mxu0 %v1829_v28  ;;  %v205_v56 = vld [vmem:[%s5425_s1 + $0x158] sm:$0xff] }
  0xb8   :  { %v1830_v36 = vpack.c.bf16 %v1705_v32, %v1704_v33  ;;  %3243 = vmatprep.subr.bf16.mxu1 %v2513_v25  ;;  %v78_v25 = vld [vmem:[%s5424_s0 + $0x160] sm:$0xff] }
  0xb9   :  { %v1098_v38 = vpop.permute.xlu1 %1097  ;;  %v1093_v40 = vpop.permute.xlu0 %1092 }
  0xba   :  { %v1707_v41 = vmul.f32 %v3022_v37, %v1098_v38  ;;  %v1706_v42 = vmul.f32 %v3021_v39, %v1093_v40  ;;  %1667 = vperm.xlu1 %3565, %v283_v34   ;;  %1662 = vperm.xlu0 %3564, %v282_v35   ;;  %v3033_v38 = vsel %vm694_vm3, 1.0, %v5447_v10 }
  0xbb   :  { %3391 = vmatprep.mubr.bf16.mxu0 %v1830_v36  ;;  %v3034_v36 = vsel %vm695_vm2, 1.0, %v5447_v10 }
  0xbc   :  { %v1831_v46 = vpack.c.bf16 %v1707_v41, %v1706_v42  ;;  %v201_v41 = vld [vmem:[%s5425_s1 + $0x138] sm:$0xff]  ;;  %v200_v42 = vld [vmem:[%s5425_s1 + $0x130] sm:$0xff] }
  0xbd   :  { %v1108_v44 = vpop.permute.xlu1 %1107  ;;  %v1103_v53 = vpop.permute.xlu0 %1102 }
  0xbe   :  { %v1709_v54 = vmul.f32 %v3024_v49, %v1108_v44  ;;  %v1708_v57 = vmul.f32 %v3023_v50, %v1103_v53  ;;  %1677 = vperm.xlu1 %3565, %v285_v45   ;;  %1672 = vperm.xlu0 %3564, %v284_v43   ;;  %v287_v49 = vld [vmem:[%s5425_s1 + $0x3e8] sm:$0xff]  ;;  %v286_v44 = vld [vmem:[%s5425_s1 + $0x3e0] sm:$0xff]  ;;  %v3036_v50 = vsel %vm697_vm4, 1.0, %v5447_v10 }
  0xbf   :  { %3392 = vmatmul.mubr.bf16.gmra.mrb[4].mxu0 %v1831_v46 }
  0xc0   :  { %v1832_v62 = vpack.c.bf16 %v1709_v54, %v1708_v57 }
  0xc1   :  { %v1118_v48 = vpop.permute.xlu1 %1117  ;;  %v1113_v4 = vpop.permute.xlu0 %1112 }
  0xc2   :  { %v1711_v7 = vmul.f32 %v3026_v63, %v1118_v48  ;;  %v1710_v8 = vmul.f32 %v3025_v3, %v1113_v4  ;;  %404 = vperm.xlu1 %3565, %v71_v58   ;;  %401 = vperm.xlu0 %3564, %v70_v47   ;;  %v289_v58 = vld [vmem:[%s5425_s1 + $0x3f8] sm:$0xff]  ;;  %v288_v47 = vld [vmem:[%s5425_s1 + $0x3f0] sm:$0xff] }
  0xc3   :  { %3395 = vmatprep.mubr.bf16.mxu0 %v1832_v62 }
  0xc4   :  { %v1833_v11 = vpack.c.bf16 %v1711_v7, %v1710_v8 }
  0xc5   :  { %v1128_v52 = vpop.permute.xlu1 %1127  ;;  %v1123_v14 = vpop.permute.xlu0 %1122 }
  0xc6   :  { %v1713_v15 = vmul.f32 %v3028_v12, %v1128_v52  ;;  %v1712_v16 = vmul.f32 %v3027_v13, %v1123_v14  ;;  %410 = vperm.xlu1 %3565, %v73_v9   ;;  %407 = vperm.xlu0 %3564, %v72_v51   ;;  %v75_v9 = vld [vmem:[%s5424_s0 + $0x148] sm:$0xff]  ;;  %v74_v51 = vld [vmem:[%s5424_s0 + $0x140] sm:$0xff]  ;;  %v77_v13 = vld [vmem:[%s5424_s0 + $0x158] sm:$0xff] }
  0xc7   :  { %3396 = vmatmul.mubr.bf16.gmra.mrb[8].mxu0 %v1833_v11  ;;  %v76_v14 = vld [vmem:[%s5424_s0 + $0x150] sm:$0xff] }
  0xc8   :  { %v1834_v19 = vpack.c.bf16 %v1713_v15, %v1712_v16 }
  0xc9   :  { %v1138_v22 = vpop.permute.xlu1 %1137  ;;  %v1133_v24 = vpop.permute.xlu0 %1132 }
  0xca   :  { %v1715_v26 = vmul.f32 %v3030_v21, %v1138_v22  ;;  %v1714_v28 = vmul.f32 %v3029_v23, %v1133_v24  ;;  %668 = vperm.xlu1 %3565, %v159_v17   ;;  %665 = vperm.xlu0 %3564, %v158_v18   ;;  %v203_v17 = vld [vmem:[%s5425_s1 + $0x148] sm:$0xff]  ;;  %v202_v18 = vld [vmem:[%s5425_s1 + $0x140] sm:$0xff]  ;;  %v204_v21 = vld [vmem:[%s5425_s1 + $0x150] sm:$0xff] }
  0xcb   :  { %3399 = vmatprep.mubr.bf16.mxu0 %v1834_v19  ;;  %v79_v24 = vld [vmem:[%s5424_s0 + $0x168] sm:$0xff] }
  0xcc   :  { %v1835_v29 = vpack.c.bf16 %v1715_v26, %v1714_v28 }
  0xcd   :  { %v1148_v30 = vpop.permute.xlu1 %1147  ;;  %v1143_v32 = vpop.permute.xlu0 %1142 }
  0xce   :  { %v1717_v33 = vmul.f32 %v3032_v60, %v1148_v30  ;;  %v1716_v34 = vmul.f32 %v3031_v31, %v1143_v32  ;;  %674 = vperm.xlu1 %3565, %v161_v27   ;;  %671 = vperm.xlu0 %3564, %v160_v55   ;;  %v81_v30 = vld [vmem:[%s5424_s0 + $0x178] sm:$0xff]  ;;  %v80_v31 = vld [vmem:[%s5424_s0 + $0x170] sm:$0xff] }
  0xcf   :  { %3400 = vmatmul.mubr.bf16.gmra.mrb[12].mxu0 %v1835_v29 }
  0xd0   :  { %v1836_v35 = vpack.c.bf16 %v1717_v33, %v1716_v34 }
  0xd1   :  { %v1158_v37 = vpop.permute.xlu1 %1157  ;;  %v1153_v1 = vpop.permute.xlu0 %1152 }
  0xd2   :  { %v1719_v39 = vmul.f32 %v3034_v36, %v1158_v37  ;;  %v1718_v40 = vmul.f32 %v3033_v38, %v1153_v1  ;;  %1247 = vperm.xlu1 %3565, %v199_v0   ;;  %1242 = vperm.xlu0 %3564, %v198_v59   ;;  %v207_v37 = vld [vmem:[%s5425_s1 + $0x168] sm:$0xff]  ;;  %v206_v38 = vld [vmem:[%s5425_s1 + $0x160] sm:$0xff] }
  0xd3   :  { %3403 = vmatprep.mubr.bf16.mxu0 %v1836_v35 }
  0xd4   :  { %v1837_v45 = vpack.c.bf16 %v1719_v39, %v1718_v40 }
  0xd5   :  { %v363_v43 = vpop.permute.xlu1 %362  ;;  %v360_v46 = vpop.permute.xlu0 %359 }
  0xd6   :  { %1257 = vperm.xlu1 %3565, %v201_v41   ;;  %1252 = vperm.xlu0 %3564, %v200_v42   ;;  %vm699_vm6 = vcmp.eq.s32.totalorder %v363_v43, %v3988_v2  ;;  %vm698_vm7 = vcmp.eq.s32.totalorder %v360_v46, %v3988_v2  ;;  %v209_v46 = vld [vmem:[%s5425_s1 + $0x178] sm:$0xff] }
  0xd7   :  { %3404 = vmatmul.mubr.bf16.gmra.mrb[16].mxu0 %v1837_v45  ;;  %v3038_v63 = vsel %vm699_vm6, 1.0, %v5447_v10  ;;  %v3037_v3 = vsel %vm698_vm7, 1.0, %v5447_v10 }
  0xd9   :  { %v1168_v53 = vpop.permute.xlu1 %1167  ;;  %v1163_v54 = vpop.permute.xlu0 %1162 }
  0xda   :  { %v1721_v6 = vmul.f32 %v3036_v50, %v1168_v53  ;;  %v1720_v57 = vmul.f32 %v3035_v5, %v1163_v54  ;;  %1687 = vperm.xlu1 %3565, %v287_v49   ;;  %1682 = vperm.xlu0 %3564, %v286_v44   ;;  %v208_v49 = vld [vmem:[%s5425_s1 + $0x170] sm:$0xff] }
  0xdc   :  { %v1838_v62 = vpack.c.bf16 %v1721_v6, %v1720_v57  ;;  %v2473_v6 = vld [vmem:[%s5430_s6] sm:$0xff]  ;;  %v2474_v57 = vld [vmem:[%s5430_s6 + $0x8] sm:$0xff] }
  0xdd   :  { %v1178_v48 = vpop.permute.xlu1 %1177  ;;  %v1173_v4 = vpop.permute.xlu0 %1172 }
  0xde   :  { %v1723_v7 = vmul.f32 %v3038_v63, %v1178_v48  ;;  %v1722_v8 = vmul.f32 %v3037_v3, %v1173_v4  ;;  %1697 = vperm.xlu1 %3565, %v289_v58   ;;  %1692 = vperm.xlu0 %3564, %v288_v47   ;;  %v2492_v63 = vld [vmem:[%s5430_s6 + $0x98] sm:$0xff]  ;;  %v83_v48 = vld [vmem:[%s5424_s0 + $0x188] sm:$0xff]  ;;  %v82_v3 = vld [vmem:[%s5424_s0 + $0x180] sm:$0xff] }
  0xdf   :  { %3407 = vmatprep.mubr.bf16.mxu0 %v1838_v62  ;;  %v2491_v62 = vld [vmem:[%s5430_s6 + $0x90] sm:$0xff] }
  0xe0   :  { %v1839_v11 = vpack.c.bf16 %v1723_v7, %v1722_v8  ;;  %v2505_v7 = vpack.c.bf16 %v2474_v57, %v2473_v6  ;;  %v89_v6 = vld [vmem:[%s5424_s0 + $0x1b8] sm:$0xff]  ;;  %v88_v57 = vld [vmem:[%s5424_s0 + $0x1b0] sm:$0xff] }
  0xe1   :  { %v369_v12 = vpop.permute.xlu1 %368  ;;  %v366_v52 = vpop.permute.xlu0 %365 }
  0xe2   :  { %416 = vperm.xlu1 %3565, %v75_v9   ;;  %413 = vperm.xlu0 %3564, %v74_v51   ;;  %vm701_vm8 = vcmp.eq.s32.totalorder %v369_v12, %v3988_v2  ;;  %vm700_vm9 = vcmp.eq.s32.totalorder %v366_v52, %v3988_v2  ;;  %v2514_v51 = vpack.c.bf16 %v2492_v63, %v2491_v62  ;;  %v2476_v12 = vld [vmem:[%s5430_s6 + $0x18] sm:$0xff]  ;;  %v2493_v52 = vld [vmem:[%s5430_s6 + $0xa0] sm:$0xff] }
  0xe3   :  { %3408 = vmatmul.mubr.bf16.gmra.mrb[20].mxu0 %v1839_v11  ;;  %v3040_v26 = vsel %vm701_vm8, 1.0, %v5447_v10  ;;  %v3039_v27 = vsel %vm700_vm9, 1.0, %v5447_v10  ;;  %v2475_v11 = vld [vmem:[%s5430_s6 + $0x10] sm:$0xff] }
  0xe5   :  { %v375_v15 = vpop.permute.xlu1 %374  ;;  %v372_v16 = vpop.permute.xlu0 %371 }
  0xe6   :  { %422 = vperm.xlu1 %3565, %v77_v13   ;;  %419 = vperm.xlu0 %3564, %v76_v14   ;;  %vm703_vm10 = vcmp.eq.s32.totalorder %v375_v15, %v3988_v2  ;;  %vm702_vm11 = vcmp.eq.s32.totalorder %v372_v16, %v3988_v2  ;;  %v2494_v13 = vld [vmem:[%s5430_s6 + $0xa8] sm:$0xff]  ;;  %v85_v14 = vld [vmem:[%s5424_s0 + $0x198] sm:$0xff]  ;;  %v84_v15 = vld [vmem:[%s5424_s0 + $0x190] sm:$0xff]  ;;  %v2506_v16 = vpack.c.bf16 %v2476_v12, %v2475_v11 }
  0xe7   :  { %v3042_v33 = vsel %vm703_vm10, 1.0, %v5447_v10  ;;  %v3041_v0 = vsel %vm702_vm11, 1.0, %v5447_v10  ;;  %v2503_v11 = vld [vmem:[%s5430_s6 + $0xf0] sm:$0xff]  ;;  %v2504_v12 = vld [vmem:[%s5430_s6 + $0xf8] sm:$0xff] }
  0xe9   :  { %v633_v19 = vpop.permute.xlu1 %632  ;;  %v630_v20 = vpop.permute.xlu0 %629 }
  0xea   :  { %1267 = vperm.xlu1 %3565, %v203_v17   ;;  %1262 = vperm.xlu0 %3564, %v202_v18   ;;  %vm789_vm12 = vcmp.eq.s32.totalorder %v633_v19, %v3988_v2  ;;  %vm788_vm13 = vcmp.eq.s32.totalorder %v630_v20, %v3988_v2  ;;  %v2515_v19 = vpack.c.bf16 %v2494_v13, %v2493_v52  ;;  %v2477_v20 = vld [vmem:[%s5430_s6 + $0x20] sm:$0xff]  ;;  %v215_v52 = vld [vmem:[%s5425_s1 + $0x1a8] sm:$0xff] }
  0xeb   :  { %v3128_v39 = vsel %vm789_vm12, 1.0, %v5447_v10  ;;  %v3127_v41 = vsel %vm788_vm13, 1.0, %v5447_v10  ;;  %v214_v13 = vld [vmem:[%s5425_s1 + $0x1a0] sm:$0xff] }
  0xed   :  { %v639_v22 = vpop.permute.xlu1 %638  ;;  %v636_v23 = vpop.permute.xlu0 %635 }
  0xee   :  { %1277 = vperm.xlu1 %3565, %v205_v56   ;;  %1272 = vperm.xlu0 %3564, %v204_v21   ;;  %vm791_vm14 = vcmp.eq.s32.totalorder %v639_v22, %v3988_v2  ;;  %vm790_vm15 = vcmp.eq.s32.totalorder %v636_v23, %v3988_v2  ;;  %v2478_v56 = vld [vmem:[%s5430_s6 + $0x28] sm:$0xff]  ;;  %v2495_v21 = vld [vmem:[%s5430_s6 + $0xb0] sm:$0xff]  ;;  %v2496_v22 = vld [vmem:[%s5430_s6 + $0xb8] sm:$0xff] }
  0xef   :  { %v3130_v50 = vsel %vm791_vm14, 1.0, %v5447_v10  ;;  %v3129_v5 = vsel %vm790_vm15, 1.0, %v5447_v10  ;;  %v211_v23 = vld [vmem:[%s5425_s1 + $0x188] sm:$0xff] }
  0xf1   :  { %v1188_v28 = vpop.permute.xlu1 %1187  ;;  %v1183_v55 = vpop.permute.xlu0 %1182 }
  0xf2   :  { %v1725_v29 = vmul.f32 %v3040_v26, %v1188_v28  ;;  %v1724_v60 = vmul.f32 %v3039_v27, %v1183_v55  ;;  %428 = vperm.xlu1 %3565, %v79_v24   ;;  %425 = vperm.xlu0 %3564, %v78_v25   ;;  %v210_v24 = vld [vmem:[%s5425_s1 + $0x180] sm:$0xff]  ;;  %v2507_v25 = vpack.c.bf16 %v2478_v56, %v2477_v20  ;;  %v2479_v55 = vld [vmem:[%s5430_s6 + $0x30] sm:$0xff] }
  0xf3   :  { %v2516_v27 = vpack.c.bf16 %v2496_v22, %v2495_v21  ;;  %v2520_v20 = vpack.c.bf16 %v2504_v12, %v2503_v11  ;;  %v2487_v56 = vld [vmem:[%s5430_s6 + $0x70] sm:$0xff]  ;;  %v2488_v21 = vld [vmem:[%s5430_s6 + $0x78] sm:$0xff] }
  0xf4   :  { %v1840_v32 = vpack.c.bf16 %v1725_v29, %v1724_v60  ;;  %v2480_v29 = vld [vmem:[%s5430_s6 + $0x38] sm:$0xff]  ;;  %v2497_v60 = vld [vmem:[%s5430_s6 + $0xc0] sm:$0xff] }
  0xf5   :  { %v1198_v34 = vpop.permute.xlu1 %1197  ;;  %v1193_v59 = vpop.permute.xlu0 %1192 }
  0xf6   :  { %v1727_v35 = vmul.f32 %v3042_v33, %v1198_v34  ;;  %v1726_v36 = vmul.f32 %v3041_v0, %v1193_v59  ;;  %434 = vperm.xlu1 %3565, %v81_v30   ;;  %431 = vperm.xlu0 %3564, %v80_v31   ;;  %v2498_v30 = vld [vmem:[%s5430_s6 + $0xc8] sm:$0xff]  ;;  %v213_v31 = vld [vmem:[%s5425_s1 + $0x198] sm:$0xff]  ;;  %v2508_v33 = vpack.c.bf16 %v2480_v29, %v2479_v55 }
  0xf7   :  { %3411 = vmatprep.mubr.bf16.mxu0 %v1840_v32  ;;  %v212_v32 = vld [vmem:[%s5425_s1 + $0x190] sm:$0xff]  ;;  %v2517_v59 = vpack.c.bf16 %v2498_v30, %v2497_v60 }
  0xf8   :  { %v1841_v1 = vpack.c.bf16 %v1727_v35, %v1726_v36  ;;  %v2481_v35 = vld [vmem:[%s5430_s6 + $0x40] sm:$0xff]  ;;  %v2482_v36 = vld [vmem:[%s5430_s6 + $0x48] sm:$0xff] }
  0xf9   :  { %v1628_v40 = vpop.permute.xlu1 %1627  ;;  %v1623_v42 = vpop.permute.xlu0 %1622 }
  0xfa   :  { %v1813_v45 = vmul.f32 %v3128_v39, %v1628_v40  ;;  %v1812_v43 = vmul.f32 %v3127_v41, %v1623_v42  ;;  %1287 = vperm.xlu1 %3565, %v207_v37   ;;  %1282 = vperm.xlu0 %3564, %v206_v38   ;;  %v2499_v37 = vld [vmem:[%s5430_s6 + $0xd0] sm:$0xff]  ;;  %v2500_v38 = vld [vmem:[%s5430_s6 + $0xd8] sm:$0xff]  ;;  %v86_v39 = vld [vmem:[%s5424_s0 + $0x1a0] sm:$0xff]  ;;  %v2509_v40 = vpack.c.bf16 %v2482_v36, %v2481_v35 }
  0xfb   :  { %3412 = vmatmul.mubr.bf16.gmra.mrb[24].mxu0 %v1841_v1  ;;  %v87_v1 = vld [vmem:[%s5424_s0 + $0x1a8] sm:$0xff]  ;;  %v93_v35 = vld [vmem:[%s5424_s0 + $0x1d8] sm:$0xff]  ;;  %v92_v36 = vld [vmem:[%s5424_s0 + $0x1d0] sm:$0xff] }
  0xfc   :  { %v1884_v44 = vpack.c.bf16 %v1813_v45, %v1812_v43 }
  0xfd   :  { %v1638_v53 = vpop.permute.xlu1 %1637  ;;  %v1633_v54 = vpop.permute.xlu0 %1632 }
  0xfe   :  { %v1815_v58 = vmul.f32 %v3130_v50, %v1638_v53  ;;  %v1814_v47 = vmul.f32 %v3129_v5, %v1633_v54  ;;  %1297 = vperm.xlu1 %3565, %v209_v46   ;;  %1292 = vperm.xlu0 %3564, %v208_v49   ;;  %v2518_v46 = vpack.c.bf16 %v2500_v38, %v2499_v37  ;;  %v2483_v49 = vld [vmem:[%s5430_s6 + $0x50] sm:$0xff]  ;;  %v2501_v5 = vld [vmem:[%s5430_s6 + $0xe0] sm:$0xff]  ;;  %v2502_v54 = vld [vmem:[%s5430_s6 + $0xe8] sm:$0xff] }
  0xff   :  { %3499 = vmatprep.mubr.bf16.mxu1 %v1884_v44  ;;  %v2484_v44 = vld [vmem:[%s5430_s6 + $0x58] sm:$0xff] }
 0x100   :  { %v1885_v4 = vpack.c.bf16 %v1815_v58, %v1814_v47  ;;  %v2510_v47 = vpack.c.bf16 %v2484_v44, %v2483_v49  ;;  %v95_v49 = vld [vmem:[%s5424_s0 + $0x1e8] sm:$0xff]  ;;  %v94_v44 = vld [vmem:[%s5424_s0 + $0x1e0] sm:$0xff] }
 0x101   :  { %v381_v8 = vpop.permute.xlu1 %380  ;;  %v378_v9 = vpop.permute.xlu0 %377 }
 0x102   :  { %440 = vperm.xlu1 %3565, %v83_v48   ;;  %437 = vperm.xlu0 %3564, %v82_v3   ;;  %vm705_vm0 = vcmp.eq.s32.totalorder %v381_v8, %v3988_v2  ;;  %vm704_vm1 = vcmp.eq.s32.totalorder %v378_v9, %v3988_v2  ;;  %v2486_v8 = vld [vmem:[%s5430_s6 + $0x68] sm:$0xff] }
 0x103   :  { %3500 = vmatmul.mubr.bf16.vlgmr.msra.gmra.mrb[0].mxu1 %v1885_v4  ;;  %v3044_v41 = vsel %vm705_vm0, 1.0, %v5447_v10  ;;  %v3043_v45 = vsel %vm704_vm1, 1.0, %v5447_v10  ;;  %v2519_v4 = vpack.c.bf16 %v2502_v54, %v2501_v5 }
 0x104   :  { %3244 = vmatpush3.bf16.msra.mxu1 %v2505_v7  ;;  %v2485_v7 = vld [vmem:[%s5430_s6 + $0x60] sm:$0xff] }
 0x105   :  { %v4263_v17 = vpop.permute.xlu1 %386  ;;  %v4265_v18 = vpop.permute.xlu0 %383  ;;  %3245 = vmatprep.subr.bf16.mxu1 %v2514_v51 }
 0x106   :  { %446 = vperm.xlu1 %3565, %v85_v14   ;;  %443 = vperm.xlu0 %3564, %v84_v15   ;;  %vm707_vm2 = vcmp.eq.s32.totalorder %v4263_v17, %v3988_v2  ;;  %vm706_vm3 = vcmp.eq.s32.totalorder %v4265_v18, %v3988_v2  ;;  %v2511_v15 = vpack.c.bf16 %v2486_v8, %v2485_v7 }
 0x107   :  { %v3046_v62 = vsel %vm707_vm2, 1.0, %v5447_v10  ;;  %v3045_v48 = vsel %vm706_vm3, 1.0, %v5447_v10 }
 0x108   :  { %3246 = vmatpush3.bf16.msra.mxu1 %v2506_v16 }
 0x109   :  { %v4285_v26 = vpop.permute.xlu1 %644  ;;  %v4287_v28 = vpop.permute.xlu0 %641  ;;  %3247 = vmatprep.subr.bf16.mxu1 %v2515_v19 }
 0x10a   :  { %1307 = vperm.xlu1 %3565, %v211_v23   ;;  %1302 = vperm.xlu0 %3564, %v210_v24   ;;  %vm793_vm4 = vcmp.eq.s32.totalorder %v4285_v26, %v3988_v2  ;;  %vm792_vm5 = vcmp.eq.s32.totalorder %v4287_v28, %v3988_v2  ;;  %v217_v24 = vld [vmem:[%s5425_s1 + $0x1b8] sm:$0xff]  ;;  %v2512_v28 = vpack.c.bf16 %v2488_v21, %v2487_v56 }
 0x10b   :  { %v3132_v16 = vsel %vm793_vm4, 1.0, %v5447_v10  ;;  %v3131_v18 = vsel %vm792_vm5, 1.0, %v5447_v10 }
 0x10c   :  { %3248 = vmatpush3.bf16.msra.mxu1 %v2507_v25  ;;  %v216_v25 = vld [vmem:[%s5425_s1 + $0x1b0] sm:$0xff] }
 0x10d   :  { %v4307_v34 = vpop.permute.xlu1 %650  ;;  %v4309_v0 = vpop.permute.xlu0 %647  ;;  %3249 = vmatprep.subr.bf16.mxu1 %v2516_v27 }
 0x10e   :  { %1317 = vperm.xlu1 %3565, %v213_v31   ;;  %1312 = vperm.xlu0 %3564, %v212_v32   ;;  %vm795_vm6 = vcmp.eq.s32.totalorder %v4307_v34, %v3988_v2  ;;  %vm794_vm7 = vcmp.eq.s32.totalorder %v4309_v0, %v3988_v2  ;;  %v91_v32 = vld [vmem:[%s5424_s0 + $0x1c8] sm:$0xff] }
 0x10f   :  { %v3134_v27 = vsel %vm795_vm6, 1.0, %v5447_v10  ;;  %v3133_v29 = vsel %vm794_vm7, 1.0, %v5447_v10 }
 0x110   :  { %3250 = vmatpush3.bf16.msra.mxu1 %v2508_v33  ;;  %v90_v33 = vld [vmem:[%s5424_s0 + $0x1c0] sm:$0xff] }
 0x111   :  { %v1208_v42 = vpop.permute.xlu1 %1207  ;;  %v1203_v43 = vpop.permute.xlu0 %1202  ;;  %3251 = vmatprep.subr.bf16.mxu1 %v2517_v59 }
 0x112   :  { %v1729_v50 = vmul.f32 %v3044_v41, %v1208_v42  ;;  %v1728_v53 = vmul.f32 %v3043_v45, %v1203_v43  ;;  %452 = vperm.xlu1 %3565, %v87_v1   ;;  %449 = vperm.xlu0 %3564, %v86_v39   ;;  %v219_v1 = vld [vmem:[%s5425_s1 + $0x1c8] sm:$0xff]  ;;  %v218_v39 = vld [vmem:[%s5425_s1 + $0x1c0] sm:$0xff]  ;;  %v221_v42 = vld [vmem:[%s5425_s1 + $0x1d8] sm:$0xff] }
 0x113   :  { %v220_v45 = vld [vmem:[%s5425_s1 + $0x1d0] sm:$0xff] }
 0x114   :  { %v1842_v58 = vpack.c.bf16 %v1729_v50, %v1728_v53  ;;  %3252 = vmatpush3.bf16.msra.mxu1 %v2509_v40 }
 0x115   :  { %v1218_v63 = vpop.permute.xlu1 %1217  ;;  %v1213_v3 = vpop.permute.xlu0 %1212  ;;  %3253 = vmatprep.subr.bf16.mxu1 %v2518_v46 }
 0x116   :  { %v1731_v9 = vmul.f32 %v3046_v62, %v1218_v63  ;;  %v1730_v51 = vmul.f32 %v3045_v48, %v1213_v3  ;;  %458 = vperm.xlu1 %3565, %v89_v6   ;;  %455 = vperm.xlu0 %3564, %v88_v57  }
 0x117   :  { %3415 = vmatprep.mubr.bf16.mxu0 %v1842_v58  ;;  %v97_v58 = vld [vmem:[%s5424_s0 + $0x1f8] sm:$0xff] }
 0x118   :  { %v1843_v14 = vpack.c.bf16 %v1731_v9, %v1730_v51  ;;  %3254 = vmatpush3.bf16.msra.mxu1 %v2510_v47  ;;  %v96_v47 = vld [vmem:[%s5424_s0 + $0x1f0] sm:$0xff]  ;;  %v223_v9 = vld [vmem:[%s5425_s1 + $0x1e8] sm:$0xff]  ;;  %v222_v51 = vld [vmem:[%s5425_s1 + $0x1e0] sm:$0xff] }
 0x119   :  { %v1648_v17 = vpop.permute.xlu1 %1647  ;;  %v1643_v19 = vpop.permute.xlu0 %1642  ;;  %3255 = vmatprep.subr.bf16.mxu1 %v2519_v4 }
 0x11a   :  { %v1817_v22 = vmul.f32 %v3132_v16, %v1648_v17  ;;  %v1816_v23 = vmul.f32 %v3131_v18, %v1643_v19  ;;  %1327 = vperm.xlu1 %3565, %v215_v52   ;;  %1322 = vperm.xlu0 %3564, %v214_v13   ;;  %v225_v17 = vld [vmem:[%s5425_s1 + $0x1f8] sm:$0xff]  ;;  %v224_v18 = vld [vmem:[%s5425_s1 + $0x1f0] sm:$0xff] }
 0x11b   :  { %3416 = vmatmul.mubr.bf16.gmra.mrb[28].mxu0 %v1843_v14 }
 0x11c   :  { %v1886_v26 = vpack.c.bf16 %v1817_v22, %v1816_v23  ;;  %3256 = vmatpush3.bf16.msra.mxu1 %v2511_v15 }
 0x11d   :  { %v1658_v55 = vpop.permute.xlu1 %1657  ;;  %v1653_v60 = vpop.permute.xlu0 %1652  ;;  %3257 = vmatprep.subr.bf16.mxu1 %v2520_v20 }
 0x11e   :  { %v1819_v30 = vmul.f32 %v3134_v27, %v1658_v55  ;;  %v1818_v31 = vmul.f32 %v3133_v29, %v1653_v60  ;;  %1337 = vperm.xlu1 %3565, %v217_v24   ;;  %1332 = vperm.xlu0 %3564, %v216_v25   ;;  %v99_v25 = vld [vmem:[%s5424_s0 + $0x208] sm:$0xff]  ;;  %v101_v29 = vld [vmem:[%s5424_s0 + $0x218] sm:$0xff]  ;;  %v100_v60 = vld [vmem:[%s5424_s0 + $0x210] sm:$0xff] }
 0x11f   :  { %3503 = vmatprep.mubr.bf16.mxu1 %v1886_v26  ;;  %v98_v26 = vld [vmem:[%s5424_s0 + $0x200] sm:$0xff] }
 0x120   :  { %v1887_v34 = vpack.c.bf16 %v1819_v30, %v1818_v31  ;;  %3258 = vmatpush3.bf16.msra.mxu1 %v2512_v28 }
 0x121   :  { %v393_v0 = vpop.permute.xlu1 %392  ;;  %v390_v59 = vpop.permute.xlu0 %389  ;;  %3515 = vmatprep.subr.bf16.mxu1 %v5447_v10 }
 0x122   :  { %464 = vperm.xlu1 %3565, %v91_v32   ;;  %461 = vperm.xlu0 %3564, %v90_v33   ;;  %vm709_vm8 = vcmp.eq.s32.totalorder %v393_v0, %v3988_v2  ;;  %vm708_vm9 = vcmp.eq.s32.totalorder %v390_v59, %v3988_v2  ;;  %v227_v32 = vld [vmem:[%s5425_s1 + $0x208] sm:$0xff]  ;;  %v226_v33 = vld [vmem:[%s5425_s1 + $0x200] sm:$0xff]  ;;  %v229_v59 = vld [vmem:[%s5425_s1 + $0x218] sm:$0xff] }
 0x123   :  { %3504 = vmatmul.mubr.bf16.gmra.mrb[4].mxu1 %v1887_v34  ;;  %v3048_v50 = vsel %vm709_vm8, 1.0, %v5447_v10  ;;  %v3047_v5 = vsel %vm708_vm9, 1.0, %v5447_v10 }
 0x125   :  { %v399_v37 = vpop.permute.xlu1 %398  ;;  %v396_v38 = vpop.permute.xlu0 %395 }
 0x126   :  { %470 = vperm.xlu1 %3565, %v93_v35   ;;  %467 = vperm.xlu0 %3564, %v92_v36   ;;  %vm711_vm10 = vcmp.eq.s32.totalorder %v399_v37, %v3988_v2  ;;  %vm710_vm11 = vcmp.eq.s32.totalorder %v396_v38, %v3988_v2  ;;  %v228_v35 = vld [vmem:[%s5425_s1 + $0x210] sm:$0xff]  ;;  %v103_v38 = vld [vmem:[%s5424_s0 + $0x228] sm:$0xff] }
 0x127   :  { %v3050_v63 = vsel %vm711_vm10, 1.0, %v5447_v10  ;;  %v3049_v3 = vsel %vm710_vm11, 1.0, %v5447_v10 }
 0x129   :  { %v657_v40 = vpop.permute.xlu1 %656  ;;  %v654_v41 = vpop.permute.xlu0 %653 }
 0x12a   :  { %1347 = vperm.xlu1 %3565, %v219_v1   ;;  %1342 = vperm.xlu0 %3564, %v218_v39   ;;  %vm797_vm12 = vcmp.eq.s32.totalorder %v657_v40, %v3988_v2  ;;  %vm796_vm13 = vcmp.eq.s32.totalorder %v654_v41, %v3988_v2  ;;  %v102_v1 = vld [vmem:[%s5424_s0 + $0x220] sm:$0xff] }
 0x12b   :  { %v3136_v12 = vsel %vm797_vm12, 1.0, %v5447_v10  ;;  %v3135_v13 = vsel %vm796_vm13, 1.0, %v5447_v10 }
 0x12d   :  { %v663_v43 = vpop.permute.xlu1 %662  ;;  %v660_v46 = vpop.permute.xlu0 %659 }
 0x12e   :  { %1357 = vperm.xlu1 %3565, %v221_v42   ;;  %1352 = vperm.xlu0 %3564, %v220_v45   ;;  %vm799_vm14 = vcmp.eq.s32.totalorder %v663_v43, %v3988_v2  ;;  %vm798_vm15 = vcmp.eq.s32.totalorder %v660_v46, %v3988_v2  ;;  %v105_v46 = vld [vmem:[%s5424_s0 + $0x238] sm:$0xff] }
 0x12f   :  { %v3138_v20 = vsel %vm799_vm14, 1.0, %v5447_v10  ;;  %v3137_v21 = vsel %vm798_vm15, 1.0, %v5447_v10 }
 0x131   :  { %v1228_v53 = vpop.permute.xlu1 %1227  ;;  %v1223_v54 = vpop.permute.xlu0 %1222 }
 0x132   :  { %v1733_v6 = vmul.f32 %v3048_v50, %v1228_v53  ;;  %v1732_v57 = vmul.f32 %v3047_v5, %v1223_v54  ;;  %476 = vperm.xlu1 %3565, %v95_v49   ;;  %473 = vperm.xlu0 %3564, %v94_v44   ;;  %v104_v49 = vld [vmem:[%s5424_s0 + $0x230] sm:$0xff] }
 0x134   :  { %v1844_v62 = vpack.c.bf16 %v1733_v6, %v1732_v57 }
 0x135   :  { %v1238_v48 = vpop.permute.xlu1 %1237  ;;  %v1233_v4 = vpop.permute.xlu0 %1232 }
 0x136   :  { %v1735_v7 = vmul.f32 %v3050_v63, %v1238_v48  ;;  %v1734_v8 = vmul.f32 %v3049_v3, %v1233_v4  ;;  %482 = vperm.xlu1 %3565, %v97_v58   ;;  %479 = vperm.xlu0 %3564, %v96_v47   ;;  %v231_v58 = vld [vmem:[%s5425_s1 + $0x228] sm:$0xff]  ;;  %v230_v47 = vld [vmem:[%s5425_s1 + $0x220] sm:$0xff] }
 0x137   :  { %3419 = vmatprep.mubr.bf16.mxu0 %v1844_v62 }
 0x138   :  { %v1845_v11 = vpack.c.bf16 %v1735_v7, %v1734_v8 }
 0x139   :  { %v1668_v52 = vpop.permute.xlu1 %1667  ;;  %v1663_v14 = vpop.permute.xlu0 %1662 }
 0x13a   :  { %v1821_v15 = vmul.f32 %v3136_v12, %v1668_v52  ;;  %v1820_v16 = vmul.f32 %v3135_v13, %v1663_v14  ;;  %1367 = vperm.xlu1 %3565, %v223_v9   ;;  %1362 = vperm.xlu0 %3564, %v222_v51   ;;  %v233_v9 = vld [vmem:[%s5425_s1 + $0x238] sm:$0xff]  ;;  %v232_v51 = vld [vmem:[%s5425_s1 + $0x230] sm:$0xff] }
 0x13b   :  { %3420 = vmatmul.mubr.bf16.gmra.mrb[32].mxu0 %v1845_v11 }
 0x13c   :  { %v1888_v19 = vpack.c.bf16 %v1821_v15, %v1820_v16  ;;  %v2462_v15 = vld [vmem:[%s5426_s2 + $0x8] sm:$0xff]  ;;  %v2464_v16 = vld [vmem:[%s5426_s2 + $0x18] sm:$0xff] }
 0x13d   :  { %v1678_v56 = vpop.permute.xlu1 %1677  ;;  %v1673_v22 = vpop.permute.xlu0 %1672 }
 0x13e   :  { %v1823_v23 = vmul.f32 %v3138_v20, %v1678_v56  ;;  %v1822_v24 = vmul.f32 %v3137_v21, %v1673_v22  ;;  %1377 = vperm.xlu1 %3565, %v225_v17   ;;  %1372 = vperm.xlu0 %3564, %v224_v18   ;;  %v106_v20 = vld [vmem:[%s5424_s0 + $0x240] sm:$0xff]  ;;  %v2470_v21 = vpack.c.bf16 %v2464_v16, %v2462_v15 }
 0x13f   :  { %3507 = vmatprep.mubr.bf16.mxu1 %v1888_v19  ;;  %v107_v19 = vld [vmem:[%s5424_s0 + $0x248] sm:$0xff] }
 0x140   :  { %v1889_v28 = vpack.c.bf16 %v1823_v23, %v1822_v24  ;;  %v109_v24 = vld [vmem:[%s5424_s0 + $0x258] sm:$0xff] }
 0x141   :  { %v405_v27 = vpop.permute.xlu1 %404  ;;  %v402_v55 = vpop.permute.xlu0 %401 }
 0x142   :  { %488 = vperm.xlu1 %3565, %v99_v25   ;;  %485 = vperm.xlu0 %3564, %v98_v26   ;;  %vm713_vm0 = vcmp.eq.s32.totalorder %v405_v27, %v3988_v2  ;;  %vm712_vm1 = vcmp.eq.s32.totalorder %v402_v55, %v3988_v2  ;;  %v108_v25 = vld [vmem:[%s5424_s0 + $0x250] sm:$0xff]  ;;  %v2461_v26 = vld [vmem:[%s5426_s2] sm:$0xff] }
 0x143   :  { %3508 = vmatmul.mubr.bf16.gmra.mrb[8].mxu1 %v1889_v28  ;;  %v3052_v39 = vsel %vm713_vm0, 1.0, %v5447_v10  ;;  %v3051_v41 = vsel %vm712_vm1, 1.0, %v5447_v10  ;;  %v2463_v28 = vld [vmem:[%s5426_s2 + $0x10] sm:$0xff] }
 0x145   :  { %v411_v30 = vpop.permute.xlu1 %410  ;;  %v408_v31 = vpop.permute.xlu0 %407 }
 0x146   :  { %494 = vperm.xlu1 %3565, %v101_v29   ;;  %491 = vperm.xlu0 %3564, %v100_v60   ;;  %vm715_vm2 = vcmp.eq.s32.totalorder %v411_v30, %v3988_v2  ;;  %vm714_vm3 = vcmp.eq.s32.totalorder %v408_v31, %v3988_v2  ;;  %v2466_v29 = vld [vmem:[%s5426_s2 + $0x28] sm:$0xff]  ;;  %v2468_v60 = vld [vmem:[%s5426_s2 + $0x38] sm:$0xff]  ;;  %v234_v31 = vld [vmem:[%s5425_s1 + $0x240] sm:$0xff] }
 0x147   :  { %v3054_v50 = vsel %vm715_vm2, 1.0, %v5447_v10  ;;  %v3053_v5 = vsel %vm714_vm3, 1.0, %v5447_v10  ;;  %v235_v30 = vld [vmem:[%s5425_s1 + $0x248] sm:$0xff] }
 0x149   :  { %v669_v34 = vpop.permute.xlu1 %668  ;;  %v666_v0 = vpop.permute.xlu0 %665 }
 0x14a   :  { %1387 = vperm.xlu1 %3565, %v227_v32   ;;  %1382 = vperm.xlu0 %3564, %v226_v33   ;;  %vm801_vm4 = vcmp.eq.s32.totalorder %v669_v34, %v3988_v2  ;;  %vm800_vm5 = vcmp.eq.s32.totalorder %v666_v0, %v3988_v2  ;;  %v2469_v32 = vpack.c.bf16 %v2463_v28, %v2461_v26 }
 0x14b   :  { %v3140_v63 = vsel %vm801_vm4, 1.0, %v5447_v10  ;;  %v3139_v3 = vsel %vm800_vm5, 1.0, %v5447_v10  ;;  %v2472_v33 = vpack.c.bf16 %v2468_v60, %v2466_v29 }
 0x14d   :  { %v675_v36 = vpop.permute.xlu1 %674  ;;  %v672_v37 = vpop.permute.xlu0 %671 }
 0x14e   :  { %1397 = vperm.xlu1 %3565, %v229_v59   ;;  %1392 = vperm.xlu0 %3564, %v228_v35   ;;  %vm803_vm6 = vcmp.eq.s32.totalorder %v675_v36, %v3988_v2  ;;  %vm802_vm7 = vcmp.eq.s32.totalorder %v672_v37, %v3988_v2 }
 0x14f   :  { %v3142_v12 = vsel %vm803_vm6, 1.0, %v5447_v10  ;;  %v3141_v13 = vsel %vm802_vm7, 1.0, %v5447_v10 }
 0x151   :  { %v1248_v40 = vpop.permute.xlu1 %1247  ;;  %v1243_v42 = vpop.permute.xlu0 %1242 }
 0x152   :  { %v1737_v45 = vmul.f32 %v3052_v39, %v1248_v40  ;;  %v1736_v43 = vmul.f32 %v3051_v41, %v1243_v42  ;;  %500 = vperm.xlu1 %3565, %v103_v38   ;;  %497 = vperm.xlu0 %3564, %v102_v1   ;;  %v237_v38 = vld [vmem:[%s5425_s1 + $0x258] sm:$0xff]  ;;  %v236_v1 = vld [vmem:[%s5425_s1 + $0x250] sm:$0xff]  ;;  %v2465_v40 = vld [vmem:[%s5426_s2 + $0x20] sm:$0xff] }
 0x153   :  { %v2467_v41 = vld [vmem:[%s5426_s2 + $0x30] sm:$0xff]  ;;  %s3596_s2 = smov [#allocation2]  }
 0x154   :  { %v1846_v44 = vpack.c.bf16 %v1737_v45, %v1736_v43 }
 0x155   :  { %v1258_v53 = vpop.permute.xlu1 %1257  ;;  %v1253_v54 = vpop.permute.xlu0 %1252 }
 0x156   :  { %v1739_v6 = vmul.f32 %v3054_v50, %v1258_v53  ;;  %v1738_v57 = vmul.f32 %v3053_v5, %v1253_v54  ;;  %506 = vperm.xlu1 %3565, %v105_v46   ;;  %503 = vperm.xlu0 %3564, %v104_v49   ;;  %v111_v50 = vld [vmem:[%s5424_s0 + $0x268] sm:$0xff]  ;;  %v110_v53 = vld [vmem:[%s5424_s0 + $0x260] sm:$0xff]  ;;  %v2471_v5 = vpack.c.bf16 %v2467_v41, %v2465_v40 }
 0x157   :  { %3423 = vmatprep.mubr.bf16.mxu0 %v1846_v44 }
 0x158   :  { %v1847_v62 = vpack.c.bf16 %v1739_v6, %v1738_v57 }
 0x159   :  { %v1688_v48 = vpop.permute.xlu1 %1687  ;;  %v1683_v4 = vpop.permute.xlu0 %1682 }
 0x15a   :  { %v1825_v7 = vmul.f32 %v3140_v63, %v1688_v48  ;;  %v1824_v8 = vmul.f32 %v3139_v3, %v1683_v4  ;;  %1407 = vperm.xlu1 %3565, %v231_v58   ;;  %1402 = vperm.xlu0 %3564, %v230_v47   ;;  %v113_v58 = vld [vmem:[%s5424_s0 + $0x278] sm:$0xff]  ;;  %v112_v47 = vld [vmem:[%s5424_s0 + $0x270] sm:$0xff]  ;;  %v239_v48 = vld [vmem:[%s5425_s1 + $0x268] sm:$0xff] }
 0x15b   :  { %3424 = vmatmul.mubr.bf16.gmra.mrb[36].mxu0 %v1847_v62  ;;  %v238_v3 = vld [vmem:[%s5425_s1 + $0x260] sm:$0xff] }
 0x15c   :  { %v1890_v11 = vpack.c.bf16 %v1825_v7, %v1824_v8 }
 0x15d   :  { %v1698_v52 = vpop.permute.xlu1 %1697  ;;  %v1693_v14 = vpop.permute.xlu0 %1692 }
 0x15e   :  { %v1827_v17 = vmul.f32 %v3142_v12, %v1698_v52  ;;  %v1826_v18 = vmul.f32 %v3141_v13, %v1693_v14  ;;  %1417 = vperm.xlu1 %3565, %v233_v9   ;;  %1412 = vperm.xlu0 %3564, %v232_v51   ;;  %v241_v12 = vld [vmem:[%s5425_s1 + $0x278] sm:$0xff]  ;;  %v240_v52 = vld [vmem:[%s5425_s1 + $0x270] sm:$0xff] }
 0x15f   :  { %3511 = vmatprep.mubr.bf16.mxu1 %v1890_v11 }
 0x160   :  { %v1891_v56 = vpack.c.bf16 %v1827_v17, %v1826_v18 }
 0x161   :  { %v417_v22 = vpop.permute.xlu1 %416  ;;  %v414_v23 = vpop.permute.xlu0 %413 }
 0x162   :  { %512 = vperm.xlu1 %3565, %v107_v19   ;;  %509 = vperm.xlu0 %3564, %v106_v20   ;;  %vm717_vm8 = vcmp.eq.s32.totalorder %v417_v22, %v3988_v2  ;;  %vm716_vm9 = vcmp.eq.s32.totalorder %v414_v23, %v3988_v2  ;;  %v115_v20 = vld [vmem:[%s5424_s0 + $0x288] sm:$0xff] }
 0x163   :  { %3512 = vmatmul.mubr.bf16.gmra.mrb[12].mxu1 %v1891_v56  ;;  %v3056_v34 = vsel %vm717_vm8, 1.0, %v5447_v10  ;;  %v3055_v59 = vsel %vm716_vm9, 1.0, %v5447_v10  ;;  %v114_v56 = vld [vmem:[%s5424_s0 + $0x280] sm:$0xff] }
 0x164   :  { %2560 = vmatprep.mubr.bf16.mxu1 %v2470_v21 }
 0x165   :  { %v423_v27 = vpop.permute.xlu1 %422  ;;  %v420_v55 = vpop.permute.xlu0 %419 }
 0x166   :  { %518 = vperm.xlu1 %3565, %v109_v24   ;;  %515 = vperm.xlu0 %3564, %v108_v25   ;;  %vm719_vm10 = vcmp.eq.s32.totalorder %v423_v27, %v3988_v2  ;;  %vm718_vm11 = vcmp.eq.s32.totalorder %v420_v55, %v3988_v2  ;;  %v117_v24 = vld [vmem:[%s5424_s0 + $0x298] sm:$0xff]  ;;  %v116_v25 = vld [vmem:[%s5424_s0 + $0x290] sm:$0xff]  ;;  %v243_v27 = vld [vmem:[%s5425_s1 + $0x288] sm:$0xff] }
 0x167   :  { %v3058_v42 = vsel %vm719_vm10, 1.0, %v5447_v10  ;;  %v3057_v43 = vsel %vm718_vm11, 1.0, %v5447_v10  ;;  %v242_v55 = vld [vmem:[%s5425_s1 + $0x280] sm:$0xff] }
 0x169   :  { %v1268_v0 = vpop.permute.xlu1 %1267  ;;  %v1263_v35 = vpop.permute.xlu0 %1262 }
 0x16a   :  { %v1741_v36 = vmul.f32 %v3056_v34, %v1268_v0  ;;  %v1740_v37 = vmul.f32 %v3055_v59, %v1263_v35  ;;  %1427 = vperm.xlu1 %3565, %v235_v30   ;;  %1422 = vperm.xlu0 %3564, %v234_v31   ;;  %v245_v59 = vld [vmem:[%s5425_s1 + $0x298] sm:$0xff]  ;;  %v244_v35 = vld [vmem:[%s5425_s1 + $0x290] sm:$0xff] }
 0x16b   :  { %2561 = vmatmul.mubr.bf16.vlgmr.msra.gmra.mrb[16].mxu1 %v2469_v32 }
 0x16c   :  { %v1848_v39 = vpack.c.bf16 %v1741_v36, %v1740_v37  ;;  %2568 = vmatprep.mubr.bf16.mxu1 %v2472_v33 }
 0x16d   :  { %v1278_v45 = vpop.permute.xlu1 %1277  ;;  %v1273_v46 = vpop.permute.xlu0 %1272 }
 0x16e   :  { %v1743_v49 = vmul.f32 %v3058_v42, %v1278_v45  ;;  %v1742_v44 = vmul.f32 %v3057_v43, %v1273_v46  ;;  %1437 = vperm.xlu1 %3565, %v237_v38   ;;  %1432 = vperm.xlu0 %3564, %v236_v1  }
 0x16f   :  { %3427 = vmatprep.mubr.bf16.mxu0 %v1848_v39 }
 0x170   :  { %v1849_v54 = vpack.c.bf16 %v1743_v49, %v1742_v44  ;;  %v119_v49 = vld [vmem:[%s5424_s0 + $0x2a8] sm:$0xff]  ;;  %v118_v44 = vld [vmem:[%s5424_s0 + $0x2a0] sm:$0xff] }
 0x171   :  { %v429_v6 = vpop.permute.xlu1 %428  ;;  %v426_v57 = vpop.permute.xlu0 %425 }
 0x172   :  { %524 = vperm.xlu1 %3565, %v111_v50   ;;  %521 = vperm.xlu0 %3564, %v110_v53   ;;  %vm721_vm12 = vcmp.eq.s32.totalorder %v429_v6, %v3988_v2  ;;  %vm720_vm13 = vcmp.eq.s32.totalorder %v426_v57, %v3988_v2  ;;  %v121_v57 = vld [vmem:[%s5424_s0 + $0x2b8] sm:$0xff] }
 0x173   :  { %3428 = vmatmul.mubr.bf16.gmra.mrb[40].mxu0 %v1849_v54  ;;  %2569 = vmatmul.mubr.bf16.gmra.mrb[20].mxu1 %v2471_v5  ;;  %v3060_v4 = vsel %vm721_vm12, 1.0, %v5447_v10  ;;  %v3059_v8 = vsel %vm720_vm13, 1.0, %v5447_v10 }
 0x175   :  { %v435_v62 = vpop.permute.xlu1 %434  ;;  %v432_v63 = vpop.permute.xlu0 %431 }
 0x176   :  { %530 = vperm.xlu1 %3565, %v113_v58   ;;  %527 = vperm.xlu0 %3564, %v112_v47   ;;  %vm723_vm14 = vcmp.eq.s32.totalorder %v435_v62, %v3988_v2  ;;  %vm722_vm15 = vcmp.eq.s32.totalorder %v432_v63, %v3988_v2  ;;  %v120_v58 = vld [vmem:[%s5424_s0 + $0x2b0] sm:$0xff] }
 0x177   :  { %v3062_v14 = vsel %vm723_vm14, 1.0, %v5447_v10  ;;  %v3061_v16 = vsel %vm722_vm15, 1.0, %v5447_v10 }
 0x179   :  { %v1288_v7 = vpop.permute.xlu1 %1287  ;;  %v1283_v9 = vpop.permute.xlu0 %1282 }
 0x17a   :  { %v1745_v51 = vmul.f32 %v3060_v4, %v1288_v7  ;;  %v1744_v11 = vmul.f32 %v3059_v8, %v1283_v9  ;;  %1447 = vperm.xlu1 %3565, %v239_v48   ;;  %1442 = vperm.xlu0 %3564, %v238_v3   ;;  %v247_v7 = vld [vmem:[%s5425_s1 + $0x2a8] sm:$0xff]  ;;  %v246_v8 = vld [vmem:[%s5425_s1 + $0x2a0] sm:$0xff] }
 0x17c   :  { %v1850_v13 = vpack.c.bf16 %v1745_v51, %v1744_v11 }
 0x17d   :  { %v1298_v15 = vpop.permute.xlu1 %1297  ;;  %v1293_v17 = vpop.permute.xlu0 %1292 }
 0x17e   :  { %v1747_v18 = vmul.f32 %v3062_v14, %v1298_v15  ;;  %v1746_v19 = vmul.f32 %v3061_v16, %v1293_v17  ;;  %1457 = vperm.xlu1 %3565, %v241_v12   ;;  %1452 = vperm.xlu0 %3564, %v240_v52   ;;  %v249_v16 = vld [vmem:[%s5425_s1 + $0x2b8] sm:$0xff]  ;;  %v248_v17 = vld [vmem:[%s5425_s1 + $0x2b0] sm:$0xff] }
 0x17f   :  { %3431 = vmatprep.mubr.bf16.mxu0 %v1850_v13 }
 0x180   :  { %v1851_v21 = vpack.c.bf16 %v1747_v18, %v1746_v19 }
 0x181   :  { %v441_v22 = vpop.permute.xlu1 %440  ;;  %v438_v23 = vpop.permute.xlu0 %437 }
 0x182   :  { %536 = vperm.xlu1 %3565, %v115_v20   ;;  %533 = vperm.xlu0 %3564, %v114_v56   ;;  %vm725_vm0 = vcmp.eq.s32.totalorder %v441_v22, %v3988_v2  ;;  %vm724_vm1 = vcmp.eq.s32.totalorder %v438_v23, %v3988_v2 }
 0x183   :  { %3432 = vmatmul.mubr.bf16.gmra.mrb[44].mxu0 %v1851_v21  ;;  %v3064_v29 = vsel %vm725_vm0, 1.0, %v5447_v10  ;;  %v3063_v30 = vsel %vm724_vm1, 1.0, %v5447_v10 }
 0x185   :  { %v447_v26 = vpop.permute.xlu1 %446  ;;  %v444_v28 = vpop.permute.xlu0 %443 }
 0x186   :  { %542 = vperm.xlu1 %3565, %v117_v24   ;;  %539 = vperm.xlu0 %3564, %v116_v25   ;;  %vm727_vm2 = vcmp.eq.s32.totalorder %v447_v26, %v3988_v2  ;;  %vm726_vm3 = vcmp.eq.s32.totalorder %v444_v28, %v3988_v2 }
 0x187   :  { %v3066_v39 = vsel %vm727_vm2, 1.0, %v5447_v10  ;;  %v3065_v45 = vsel %vm726_vm3, 1.0, %v5447_v10 }
 0x189   :  { %v1308_v60 = vpop.permute.xlu1 %1307  ;;  %v1303_v31 = vpop.permute.xlu0 %1302 }
 0x18a   :  { %v1749_v32 = vmul.f32 %v3064_v29, %v1308_v60  ;;  %v4653_v33 = vpop.f32.mrb[0].mxu0  ;;  %v1748_v34 = vmul.f32 %v3063_v30, %v1303_v31  ;;  %1467 = vperm.xlu1 %3565, %v243_v27   ;;  %1462 = vperm.xlu0 %3564, %v242_v55   ;;  %v123_v27 = vld [vmem:[%s5424_s0 + $0x2c8] sm:$0xff]  ;;  %v122_v55 = vld [vmem:[%s5424_s0 + $0x2c0] sm:$0xff] }
 0x18b   :  { %v4656_v0 = vpop.f32.mrb[1].mxu0 }
 0x18c   :  { %v1852_v36 = vpack.c.bf16 %v1749_v32, %v1748_v34  ;;  %v4664_v37 = vpop.f32.mrb[2].mxu0  ;;  %v125_v34 = vld [vmem:[%s5424_s0 + $0x2d8] sm:$0xff] }
 0x18d   :  { %v4668_v1 = vpop.f32.mrb[3].mxu0  ;;  %v1318_v40 = vpop.permute.xlu1 %1317 }
 0x18e   :  { %v1751_v42 = vmul.f32 %v3066_v39, %v1318_v40  ;;  %v1313_v43 = vpop.permute.xlu0 %1312  ;;  %1477 = vperm.xlu1 %3565, %v245_v59   ;;  %1472 = vperm.xlu0 %3564, %v244_v35   ;;  %v124_v59 = vld [vmem:[%s5424_s0 + $0x2d0] sm:$0xff] }
 0x18f   :  { %v1750_v46 = vmul.f32 %v3065_v45, %v1313_v43  ;;  %3435 = vmatprep.mubr.bf16.mxu0 %v1852_v36  ;;  %v251_v43 = vld [vmem:[%s5425_s1 + $0x2c8] sm:$0xff] }
 0x191   :  { %v1853_v50 = vpack.c.bf16 %v1751_v42, %v1750_v46  ;;  %v453_v53 = vpop.permute.xlu1 %452  ;;  %v250_v46 = vld [vmem:[%s5425_s1 + $0x2c0] sm:$0xff]  ;;  %v145_v42 = vld [vmem:[%s5424_s0 + $0x378] sm:$0xff] }
 0x192   :  { %v4680_v5 = vpop.f32.mrb[4].mxu0  ;;  %v450_v54 = vpop.permute.xlu0 %449  ;;  %548 = vperm.xlu1 %3565, %v119_v49   ;;  %545 = vperm.xlu0 %3564, %v118_v44   ;;  %vm729_vm4 = vcmp.eq.s32.totalorder %v453_v53, %v3988_v2 }
 0x193   :  { %v4682_v6 = vpop.f32.mrb[5].mxu0  ;;  %3436 = vmatmul.mubr.bf16.gmra.mrb[48].mxu0 %v1853_v50  ;;  %vm728_vm5 = vcmp.eq.s32.totalorder %v450_v54, %v3988_v2  ;;  %v3068_v9 = vsel %vm729_vm4, 1.0, %v5447_v10 }
 0x194   :  { %v4690_v47 = vpop.f32.mrb[6].mxu0  ;;  %v3067_v52 = vsel %vm728_vm5, 1.0, %v5447_v10 }
 0x195   :  { %v4694_v63 = vpop.f32.mrb[7].mxu0  ;;  %v459_v48 = vpop.permute.xlu1 %458 }
 0x196   :  { %v456_v4 = vpop.permute.xlu0 %455  ;;  %554 = vperm.xlu1 %3565, %v121_v57   ;;  %551 = vperm.xlu0 %3564, %v120_v58   ;;  %vm731_vm6 = vcmp.eq.s32.totalorder %v459_v48, %v3988_v2 }
 0x197   :  { %vm730_vm7 = vcmp.eq.s32.totalorder %v456_v4, %v3988_v2  ;;  %v3070_v21 = vsel %vm731_vm6, 1.0, %v5447_v10  ;;  %v253_v4 = vld [vmem:[%s5425_s1 + $0x2d8] sm:$0xff] }
 0x198   :  { %v3069_v25 = vsel %vm730_vm7, 1.0, %v5447_v10 }
 0x199   :  { %v1328_v51 = vpop.permute.xlu1 %1327 }
 0x19a   :  { %v1753_v11 = vmul.f32 %v3068_v9, %v1328_v51  ;;  %v4708_v12 = vpop.f32.mrb[8].mxu0  ;;  %v1323_v13 = vpop.permute.xlu0 %1322  ;;  %1487 = vperm.xlu1 %3565, %v247_v7   ;;  %1482 = vperm.xlu0 %3564, %v246_v8   ;;  %v252_v7 = vld [vmem:[%s5425_s1 + $0x2d0] sm:$0xff] }
 0x19b   :  { %v1752_v14 = vmul.f32 %v3067_v52, %v1323_v13  ;;  %v4712_v15 = vpop.f32.mrb[9].mxu0 }
 0x19c   :  { %v4720_v18 = vpop.f32.mrb[10].mxu0 }
 0x19d   :  { %v1854_v19 = vpack.c.bf16 %v1753_v11, %v1752_v14  ;;  %v4724_v56 = vpop.f32.mrb[11].mxu0  ;;  %v1338_v22 = vpop.permute.xlu1 %1337 }
 0x19e   :  { %v1755_v24 = vmul.f32 %v3070_v21, %v1338_v22  ;;  %v1333_v26 = vpop.permute.xlu0 %1332  ;;  %1497 = vperm.xlu1 %3565, %v249_v16   ;;  %1492 = vperm.xlu0 %3564, %v248_v17   ;;  %v127_v22 = vld [vmem:[%s5424_s0 + $0x2e8] sm:$0xff] }
 0x19f   :  { %v1754_v28 = vmul.f32 %v3069_v25, %v1333_v26  ;;  %3439 = vmatprep.mubr.bf16.mxu0 %v1854_v19 }
 0x1a1   :  { %v1855_v29 = vpack.c.bf16 %v1755_v24, %v1754_v28  ;;  %v465_v60 = vpop.permute.xlu1 %464  ;;  %v126_v24 = vld [vmem:[%s5424_s0 + $0x2e0] sm:$0xff] }
 0x1a2   :  { %v4738_v30 = vpop.f32.mrb[12].mxu0  ;;  %v462_v31 = vpop.permute.xlu0 %461  ;;  %560 = vperm.xlu1 %3565, %v123_v27   ;;  %557 = vperm.xlu0 %3564, %v122_v55   ;;  %vm733_vm8 = vcmp.eq.s32.totalorder %v465_v60, %v3988_v2  ;;  %v129_v27 = vld [vmem:[%s5424_s0 + $0x2f8] sm:$0xff]  ;;  %v128_v55 = vld [vmem:[%s5424_s0 + $0x2f0] sm:$0xff] }
 0x1a3   :  { %v4740_v32 = vpop.f32.mrb[13].mxu0  ;;  %3440 = vmatmul.mubr.bf16.gmra.mrb[52].mxu0 %v1855_v29  ;;  %vm732_vm9 = vcmp.eq.s32.totalorder %v462_v31, %v3988_v2  ;;  %v3072_v49 = vsel %vm733_vm8, 1.0, %v5447_v10 }
 0x1a4   :  { %v4748_v35 = vpop.f32.mrb[14].mxu0  ;;  %v3071_v54 = vsel %vm732_vm9, 1.0, %v5447_v10 }
 0x1a5   :  { %v4752_v39 = vpop.f32.mrb[15].mxu0  ;;  %v471_v40 = vpop.permute.xlu1 %470 }
 0x1a6   :  { %v468_v45 = vpop.permute.xlu0 %467  ;;  %566 = vperm.xlu1 %3565, %v125_v34   ;;  %563 = vperm.xlu0 %3564, %v124_v59   ;;  %vm735_vm10 = vcmp.eq.s32.totalorder %v471_v40, %v3988_v2  ;;  %v255_v59 = vld [vmem:[%s5425_s1 + $0x2e8] sm:$0xff]  ;;  %v254_v40 = vld [vmem:[%s5425_s1 + $0x2e0] sm:$0xff] }
 0x1a7   :  { %vm734_vm11 = vcmp.eq.s32.totalorder %v468_v45, %v3988_v2  ;;  %v3074_v52 = vsel %vm735_vm10, 1.0, %v5447_v10 }
 0x1a8   :  { %v3073_v17 = vsel %vm734_vm11, 1.0, %v5447_v10 }
 0x1a9   :  { %v1348_v44 = vpop.permute.xlu1 %1347 }
 0x1aa   :  { %v1757_v50 = vmul.f32 %v3072_v49, %v1348_v44  ;;  %v4766_v53 = vpop.f32.mrb[16].mxu0  ;;  %v1343_v57 = vpop.permute.xlu0 %1342  ;;  %1507 = vperm.xlu1 %3565, %v251_v43   ;;  %1502 = vperm.xlu0 %3564, %v250_v46  }
 0x1ab   :  { %v1756_v58 = vmul.f32 %v3071_v54, %v1343_v57  ;;  %v4770_v48 = vpop.f32.mrb[17].mxu0 }
 0x1ac   :  { %v4778_v8 = vpop.f32.mrb[18].mxu0 }
 0x1ad   :  { %v1856_v9 = vpack.c.bf16 %v1757_v50, %v1756_v58  ;;  %v4782_v11 = vpop.f32.mrb[19].mxu0  ;;  %v1358_v13 = vpop.permute.xlu1 %1357 }
 0x1ae   :  { %v1759_v16 = vmul.f32 %v3074_v52, %v1358_v13  ;;  %v1353_v19 = vpop.permute.xlu0 %1352  ;;  %1517 = vperm.xlu1 %3565, %v253_v4   ;;  %1512 = vperm.xlu0 %3564, %v252_v7   ;;  %v257_v7 = vld [vmem:[%s5425_s1 + $0x2f8] sm:$0xff] }
 0x1af   :  { %v1758_v21 = vmul.f32 %v3073_v17, %v1353_v19  ;;  %3443 = vmatprep.mubr.bf16.mxu0 %v1856_v9  ;;  %v256_v9 = vld [vmem:[%s5425_s1 + $0x2f0] sm:$0xff] }
 0x1b1   :  { %v1857_v25 = vpack.c.bf16 %v1759_v16, %v1758_v21  ;;  %v477_v26 = vpop.permute.xlu1 %476 }
 0x1b2   :  { %v474_v28 = vpop.permute.xlu0 %473  ;;  %572 = vperm.xlu1 %3565, %v127_v22   ;;  %569 = vperm.xlu0 %3564, %v126_v24   ;;  %vm737_vm12 = vcmp.eq.s32.totalorder %v477_v26, %v3988_v2  ;;  %v131_v24 = vld [vmem:[%s5424_s0 + $0x308] sm:$0xff] }
 0x1b3   :  { %3444 = vmatmul.mubr.bf16.gmra.mrb[56].mxu0 %v1857_v25  ;;  %vm736_vm13 = vcmp.eq.s32.totalorder %v474_v28, %v3988_v2  ;;  %v3076_v49 = vsel %vm737_vm12, 1.0, %v5447_v10  ;;  %v130_v25 = vld [vmem:[%s5424_s0 + $0x300] sm:$0xff] }
 0x1b4   :  { %v3075_v57 = vsel %vm736_vm13, 1.0, %v5447_v10 }
 0x1b5   :  { %v483_v29 = vpop.permute.xlu1 %482 }
 0x1b6   :  { %v4803_v60 = vpop.f32.mrb[20].mxu0  ;;  %v480_v31 = vpop.permute.xlu0 %479  ;;  %578 = vperm.xlu1 %3565, %v129_v27   ;;  %575 = vperm.xlu0 %3564, %v128_v55   ;;  %vm739_vm14 = vcmp.eq.s32.totalorder %v483_v29, %v3988_v2  ;;  %v133_v55 = vld [vmem:[%s5424_s0 + $0x318] sm:$0xff]  ;;  %v132_v29 = vld [vmem:[%s5424_s0 + $0x310] sm:$0xff] }
 0x1b7   :  { %v4806_v34 = vpop.f32.mrb[21].mxu0  ;;  %vm738_vm15 = vcmp.eq.s32.totalorder %v480_v31, %v3988_v2  ;;  %v3078_v13 = vsel %vm739_vm14, 1.0, %v5447_v10 }
 0x1b8   :  { %v4814_v45 = vpop.f32.mrb[22].mxu0  ;;  %v3077_v19 = vsel %vm738_vm15, 1.0, %v5447_v10 }
 0x1b9   :  { %v4818_v46 = vpop.f32.mrb[23].mxu0  ;;  %v1368_v44 = vpop.permute.xlu1 %1367 }
 0x1ba   :  { %v1761_v54 = vmul.f32 %v3076_v49, %v1368_v44  ;;  %v1363_v58 = vpop.permute.xlu0 %1362  ;;  %1527 = vperm.xlu1 %3565, %v255_v59   ;;  %1522 = vperm.xlu0 %3564, %v254_v40   ;;  %v259_v40 = vld [vmem:[%s5425_s1 + $0x308] sm:$0xff]  ;;  %v258_v49 = vld [vmem:[%s5425_s1 + $0x300] sm:$0xff] }
 0x1bb   :  { %v1760_v4 = vmul.f32 %v3075_v57, %v1363_v58 }
 0x1bd   :  { %v1858_v52 = vpack.c.bf16 %v1761_v54, %v1760_v4  ;;  %v1378_v16 = vpop.permute.xlu1 %1377 }
 0x1be   :  { %v1763_v17 = vmul.f32 %v3078_v13, %v1378_v16  ;;  %v1373_v21 = vpop.permute.xlu0 %1372  ;;  %1537 = vperm.xlu1 %3565, %v257_v7   ;;  %1532 = vperm.xlu0 %3564, %v256_v9   ;;  %v261_v9 = vld [vmem:[%s5425_s1 + $0x318] sm:$0xff] }
 0x1bf   :  { %v1762_v22 = vmul.f32 %v3077_v19, %v1373_v21  ;;  %3447 = vmatprep.mubr.bf16.mxu0 %v1858_v52  ;;  %v260_v52 = vld [vmem:[%s5425_s1 + $0x310] sm:$0xff] }
 0x1c1   :  { %v1859_v26 = vpack.c.bf16 %v1763_v17, %v1762_v22  ;;  %v489_v28 = vpop.permute.xlu1 %488 }
 0x1c2   :  { %v486_v27 = vpop.permute.xlu0 %485  ;;  %584 = vperm.xlu1 %3565, %v131_v24   ;;  %581 = vperm.xlu0 %3564, %v130_v25   ;;  %vm741_vm0 = vcmp.eq.s32.totalorder %v489_v28, %v3988_v2  ;;  %v135_v28 = vld [vmem:[%s5424_s0 + $0x328] sm:$0xff] }
 0x1c3   :  { %3448 = vmatmul.mubr.bf16.gmra.mrb[60].mxu0 %v1859_v26  ;;  %vm740_vm1 = vcmp.eq.s32.totalorder %v486_v27, %v3988_v2  ;;  %v3080_v44 = vsel %vm741_vm0, 1.0, %v5447_v10  ;;  %v134_v27 = vld [vmem:[%s5424_s0 + $0x320] sm:$0xff] }
 0x1c4   :  { %v3079_v58 = vsel %vm740_vm1, 1.0, %v5447_v10 }
 0x1c5   :  { %v495_v31 = vpop.permute.xlu1 %494 }
 0x1c6   :  { %v492_v59 = vpop.permute.xlu0 %491  ;;  %590 = vperm.xlu1 %3565, %v133_v55   ;;  %587 = vperm.xlu0 %3564, %v132_v29   ;;  %vm743_vm2 = vcmp.eq.s32.totalorder %v495_v31, %v3988_v2 }
 0x1c7   :  { %vm742_vm3 = vcmp.eq.s32.totalorder %v492_v59, %v3988_v2  ;;  %v3082_v16 = vsel %vm743_vm2, 1.0, %v5447_v10 }
 0x1c8   :  { %v3081_v22 = vsel %vm742_vm3, 1.0, %v5447_v10  ;;  %vm3594_vm3 = vmmov 0  }
 0x1c9   :  { %v1388_v54 = vpop.permute.xlu1 %1387  ;;  %3519 = vmatprep.mubr.msk.bf16.mxu1 %vm3594_vm3, %v5447_v10 }
 0x1ca   :  { %v1765_v57 = vmul.f32 %v3080_v44, %v1388_v54  ;;  %v1383_v4 = vpop.permute.xlu0 %1382  ;;  %1547 = vperm.xlu1 %3565, %v259_v40   ;;  %1542 = vperm.xlu0 %3564, %v258_v49   ;;  %v137_v54 = vld [vmem:[%s5424_s0 + $0x338] sm:$0xff] }
 0x1cb   :  { %v1764_v7 = vmul.f32 %v3079_v58, %v1383_v4 }
 0x1cd   :  { %v1860_v13 = vpack.c.bf16 %v1765_v57, %v1764_v7  ;;  %v1398_v17 = vpop.permute.xlu1 %1397  ;;  %v136_v57 = vld [vmem:[%s5424_s0 + $0x330] sm:$0xff] }
 0x1ce   :  { %v1767_v19 = vmul.f32 %v3082_v16, %v1398_v17  ;;  %v4865_v21 = vpop.f32.mrb[24].mxu0  ;;  %v1393_v24 = vpop.permute.xlu0 %1392  ;;  %1557 = vperm.xlu1 %3565, %v261_v9   ;;  %1552 = vperm.xlu0 %3564, %v260_v52   ;;  %v263_v52 = vld [vmem:[%s5425_s1 + $0x328] sm:$0xff] }
 0x1cf   :  { %v1766_v25 = vmul.f32 %v3081_v22, %v1393_v24  ;;  %v4868_v26 = vpop.f32.mrb[25].mxu0  ;;  %3451 = vmatprep.mubr.bf16.mxu0 %v1860_v13  ;;  %v262_v13 = vld [vmem:[%s5425_s1 + $0x320] sm:$0xff] }
 0x1d0   :  { %v4876_v55 = vpop.f32.mrb[26].mxu0 }
 0x1d1   :  { %v1861_v29 = vpack.c.bf16 %v1767_v19, %v1766_v25  ;;  %v4880_v59 = vpop.f32.mrb[27].mxu0  ;;  %v501_v40 = vpop.permute.xlu1 %500 }
 0x1d2   :  { %v498_v44 = vpop.permute.xlu0 %497  ;;  %596 = vperm.xlu1 %3565, %v135_v28   ;;  %593 = vperm.xlu0 %3564, %v134_v27   ;;  %vm745_vm4 = vcmp.eq.s32.totalorder %v501_v40, %v3988_v2 }
 0x1d3   :  { %3452 = vmatmul.mubr.bf16.gmra.mrb[64].mxu0 %v1861_v29  ;;  %vm744_vm5 = vcmp.eq.s32.totalorder %v498_v44, %v3988_v2  ;;  %v3084_v22 = vsel %vm745_vm4, 1.0, %v5447_v10  ;;  %v265_v44 = vld [vmem:[%s5425_s1 + $0x338] sm:$0xff] }
 0x1d4   :  { %v3083_v27 = vsel %vm744_vm5, 1.0, %v5447_v10 }
 0x1d5   :  { %v507_v58 = vpop.permute.xlu1 %506 }
 0x1d6   :  { %v4891_v4 = vpop.f32.mrb[0].mxu1  ;;  %v504_v7 = vpop.permute.xlu0 %503  ;;  %602 = vperm.xlu1 %3565, %v137_v54   ;;  %599 = vperm.xlu0 %3564, %v136_v57   ;;  %vm747_vm6 = vcmp.eq.s32.totalorder %v507_v58, %v3988_v2  ;;  %v264_v54 = vld [vmem:[%s5425_s1 + $0x330] sm:$0xff] }
 0x1d7   :  { %5463 = vst [vmem:[#allocation5_spill] sm:$0xff] %v4891_v4  ;;  %v4894_v9 = vpop.f32.mrb[1].mxu1  ;;  %vm746_vm7 = vcmp.eq.s32.totalorder %v504_v7, %v3988_v2  ;;  %v3086_v58 = vsel %vm747_vm6, 1.0, %v5447_v10 }
 0x1d8   :  { %5464 = vst [vmem:[#allocation6_spill] sm:$0xff] %v4894_v9  ;;  %v4902_v16 = vpop.f32.mrb[2].mxu1  ;;  %v3085_v17 = vsel %vm746_vm7, 1.0, %v5447_v10 }
 0x1d9   :  { %5465 = vst [vmem:[#allocation7_spill] sm:$0xff] %v4902_v16  ;;  %v4906_v19 = vpop.f32.mrb[3].mxu1  ;;  %v1408_v24 = vpop.permute.xlu1 %1407 }
 0x1da   :  { %5466 = vst [vmem:[#allocation8_spill] sm:$0xff] %v4906_v19  ;;  %v1769_v28 = vmul.f32 %v3084_v22, %v1408_v24  ;;  %v1403_v29 = vpop.permute.xlu0 %1402  ;;  %1567 = vperm.xlu1 %3565, %v263_v52   ;;  %1562 = vperm.xlu0 %3564, %v262_v13   ;;  %v139_v13 = vld [vmem:[%s5424_s0 + $0x348] sm:$0xff] }
 0x1db   :  { %v1768_v40 = vmul.f32 %v3083_v27, %v1403_v29  ;;  %v138_v27 = vld [vmem:[%s5424_s0 + $0x340] sm:$0xff] }
 0x1dd   :  { %v1862_v57 = vpack.c.bf16 %v1769_v28, %v1768_v40  ;;  %v1418_v22 = vpop.permute.xlu1 %1417 }
 0x1de   :  { %v1771_v24 = vmul.f32 %v3086_v58, %v1418_v22  ;;  %v1413_v52 = vpop.permute.xlu0 %1412  ;;  %1577 = vperm.xlu1 %3565, %v265_v44   ;;  %1572 = vperm.xlu0 %3564, %v264_v54   ;;  %v141_v44 = vld [vmem:[%s5424_s0 + $0x358] sm:$0xff]  ;;  %v267_v58 = vld [vmem:[%s5425_s1 + $0x348] sm:$0xff]  ;;  %v266_v22 = vld [vmem:[%s5425_s1 + $0x340] sm:$0xff] }
 0x1df   :  { %v1770_v7 = vmul.f32 %v3085_v17, %v1413_v52  ;;  %3455 = vmatprep.mubr.bf16.mxu0 %v1862_v57  ;;  %v140_v17 = vld [vmem:[%s5424_s0 + $0x350] sm:$0xff] }
 0x1e1   :  { %v1863_v28 = vpack.c.bf16 %v1771_v24, %v1770_v7  ;;  %v513_v29 = vpop.permute.xlu1 %512 }
 0x1e2   :  { %v510_v40 = vpop.permute.xlu0 %509  ;;  %608 = vperm.xlu1 %3565, %v139_v13   ;;  %605 = vperm.xlu0 %3564, %v138_v27   ;;  %vm749_vm8 = vcmp.eq.s32.totalorder %v513_v29, %v3988_v2  ;;  %v2765_v29 = vld [vmem:[%s5427_s3] sm:$0xff] }
 0x1e3   :  { %3456 = vmatmul.mubr.bf16.gmra.mrb[68].mxu0 %v1863_v28  ;;  %vm748_vm9 = vcmp.eq.s32.totalorder %v510_v40, %v3988_v2  ;;  %v3088_v24 = vsel %vm749_vm8, 1.0, %v5447_v10  ;;  %v4948_v28 = vld [vmem:[%s5428_s4] sm:$0xff] }
 0x1e4   :  { %v3087_v13 = vsel %vm748_vm9, 1.0, %v5447_v10  ;;  %vm2638_vm0 = vcmp.gt.f32.partialorder %v4948_v28, 0.0 }
 0x1e5   :  { %v519_v54 = vpop.permute.xlu1 %518 }
 0x1e6   :  { %v516_v57 = vpop.permute.xlu0 %515  ;;  %614 = vperm.xlu1 %3565, %v141_v44   ;;  %611 = vperm.xlu0 %3564, %v140_v17   ;;  %vm751_vm10 = vcmp.eq.s32.totalorder %v519_v54, %v3988_v2  ;;  %v269_v44 = vld [vmem:[%s5425_s1 + $0x358] sm:$0xff]  ;;  %v268_v17 = vld [vmem:[%s5425_s1 + $0x350] sm:$0xff] }
 0x1e7   :  { %vm750_vm11 = vcmp.eq.s32.totalorder %v516_v57, %v3988_v2 }
 0x1e8   :  { %v3089_v57 = vsel %vm750_vm11, 1.0, %v5447_v10 }
 0x1e9   :  { %v1428_v52 = vpop.permute.xlu1 %1427 }
 0x1ea   :  { %v1773_v7 = vmul.f32 %v3088_v24, %v1428_v52  ;;  %v1423_v27 = vpop.permute.xlu0 %1422  ;;  %1587 = vperm.xlu1 %3565, %v267_v58   ;;  %1582 = vperm.xlu0 %3564, %v266_v22   ;;  %v3090_v58 = vsel %vm751_vm10, 1.0, %v5447_v10  ;;  %v2766_v24 = vadd.f32 %v2765_v29, %v4948_v28  ;;  %v142_v29 = vld [vmem:[%s5424_s0 + $0x360] sm:$0xff] }
 0x1eb   :  { %v1772_v40 = vmul.f32 %v3087_v13, %v1423_v27 }
 0x1ed   :  { %v1864_v54 = vpack.c.bf16 %v1773_v7, %v1772_v40  ;;  %v1438_v22 = vpop.permute.xlu1 %1437  ;;  %v143_v7 = vld [vmem:[%s5424_s0 + $0x368] sm:$0xff] }
 0x1ee   :  { %v1775_v52 = vmul.f32 %v3090_v58, %v1438_v22  ;;  %v4962_v25 = vpop.f32.mrb[28].mxu0  ;;  %v1433_v13 = vpop.permute.xlu0 %1432  ;;  %1597 = vperm.xlu1 %3565, %v269_v44   ;;  %1592 = vperm.xlu0 %3564, %v268_v17  }
 0x1ef   :  { %v1774_v27 = vmul.f32 %v3089_v57, %v1433_v13  ;;  %v4965_v36 = vpop.f32.mrb[29].mxu0  ;;  %3459 = vmatprep.mubr.bf16.mxu0 %v1864_v54  ;;  %v2767_v57 = vmax.f32 %v2766_v24, 1.0 }
 0x1f0   :  { %v4973_v40 = vpop.f32.mrb[30].mxu0 }
 0x1f1   :  { %v1865_v58 = vpack.c.bf16 %v1775_v52, %v1774_v27  ;;  %v4977_v44 = vpop.f32.mrb[31].mxu0  ;;  %v525_v17 = vpop.permute.xlu1 %524  ;;  %v144_v52 = vld [vmem:[%s5424_s0 + $0x370] sm:$0xff]  ;;  %3566 = vrcp.f32 %v2767_v57 }
 0x1f2   :  { %v522_v13 = vpop.permute.xlu0 %521  ;;  %620 = vperm.xlu1 %3565, %v143_v7   ;;  %617 = vperm.xlu0 %3564, %v142_v29   ;;  %vm753_vm12 = vcmp.eq.s32.totalorder %v525_v17, %v3988_v2  ;;  %v271_v29 = vld [vmem:[%s5425_s1 + $0x368] sm:$0xff]  ;;  %v273_v17 = vld [vmem:[%s5425_s1 + $0x378] sm:$0xff] }
 0x1f3   :  { %3460 = vmatmul.mubr.bf16.gmra.mrb[72].mxu0 %v1865_v58  ;;  %vm752_vm13 = vcmp.eq.s32.totalorder %v522_v13, %v3988_v2  ;;  %v270_v58 = vld [vmem:[%s5425_s1 + $0x360] sm:$0xff] }
 0x1f4   :  { %v3091_v31 = vsel %vm752_vm13, 1.0, %v5447_v10 }
 0x1f5   :  { %v531_v27 = vpop.permute.xlu1 %530 }
 0x1f6   :  { %v4988_v24 = vpop.f32.mrb[4].mxu1  ;;  %v528_v22 = vpop.permute.xlu0 %527  ;;  %626 = vperm.xlu1 %3565, %v145_v42   ;;  %623 = vperm.xlu0 %3564, %v144_v52   ;;  %v3092_v42 = vsel %vm753_vm12, 1.0, %v5447_v10  ;;  %vm755_vm14 = vcmp.eq.s32.totalorder %v531_v27, %v3988_v2  ;;  %v272_v27 = vld [vmem:[%s5425_s1 + $0x370] sm:$0xff] }
 0x1f7   :  { %5467 = vst [vmem:[#allocation9_spill] sm:$0xff] %v4988_v24  ;;  %v4991_v7 = vpop.f32.mrb[5].mxu1  ;;  %vm754_vm15 = vcmp.eq.s32.totalorder %v528_v22, %v3988_v2  ;;  %v3152_v22 = vsel %vm2638_vm0, 1.0, %v5447_v10 }
 0x1f8   :  { %5468 = vst [vmem:[#allocation10_spill] sm:$0xff] %v4991_v7  ;;  %v4999_v57 = vpop.f32.mrb[6].mxu1 }
 0x1f9   :  { %5469 = vst [vmem:[#allocation11_spill] sm:$0xff] %v4999_v57  ;;  %v5003_v54 = vpop.f32.mrb[7].mxu1  ;;  %v1448_v13 = vpop.permute.xlu1 %1447 }
 0x1fa   :  { %5470 = vst [vmem:[#allocation12_spill] sm:$0xff] %v5003_v54  ;;  %v1777_v20 = vmul.f32 %v3092_v42, %v1448_v13  ;;  %v1443_v23 = vpop.permute.xlu0 %1442  ;;  %1607 = vperm.xlu1 %3565, %v271_v29   ;;  %1602 = vperm.xlu0 %3564, %v270_v58   ;;  %v3094_v42 = vsel %vm755_vm14, 1.0, %v5447_v10  ;;  %v3093_v29 = vsel %vm754_vm15, 1.0, %v5447_v10 }
 0x1fb   :  { %v1776_v49 = vmul.f32 %v3091_v31, %v1443_v23  ;;  %v3567_v23 = vpop.eup %3566 }
 0x1fd   :  { %v1866_v52 = vpack.c.bf16 %v1777_v20, %v1776_v49  ;;  %v1458_v13 = vpop.permute.xlu1 %1457 }
 0x1fe   :  { %v1779_v62 = vmul.f32 %v3094_v42, %v1458_v13  ;;  %v1453_v58 = vpop.permute.xlu0 %1452  ;;  %1617 = vperm.xlu1 %3565, %v273_v17   ;;  %1612 = vperm.xlu0 %3564, %v272_v27  }
 0x1ff   :  { %v1778_v31 = vmul.f32 %v3093_v29, %v1453_v58  ;;  %3463 = vmatprep.mubr.bf16.mxu0 %v1866_v52 }
 0x201   :  { %v1867_v43 = vpack.c.bf16 %v1779_v62, %v1778_v31  ;;  %v537_v3 = vpop.permute.xlu1 %536 }
 0x202   :  { %v534_v50 = vpop.permute.xlu0 %533  ;;  %2931 = vperm.xlu1 %3565, %v3567_v23   ;;  %2650 = vperm.xlu0 %3564, %v3152_v22   ;;  %vm757_vm1 = vcmp.eq.s32.totalorder %v537_v3, %v3988_v2 }
 0x203   :  { %3464 = vmatmul.mubr.bf16.gmra.mrb[76].mxu0 %v1867_v43  ;;  %vm756_vm2 = vcmp.eq.s32.totalorder %v534_v50, %v3988_v2  ;;  %v3096_v28 = vsel %vm757_vm1, 1.0, %v5447_v10 }
 0x204   :  { %v3095_v52 = vsel %vm756_vm2, 1.0, %v5447_v10 }
 0x205   :  { %v543_v20 = vpop.permute.xlu1 %542 }
 0x206   :  { %v540_v49 = vpop.permute.xlu0 %539  ;;  %vm759_vm4 = vcmp.eq.s32.totalorder %v543_v20, %v3988_v2 }
 0x207   :  { %vm758_vm5 = vcmp.eq.s32.totalorder %v540_v49, %v3988_v2  ;;  %v3098_v42 = vsel %vm759_vm4, 1.0, %v5447_v10 }
 0x208   :  { %v3097_v58 = vsel %vm758_vm5, 1.0, %v5447_v10 }
 0x209   :  { %v1468_v17 = vpop.permute.xlu1 %1467 }
 0x20a   :  { %v1781_v62 = vmul.f32 %v3096_v28, %v1468_v17  ;;  %v1463_v27 = vpop.permute.xlu0 %1462 }
 0x20b   :  { %v1780_v43 = vmul.f32 %v3095_v52, %v1463_v27 }
 0x20d   :  { %v1868_v3 = vpack.c.bf16 %v1781_v62, %v1780_v43  ;;  %v1478_v50 = vpop.permute.xlu1 %1477 }
 0x20e   :  { %v1783_v13 = vmul.f32 %v3098_v42, %v1478_v50  ;;  %v5030_v29 = vpop.f32.mrb[32].mxu0  ;;  %v1473_v23 = vpop.permute.xlu0 %1472 }
 0x20f   :  { %v1782_v31 = vmul.f32 %v3097_v58, %v1473_v23  ;;  %v5033_v22 = vpop.f32.mrb[33].mxu0  ;;  %3467 = vmatprep.mubr.bf16.mxu0 %v1868_v3 }
 0x210   :  { %v5035_v20 = vpop.f32.mrb[34].mxu0 }
 0x211   :  { %v1869_v28 = vpack.c.bf16 %v1783_v13, %v1782_v31  ;;  %v5039_v17 = vpop.f32.mrb[35].mxu0  ;;  %v549_v62 = vpop.permute.xlu1 %548 }
 0x212   :  { %v546_v27 = vpop.permute.xlu0 %545  ;;  %vm761_vm6 = vcmp.eq.s32.totalorder %v549_v62, %v3988_v2 }
 0x213   :  { %3468 = vmatmul.mubr.bf16.gmra.mrb[80].mxu0 %v1869_v28  ;;  %vm760_vm7 = vcmp.eq.s32.totalorder %v546_v27, %v3988_v2  ;;  %v3100_v31 = vsel %vm761_vm6, 1.0, %v5447_v10 }
 0x214   :  { %v3099_v27 = vsel %vm760_vm7, 1.0, %v5447_v10 }
 0x215   :  { %v555_v43 = vpop.permute.xlu1 %554 }
 0x216   :  { %v5044_v42 = vpop.f32.mrb[8].mxu1  ;;  %v552_v3 = vpop.permute.xlu0 %551  ;;  %vm763_vm8 = vcmp.eq.s32.totalorder %v555_v43, %v3988_v2 }
 0x217   :  { %5471 = vst [vmem:[#allocation13_spill] sm:$0xff] %v5044_v42  ;;  %v5047_v50 = vpop.f32.mrb[9].mxu1  ;;  %vm762_vm9 = vcmp.eq.s32.totalorder %v552_v3, %v3988_v2  ;;  %v3102_v58 = vsel %vm763_vm8, 1.0, %v5447_v10 }
 0x218   :  { %5472 = vst [vmem:[#allocation14_spill] sm:$0xff] %v5047_v50  ;;  %v5049_v13 = vpop.f32.mrb[10].mxu1  ;;  %v3101_v14 = vsel %vm762_vm9, 1.0, %v5447_v10 }
 0x219   :  { %5473 = vst [vmem:[#allocation15_spill] sm:$0xff] %v5049_v13  ;;  %v5053_v23 = vpop.f32.mrb[11].mxu1  ;;  %v1488_v28 = vpop.permute.xlu1 %1487 }
 0x21a   :  { %5474 = vst [vmem:[#allocation16_spill] sm:$0xff] %v5053_v23  ;;  %v1785_v49 = vmul.f32 %v3100_v31, %v1488_v28  ;;  %v1483_v52 = vpop.permute.xlu0 %1482 }
 0x21b   :  { %v1784_v38 = vmul.f32 %v3099_v27, %v1483_v52 }
 0x21d   :  { %v1870_v51 = vpack.c.bf16 %v1785_v49, %v1784_v38  ;;  %v1498_v41 = vpop.permute.xlu1 %1497 }
 0x21e   :  { %v1787_v61 = vmul.f32 %v3102_v58, %v1498_v41  ;;  %v1493_v42 = vpop.permute.xlu0 %1492 }
 0x21f   :  { %v1786_v13 = vmul.f32 %v3101_v14, %v1493_v42  ;;  %3471 = vmatprep.mubr.bf16.mxu0 %v1870_v51 }
 0x221   :  { %v1871_v43 = vpack.c.bf16 %v1787_v61, %v1786_v13  ;;  %v561_v24 = vpop.permute.xlu1 %560 }
 0x222   :  { %v558_v62 = vpop.permute.xlu0 %557  ;;  %vm765_vm10 = vcmp.eq.s32.totalorder %v561_v24, %v3988_v2 }
 0x223   :  { %3472 = vmatmul.mubr.bf16.gmra.mrb[84].mxu0 %v1871_v43  ;;  %vm764_vm11 = vcmp.eq.s32.totalorder %v558_v62, %v3988_v2  ;;  %v3104_v38 = vsel %vm765_vm10, 1.0, %v5447_v10 }
 0x224   :  { %v3103_v52 = vsel %vm764_vm11, 1.0, %v5447_v10 }
 0x225   :  { %v567_v31 = vpop.permute.xlu1 %566 }
 0x226   :  { %v564_v28 = vpop.permute.xlu0 %563  ;;  %vm767_vm12 = vcmp.eq.s32.totalorder %v567_v31, %v3988_v2 }
 0x227   :  { %vm766_vm13 = vcmp.eq.s32.totalorder %v564_v28, %v3988_v2  ;;  %v3106_v42 = vsel %vm767_vm12, 1.0, %v5447_v10 }
 0x228   :  { %v3105_v58 = vsel %vm766_vm13, 1.0, %v5447_v10 }
 0x229   :  { %v1508_v49 = vpop.permute.xlu1 %1507 }
 0x22a   :  { %v1789_v41 = vmul.f32 %v3104_v38, %v1508_v49  ;;  %v1503_v14 = vpop.permute.xlu0 %1502 }
 0x22b   :  { %v1788_v61 = vmul.f32 %v3103_v52, %v1503_v14 }
 0x22d   :  { %v1872_v51 = vpack.c.bf16 %v1789_v41, %v1788_v61  ;;  %v1518_v3 = vpop.permute.xlu1 %1517 }
 0x22e   :  { %v1791_v24 = vmul.f32 %v3106_v42, %v1518_v3  ;;  %v5070_v13 = vpop.f32.mrb[36].mxu0  ;;  %v1513_v62 = vpop.permute.xlu0 %1512 }
 0x22f   :  { %5475 = vst [vmem:[#allocation17_spill] sm:$0xff] %v5070_v13  ;;  %v1790_v27 = vmul.f32 %v3105_v58, %v1513_v62  ;;  %v5073_v43 = vpop.f32.mrb[37].mxu0  ;;  %3475 = vmatprep.mubr.bf16.mxu0 %v1872_v51 }
 0x230   :  { %v5075_v31 = vpop.f32.mrb[38].mxu0 }
 0x231   :  { %5476 = vst [vmem:[#allocation18_spill] sm:$0xff] %v5075_v31  ;;  %v1873_v38 = vpack.c.bf16 %v1791_v24, %v1790_v27  ;;  %v5079_v49 = vpop.f32.mrb[39].mxu0  ;;  %v573_v41 = vpop.permute.xlu1 %572 }
 0x232   :  { %v570_v14 = vpop.permute.xlu0 %569  ;;  %vm769_vm14 = vcmp.eq.s32.totalorder %v573_v41, %v3988_v2 }
 0x233   :  { %3476 = vmatmul.mubr.bf16.gmra.mrb[88].mxu0 %v1873_v38  ;;  %vm768_vm15 = vcmp.eq.s32.totalorder %v570_v14, %v3988_v2  ;;  %v3108_v27 = vsel %vm769_vm14, 1.0, %v5447_v10 }
 0x234   :  { %v3107_v14 = vsel %vm768_vm15, 1.0, %v5447_v10 }
 0x235   :  { %v579_v61 = vpop.permute.xlu1 %578 }
 0x236   :  { %v5084_v42 = vpop.f32.mrb[12].mxu1  ;;  %v576_v51 = vpop.permute.xlu0 %575  ;;  %vm771_vm0 = vcmp.eq.s32.totalorder %v579_v61, %v3988_v2 }
 0x237   :  { %5477 = vst [vmem:[#allocation19_spill] sm:$0xff] %v5084_v42  ;;  %v5087_v3 = vpop.f32.mrb[13].mxu1  ;;  %vm770_vm1 = vcmp.eq.s32.totalorder %v576_v51, %v3988_v2  ;;  %v3110_v58 = vsel %vm771_vm0, 1.0, %v5447_v10 }
 0x238   :  { %5478 = vst [vmem:[#allocation20_spill] sm:$0xff] %v5087_v3  ;;  %v5089_v24 = vpop.f32.mrb[14].mxu1  ;;  %v3109_v57 = vsel %vm770_vm1, 1.0, %v5447_v10 }
 0x239   :  { %5479 = vst [vmem:[#allocation21_spill] sm:$0xff] %v5089_v24  ;;  %v5093_v62 = vpop.f32.mrb[15].mxu1  ;;  %v1528_v38 = vpop.permute.xlu1 %1527 }
 0x23a   :  { %5480 = vst [vmem:[#allocation22_spill] sm:$0xff] %v5093_v62  ;;  %v1793_v28 = vmul.f32 %v3108_v27, %v1528_v38  ;;  %v1523_v52 = vpop.permute.xlu0 %1522  ;;  %v3143_v27 = vld [vmem:[%s5431_s7] ss:$0 sm:$0xff] }
 0x23b   :  { %v1792_v50 = vmul.f32 %v3107_v14, %v1523_v52 }
 0x23d   :  { %v1874_v23 = vpack.c.bf16 %v1793_v28, %v1792_v50  ;;  %v1538_v42 = vpop.permute.xlu1 %1537 }
 0x23e   :  { %v1795_v24 = vmul.f32 %v3110_v58, %v1538_v42  ;;  %v1533_v7 = vpop.permute.xlu0 %1532  ;;  %v3259_v54 = vpop.f32.mrb[16].mxu1 }
 0x23f   :  { %v1794_v61 = vmul.f32 %v3109_v57, %v1533_v7  ;;  %3479 = vmatprep.mubr.bf16.mxu0 %v1874_v23  ;;  %v3260_v38 = vpop.f32.mrb[17].mxu1 }
 0x240   :  { %v3261_v41 = vadd.f32 %v3260_v38, %v3259_v54  ;;  %v3262_v3 = vpop.f32.mrb[18].mxu1  ;;  %v5485_v38 = vmov 0.0  }
 0x241   :  { %v1875_v51 = vpack.c.bf16 %v1795_v24, %v1794_v61  ;;  %v585_v52 = vpop.permute.xlu1 %584  ;;  %v3263_v50 = vpop.f32.mrb[19].mxu1 }
 0x242   :  { %v582_v28 = vpop.permute.xlu0 %581  ;;  %v2563_v14 = vadd.f32 %v3261_v41, %v3143_v27  ;;  %v3264_v62 = vadd.f32 %v3263_v50, %v3262_v3  ;;  %vm773_vm2 = vcmp.eq.s32.totalorder %v585_v52, %v3988_v2 }
 0x243   :  { %3480 = vmatmul.mubr.bf16.gmra.mrb[92].mxu0 %v1875_v51  ;;  %vm772_vm4 = vcmp.eq.s32.totalorder %v582_v28, %v3988_v2  ;;  %v3112_v50 = vsel %vm773_vm2, 1.0, %v5485_v38 }
 0x244   :  { %v2566_v42 = vadd.f32 %v3264_v62, %v3143_v27 }
 0x245   :  { %v591_v58 = vpop.permute.xlu1 %590 }
 0x246   :  { %v2719_v10 = vpack.c.bf16 %v2566_v42, %v2563_v14  ;;  %v5106_v4 = vpop.f32.mrb[40].mxu0  ;;  %v3265_v7 = vpop.f32.mrb[20].mxu1  ;;  %v3111_v14 = vsel %vm772_vm4, 1.0, %v5485_v38  ;;  %vm775_vm5 = vcmp.eq.s32.totalorder %v591_v58, %v3988_v2 }
 0x247   :  { %5481 = vst [vmem:[#allocation23_spill] sm:$0xff] %v5106_v4  ;;  %v588_v57 = vpop.permute.xlu0 %587  ;;  %v5110_v54 = vpop.f32.mrb[41].mxu0  ;;  %v3114_v19 = vsel %vm775_vm5, 1.0, %v5485_v38 }
 0x248   :  { %5482 = vst [vmem:[#allocation24_spill] sm:$0xff] %v5110_v54  ;;  %v3266_v23 = vpop.f32.mrb[21].mxu1  ;;  %v5112_v24 = vpop.f32.mrb[42].mxu0  ;;  %3516 = vmatpush3.bf16.msra.mxu1 %v2719_v10  ;;  %vm774_vm6 = vcmp.eq.s32.totalorder %v588_v57, %v3988_v2 }
 0x249   :  { %5483 = vst [vmem:[#allocation25_spill] sm:$0xff] %v5112_v24  ;;  %v3267_v41 = vadd.f32 %v3266_v23, %v3265_v7  ;;  %v3268_v62 = vpop.f32.mrb[22].mxu1  ;;  %v5116_v61 = vpop.f32.mrb[43].mxu0  ;;  %3517 = vmatprep.subr.bf16.mxu1 %v5485_v38  ;;  %v3113_v54 = vsel %vm774_vm6, 1.0, %v5485_v38 }
 0x24a   :  { %5484 = vst [vmem:[#allocation26_spill] sm:$0xff] %v5116_v61  ;;  %v3269_v52 = vpop.f32.mrb[23].mxu1  ;;  %v1548_v28 = vpop.permute.xlu1 %1547 }
 0x24b   :  { %v2571_v10 = vadd.f32 %v3267_v41, %v3143_v27  ;;  %v3270_v42 = vadd.f32 %v3269_v52, %v3268_v62  ;;  %v1797_v7 = vmul.f32 %v3112_v50, %v1548_v28  ;;  %v1543_v23 = vpop.permute.xlu0 %1542  ;;  %v5486_v41 = vpack.c.bf16 %v4782_v11, %v4770_v48 }
 0x24c   :  { %v1796_v3 = vmul.f32 %v3111_v14, %v1543_v23 }
 0x24d   :  { %v2574_v16 = vadd.f32 %v3270_v42, %v3143_v27 }
 0x24e   :  { %v1876_v9 = vpack.c.bf16 %v1797_v7, %v1796_v3  ;;  %v1558_v51 = vpop.permute.xlu1 %1557 }
 0x24f   :  { %v2720_v4 = vpack.c.bf16 %v2574_v16, %v2571_v10  ;;  %v1799_v24 = vmul.f32 %v3114_v19, %v1558_v51  ;;  %v1553_v61 = vpop.permute.xlu0 %1552 }
 0x250   :  { %v1798_v13 = vmul.f32 %v3113_v54, %v1553_v61  ;;  %3483 = vmatprep.mubr.bf16.mxu0 %v1876_v9 }
 0x251   :  { %3518 = vmatpush3.bf16.msra.mxu1 %v2720_v4 }
 0x252   :  { %v1877_v58 = vpack.c.bf16 %v1799_v24, %v1798_v13  ;;  %3274 = vmatprep.subr.bf16.mxu1 %v5486_v41  ;;  %v597_v57 = vpop.permute.xlu1 %596 }
 0x253   :  { %v594_v62 = vpop.permute.xlu0 %593  ;;  %vm777_vm7 = vcmp.eq.s32.totalorder %v597_v57, %v3988_v2 }
 0x254   :  { %3484 = vmatmul.mubr.bf16.gmra.mrb[96].mxu0 %v1877_v58  ;;  %vm776_vm8 = vcmp.eq.s32.totalorder %v594_v62, %v3988_v2  ;;  %v3116_v13 = vsel %vm777_vm7, 1.0, %v5485_v38 }
 0x255   :  { %v3115_v61 = vsel %vm776_vm8, 1.0, %v5485_v38 }
 0x256   :  { %v603_v27 = vpop.permute.xlu1 %602  ;;  %v5130_v3 = vpop.f32.mrb[44].mxu0 }
 0x257   :  { %5487 = vst [vmem:[#allocation27_spill] sm:$0xff] %v5130_v3  ;;  %v600_v16 = vpop.permute.xlu0 %599  ;;  %v5133_v19 = vpop.f32.mrb[45].mxu0  ;;  %vm779_vm9 = vcmp.eq.s32.totalorder %v603_v27, %v3988_v2 }
 0x258   :  { %5488 = vst [vmem:[#allocation28_spill] sm:$0xff] %v5133_v19  ;;  %v5136_v9 = vpop.f32.mrb[46].mxu0  ;;  %vm778_vm10 = vcmp.eq.s32.totalorder %v600_v16, %v3988_v2  ;;  %v3118_v28 = vsel %vm779_vm9, 1.0, %v5485_v38  ;;  %v2579_v19 = vadd.s32 128, %v3988_v2 }
 0x259   :  { %5489 = vst [vmem:[#allocation29_spill] sm:$0xff] %v5136_v9  ;;  %v5140_v48 = vpop.f32.mrb[47].mxu0  ;;  %v3117_v42 = vsel %vm778_vm10, 1.0, %v5485_v38  ;;  %vm2721_vm10 = vcmask 261120  }
 0x25a   :  { %5490 = vst [vmem:[#allocation30_spill] sm:$0xff] %v5140_v48  ;;  %v1568_v54 = vpop.permute.xlu1 %1567 }
 0x25b   :  { %v1801_v24 = vmul.f32 %v3116_v13, %v1568_v54  ;;  %v1563_v51 = vpop.permute.xlu0 %1562 }
 0x25c   :  { %v1800_v52 = vmul.f32 %v3115_v61, %v1563_v51 }
 0x25e   :  { %v1878_v50 = vpack.c.bf16 %v1801_v24, %v1800_v52  ;;  %v1578_v14 = vpop.permute.xlu1 %1577 }
 0x25f   :  { %v1803_v10 = vmul.f32 %v3118_v28, %v1578_v14  ;;  %v1573_v7 = vpop.permute.xlu0 %1572 }
 0x260   :  { %v1802_v23 = vmul.f32 %v3117_v42, %v1573_v7  ;;  %3487 = vmatprep.mubr.bf16.mxu0 %v1878_v50 }
 0x262   :  { %v1879_v58 = vpack.c.bf16 %v1803_v10, %v1802_v23  ;;  %v609_v41 = vpop.permute.xlu1 %608 }
 0x263   :  { %v606_v57 = vpop.permute.xlu0 %605  ;;  %vm781_vm11 = vcmp.eq.s32.totalorder %v609_v41, %v3988_v2  ;;  %v5491_v41 = vlaneseq }
 0x264   :  { %3488 = vmatmul.mubr.bf16.gmra.mrb[100].mxu0 %v1879_v58  ;;  %vm780_vm12 = vcmp.eq.s32.totalorder %v606_v57, %v3988_v2  ;;  %v3120_v52 = vsel %vm781_vm11, 1.0, %v5485_v38 }
 0x265   :  { %v3119_v14 = vsel %vm780_vm12, 1.0, %v5485_v38  ;;  %v2578_v57 = vshrl.u32 %v5491_v41, 7 }
 0x266   :  { %v615_v62 = vpop.permute.xlu1 %614  ;;  %v5150_v27 = vpop.f32.mrb[48].mxu0 }
 0x267   :  { %v612_v16 = vpop.permute.xlu0 %611  ;;  %v5153_v13 = vpop.f32.mrb[49].mxu0  ;;  %vm783_vm13 = vcmp.eq.s32.totalorder %v615_v62, %v3988_v2 }
 0x268   :  { %v5156_v54 = vpop.f32.mrb[50].mxu0  ;;  %vm782_vm14 = vcmp.eq.s32.totalorder %v612_v16, %v3988_v2  ;;  %v3122_v23 = vsel %vm783_vm13, 1.0, %v5485_v38 }
 0x269   :  { %v5160_v61 = vpop.f32.mrb[51].mxu0  ;;  %v3121_v11 = vsel %vm782_vm14, 1.0, %v5485_v38 }
 0x26a   :  { %v1588_v50 = vpop.permute.xlu1 %1587 }
 0x26b   :  { %v1805_v28 = vmul.f32 %v3120_v52, %v1588_v50  ;;  %v1583_v10 = vpop.permute.xlu0 %1582  ;;  %v2595_v50 = vadd.s32 1, %v2578_v57 }
 0x26c   :  { %v1804_v42 = vmul.f32 %v3119_v14, %v1583_v10 }
 0x26d   :  { %v2643_v14 = vmul.u32 4, %v2595_v50 }
 0x26e   :  { %v1880_v7 = vpack.c.bf16 %v1805_v28, %v1804_v42  ;;  %v1598_v58 = vpop.permute.xlu1 %1597  ;;  %v2641_v28 = vmul.u32 4, %v2578_v57 }
 0x26f   :  { %v1807_v4 = vmul.f32 %v3122_v23, %v1598_v58  ;;  %v1593_v24 = vpop.permute.xlu0 %1592  ;;  %vm5192_vm2 = vcmp.lt.s32.totalorder %v3988_v2, %v2643_v14 }
 0x270   :  { %v1806_v51 = vmul.f32 %v3121_v11, %v1593_v24  ;;  %3491 = vmatprep.mubr.bf16.mxu0 %v1880_v7  ;;  %vm5187_vm1 = vcmp.ge.s32.totalorder %v3988_v2, %v2641_v28  ;;  %v5201_v28 = vmul.u32 128, %v2595_v50 }
 0x271   :  { %vm2645_vm6 = vmand %vm5187_vm1, %vm5192_vm2 }
 0x272   :  { %v1881_v62 = vpack.c.bf16 %v1807_v4, %v1806_v51  ;;  %v621_v52 = vpop.permute.xlu1 %620  ;;  %v5198_v4 = vmul.u32 128, %v2578_v57  ;;  %vm2598_vm8 = vcmp.lt.s32.totalorder %v2579_v19, %v5201_v28  ;;  %v3153_v50 = vsel %vm2645_vm6, 1.0, %v5485_v38 }
 0x273   :  { %v618_v3 = vpop.permute.xlu0 %617  ;;  %vm785_vm15 = vcmp.eq.s32.totalorder %v621_v52, %v3988_v2  ;;  %vm2597_vm13 = vcmp.lt.s32.totalorder %v3988_v2, %v5201_v28 }
 0x274   :  { %3492 = vmatmul.mubr.bf16.gmra.mrb[104].mxu0 %v1881_v62  ;;  %vm784_vm0 = vcmp.eq.s32.totalorder %v618_v3, %v3988_v2  ;;  %v3124_v51 = vsel %vm785_vm15, 1.0, %v5485_v38  ;;  %vm2588_vm7 = vcmp.ge.s32.totalorder %v2579_v19, %v5198_v4  ;;  %vm2587_vm12 = vcmp.ge.s32.totalorder %v3988_v2, %v5198_v4 }
 0x275   :  { %v3123_v62 = vsel %vm784_vm0, 1.0, %v5485_v38  ;;  %vm2606_vm9 = vmand %vm2588_vm7, %vm2598_vm8 }
 0x276   :  { %v627_v9 = vpop.permute.xlu1 %626  ;;  %v5171_v16 = vpop.f32.mrb[52].mxu0  ;;  %vm3155_vm11 = vmpackc.low %vm2606_vm9, %vm2606_vm9 }
 0x277   :  { %v624_v10 = vpop.permute.xlu0 %623  ;;  %v5174_v42 = vpop.f32.mrb[53].mxu0  ;;  %vm787_vm4 = vcmp.eq.s32.totalorder %v627_v9, %v3988_v2  ;;  %vm2605_vm0 = vmand %vm2587_vm12, %vm2597_vm13 }
 0x278   :  { %v5177_v23 = vpop.f32.mrb[54].mxu0  ;;  %vm786_vm5 = vcmp.eq.s32.totalorder %v624_v10, %v3988_v2  ;;  %v3126_v14 = vsel %vm787_vm4, 1.0, %v5485_v38  ;;  %vm3157_vm2 = vmpackc.low %vm2605_vm0, %vm2605_vm0 }
 0x279   :  { %v5181_v11 = vpop.f32.mrb[55].mxu0  ;;  %v3125_v57 = vsel %vm786_vm5, 1.0, %v5485_v38 }
 0x27a   :  { %v1608_v7 = vpop.permute.xlu1 %1607 }
 0x27b   :  { %v1809_v41 = vmul.f32 %v3124_v51, %v1608_v7  ;;  %v1603_v52 = vpop.permute.xlu0 %1602 }
 0x27c   :  { %v1808_v24 = vmul.f32 %v3123_v62, %v1603_v52 }
 0x27e   :  { %v1882_v48 = vpack.c.bf16 %v1809_v41, %v1808_v24  ;;  %v1618_v31 = vpop.permute.xlu1 %1617 }
 0x27f   :  { %v1811_v9 = vmul.f32 %v3126_v14, %v1618_v31  ;;  %v1613_v51 = vpop.permute.xlu0 %1612  ;;  %v3595_v14 = vmov 1.0|1.0  }
 0x280   :  { %v1810_v7 = vmul.f32 %v3125_v57, %v1613_v51  ;;  %3495 = vmatprep.mubr.bf16.mxu0 %v1882_v48  ;;  %v5496_v48 = vpack.c.bf16 %v4668_v1, %v4656_v0  ;;  %v5498_v51 = vpack.c.bf16 %v4664_v37, %v4653_v33  ;;  %v5500_v0 = vpack.c.bf16 %v4694_v63, %v4682_v6 }
 0x281   :  { %v5501_v1 = vpack.c.bf16 %v4814_v45, %v4803_v60  ;;  %v5503_v33 = vpack.c.bf16 %v4880_v59, %v4868_v26  ;;  %v5505_v60 = vpack.c.bf16 %v4876_v55, %v4865_v21  ;;  %v5507_v26 = vpack.c.bf16 %v4977_v44, %v4965_v36 }
 0x282   :  { %v1883_v10 = vpack.c.bf16 %v1811_v9, %v1810_v7  ;;  %v5497_v9 = vpack.c.bf16 %v4778_v8, %v4766_v53  ;;  %v5499_v7 = vpack.c.bf16 %v4818_v46, %v4806_v34  ;;  %v5502_v53 = vpack.c.bf16 %v4690_v47, %v4680_v5 }
 0x283   :  { %v2651_v24 = vpop.permute.xlu0 %2650  ;;  %v5504_v46 = vpack.c.bf16 %v4724_v56, %v4712_v15  ;;  %v2581_v5 = vadd.s32 384, %v3988_v2  ;;  %v5506_v47 = vpack.c.bf16 %v4720_v18, %v4708_v12  ;;  %v5508_v15 = vpack.c.bf16 %v4752_v39, %v4740_v32 }
 0x284   :  { %v2653_v41 = vmul.f32 %v3153_v50, %v2651_v24  ;;  %3496 = vmatmul.mubr.bf16.gmra.mrb[108].mxu0 %v1883_v10  ;;  %v5509_v12 = vpack.c.bf16 %v4973_v40, %v4962_v25  ;;  %v5510_v18 = vpack.c.bf16 %v4748_v35, %v4738_v30  ;;  %v5511_v56 = vpack.c.bf16 %v5160_v61, %v5153_v13  ;;  %v5521_v61 = vld [vmem:[#allocation26_spill] sm:$0xff]  ;;  %v5522_v50 = vld [vmem:[#allocation24_spill] sm:$0xff]  ;;  %v5525_v24 = vld [vmem:[#allocation23_spill] sm:$0xff] }
 0x285   :  { %vm2590_vm14 = vcmp.ge.s32.totalorder %v2581_v5, %v5198_v4  ;;  %vm2600_vm15 = vcmp.lt.s32.totalorder %v2581_v5, %v5201_v28  ;;  %v5512_v21 = vpack.c.bf16 %v5039_v17, %v5033_v22  ;;  %v5513_v35 = vpack.c.bf16 %v5156_v54, %v5150_v27  ;;  %v5518_v17 = vld [vmem:[#allocation18_spill] sm:$0xff]  ;;  %v5519_v27 = vld [vmem:[#allocation17_spill] sm:$0xff] }
 0x286   :  { %v2654_v58 = vpack.c.bf16 %v2653_v41, %v2653_v41  ;;  %v5213_v3 = vpop.f32.mrb[56].mxu0  ;;  %vm2608_vm1 = vmand %vm2590_vm14, %vm2600_vm15  ;;  %v5514_v25 = vpack.c.bf16 %v5035_v20, %v5030_v29  ;;  %v5515_v40 = vpack.c.bf16 %v5181_v11, %v5174_v42  ;;  %v5516_v44 = vpack.c.bf16 %v5079_v49, %v5073_v43 }
 0x287   :  { %v2174_v31 = vpop.f32.mrb[57].mxu0  ;;  %vm3159_vm4 = vmpackc.low %vm2608_vm1, %vm2608_vm1  ;;  %v5517_v22 = vpack.c.bf16 %v5177_v23, %v5171_v16  ;;  %v5520_v13 = vpack.c.bf16 %v5518_v17, %v5519_v27  ;;  %v5523_v42 = vpack.c.bf16 %v5521_v61, %v5522_v50  ;;  %v2580_v49 = vadd.s32 256, %v3988_v2  ;;  %v5524_v23 = vld [vmem:[#allocation25_spill] sm:$0xff] }
 0x288   :  { %3520 = vmatmul.mubr.msk.bf16.vlgmr.msra.gmra.mrb[24].mxu1 %vm2721_vm10, %v2654_v58  ;;  %v3446_v62 = vpop.f32.mrb[58].mxu0  ;;  %v2583_v16 = vadd.s32 640, %v3988_v2  ;;  %v5526_v41 = vpack.c.bf16 %v5524_v23, %v5525_v24  ;;  %v5527_v58 = vld [vmem:[#allocation30_spill] sm:$0xff]  ;;  %v5539_v23 = vld [vmem:[#allocation12_spill] sm:$0xff] }
 0x289   :  { %3275 = vmatpush3.bf16.msra.mxu1 %v5496_v48  ;;  %v2684_v19 = vpack.c.bf16 %v3446_v62, %v5213_v3  ;;  %v2177_v52 = vpop.f32.mrb[59].mxu0  ;;  %3156 = vmatprep.mubr.msk.bf16.mxu1 %vm3155_vm11, %v3595_v14  ;;  %vm2589_vm5 = vcmp.ge.s32.totalorder %v2580_v49, %v5198_v4  ;;  %vm2599_vm6 = vcmp.lt.s32.totalorder %v2580_v49, %v5201_v28  ;;  %v5528_v3 = vld [vmem:[#allocation28_spill] sm:$0xff]  ;;  %v5530_v62 = vld [vmem:[#allocation29_spill] sm:$0xff]  ;;  %v5531_v48 = vld [vmem:[#allocation27_spill] sm:$0xff] }
 0x28a   :  { %3276 = vmatprep.subr.bf16.mxu1 %v5497_v9  ;;  %v2683_v57 = vpack.c.bf16 %v2177_v52, %v2174_v31  ;;  %vm2592_vm7 = vcmp.ge.s32.totalorder %v2583_v16, %v5198_v4  ;;  %vm2602_vm8 = vcmp.lt.s32.totalorder %v2583_v16, %v5201_v28  ;;  %v5529_v31 = vpack.c.bf16 %v5527_v58, %v5528_v3  ;;  %vm2607_vm9 = vmand %vm2589_vm5, %vm2599_vm6  ;;  %v5537_v49 = vld [vmem:[#allocation5_spill] sm:$0xff]  ;;  %v5540_v24 = vld [vmem:[#allocation10_spill] sm:$0xff] }
 0x28b   :  { %vm2610_vm10 = vmand %vm2592_vm7, %vm2602_vm8 }
 0x28c   :  { %vm3161_vm11 = vmpackc.low %vm2607_vm9, %vm2607_vm9 }
 0x28d   :  { %3277 = vmatpush3.bf16.msra.mxu1 %v5498_v51  ;;  %vm3163_vm12 = vmpackc.low %vm2610_vm10, %vm2610_vm10 }
 0x28e   :  { %3278 = vmatprep.subr.bf16.mxu1 %v5499_v7 }
 0x291   :  { %3279 = vmatpush3.bf16.msra.mxu1 %v5500_v0 }
 0x292   :  { %3280 = vmatprep.subr.bf16.mxu1 %v5501_v1 }
 0x295   :  { %3281 = vmatpush3.bf16.msra.mxu1 %v5502_v53 }
 0x296   :  { %3282 = vmatprep.subr.bf16.mxu1 %v5503_v33  ;;  %v3449_v37 = vpop.f32.mrb[60].mxu0 }
 0x297   :  { %v2190_v8 = vpop.f32.mrb[61].mxu0 }
 0x298   :  { %v3450_v34 = vpop.f32.mrb[62].mxu0 }
 0x299   :  { %3283 = vmatpush3.bf16.msra.mxu1 %v5504_v46  ;;  %v2686_v6 = vpack.c.bf16 %v3450_v34, %v3449_v37  ;;  %v2193_v63 = vpop.f32.mrb[63].mxu0 }
 0x29a   :  { %3284 = vmatprep.subr.bf16.mxu1 %v5505_v60  ;;  %v2685_v45 = vpack.c.bf16 %v2193_v63, %v2190_v8 }
 0x29d   :  { %3285 = vmatpush3.bf16.msra.mxu1 %v5506_v47 }
 0x29e   :  { %3286 = vmatprep.subr.bf16.mxu1 %v5507_v26 }
 0x2a1   :  { %3287 = vmatpush3.bf16.msra.mxu1 %v5508_v15 }
 0x2a2   :  { %3288 = vmatprep.subr.bf16.mxu1 %v5509_v12 }
 0x2a5   :  { %3289 = vmatpush3.bf16.msra.mxu1 %v5510_v18 }
 0x2a6   :  { %3296 = vmatprep.subr.bf16.mxu1 %v5511_v56  ;;  %v5272_v36 = vpop.f32.mrb[64].mxu0 }
 0x2a7   :  { %v2206_v32 = vpop.f32.mrb[65].mxu0 }
 0x2a8   :  { %3158 = vmatmul.mubr.msk.bf16.vlgmr.msra.gmra.mrb[28].mxu1 %vm3157_vm2, %v3595_v14  ;;  %v3454_v39 = vpop.f32.mrb[66].mxu0 }
 0x2a9   :  { %3297 = vmatpush3.bf16.msra.mxu1 %v5512_v21  ;;  %v2688_v55 = vpack.c.bf16 %v3454_v39, %v5272_v36  ;;  %v2209_v30 = vpop.f32.mrb[67].mxu0  ;;  %3160 = vmatprep.mubr.msk.bf16.mxu1 %vm3159_vm4, %v3595_v14 }
 0x2aa   :  { %3298 = vmatprep.subr.bf16.mxu1 %v5513_v35  ;;  %v2687_v59 = vpack.c.bf16 %v2209_v30, %v2206_v32 }
 0x2ad   :  { %3299 = vmatpush3.bf16.msra.mxu1 %v5514_v25  ;;  %v2582_v25 = vadd.s32 512, %v3988_v2 }
 0x2ae   :  { %3300 = vmatprep.subr.bf16.mxu1 %v5515_v40 }
 0x2af   :  { %vm2591_vm13 = vcmp.ge.s32.totalorder %v2582_v25, %v5198_v4  ;;  %vm2601_vm14 = vcmp.lt.s32.totalorder %v2582_v25, %v5201_v28  ;;  %v2938_v25 = vld [vmem:[%s5432_s8 + $0x10] sm:$0xff] }
 0x2b0   :  { %vm2609_vm1 = vmand %vm2591_vm13, %vm2601_vm14 }
 0x2b1   :  { %3301 = vmatpush3.bf16.msra.mxu1 %v5516_v44  ;;  %v2585_v44 = vadd.s32 896, %v3988_v2  ;;  %vm3165_vm4 = vmpackc.low %vm2609_vm1, %vm2609_vm1 }
 0x2b2   :  { %3302 = vmatprep.subr.bf16.mxu1 %v5517_v22 }
 0x2b3   :  { %vm2594_vm15 = vcmp.ge.s32.totalorder %v2585_v44, %v5198_v4  ;;  %vm2604_vm0 = vcmp.lt.s32.totalorder %v2585_v44, %v5201_v28 }
 0x2b4   :  { %vm2612_vm2 = vmand %vm2594_vm15, %vm2604_vm0 }
 0x2b5   :  { %3303 = vmatpush3.bf16.msra.mxu1 %v5520_v13  ;;  %v5533_v13 = vld [vmem:[#allocation8_spill] sm:$0xff]  ;;  %vm3167_vm5 = vmpackc.low %vm2612_vm2, %vm2612_vm2 }
 0x2b6   :  { %3304 = vmatprep.subr.bf16.mxu1 %v2683_v57  ;;  %v3457_v54 = vpop.f32.mrb[68].mxu0 }
 0x2b7   :  { %v2222_v29 = vpop.f32.mrb[69].mxu0 }
 0x2b8   :  { %v3458_v20 = vpop.f32.mrb[70].mxu0 }
 0x2b9   :  { %3305 = vmatpush3.bf16.msra.mxu1 %v5523_v42  ;;  %v2690_v11 = vpack.c.bf16 %v3458_v20, %v3457_v54  ;;  %v2225_v10 = vpop.f32.mrb[71].mxu0  ;;  %v5534_v54 = vld [vmem:[#allocation6_spill] sm:$0xff] }
 0x2ba   :  { %3306 = vmatprep.subr.bf16.mxu1 %v2684_v19  ;;  %v2689_v43 = vpack.c.bf16 %v2225_v10, %v2222_v29  ;;  %v5532_v19 = vpack.c.bf16 %v5530_v62, %v5531_v48  ;;  %v5535_v29 = vpack.c.bf16 %v5533_v13, %v5534_v54 }
 0x2bd   :  { %3307 = vmatpush3.bf16.msra.mxu1 %v5526_v41  ;;  %v5541_v41 = vpack.c.bf16 %v5539_v23, %v5540_v24  ;;  %v2947_v23 = vld [vmem:[%s5432_s8 + $0x58] sm:$0xff] }
 0x2be   :  { %3308 = vmatprep.subr.bf16.mxu1 %v2685_v45 }
 0x2c1   :  { %3309 = vmatpush3.bf16.msra.mxu1 %v5529_v31 }
 0x2c2   :  { %3310 = vmatprep.subr.bf16.mxu1 %v2686_v6 }
 0x2c5   :  { %3311 = vmatpush3.bf16.msra.mxu1 %v5532_v19 }
 0x2c6   :  { %v3461_v52 = vpop.f32.mrb[72].mxu0 }
 0x2c7   :  { %v2238_v9 = vpop.f32.mrb[73].mxu0 }
 0x2c8   :  { %3162 = vmatmul.mubr.msk.bf16.vlgmr.msra.gmra.mrb[32].mxu1 %vm3161_vm11, %v3595_v14  ;;  %v3462_v57 = vpop.f32.mrb[74].mxu0 }
 0x2c9   :  { %v2692_v51 = vpack.c.bf16 %v3462_v57, %v3461_v52  ;;  %v2241_v7 = vpop.f32.mrb[75].mxu0  ;;  %3164 = vmatprep.mubr.msk.bf16.mxu1 %vm3163_vm12, %v3595_v14  ;;  %v5542_v52 = vld [vmem:[#allocation11_spill] sm:$0xff] }
 0x2ca   :  { %v2691_v0 = vpack.c.bf16 %v2241_v7, %v2238_v9  ;;  %v5543_v9 = vld [vmem:[#allocation9_spill] sm:$0xff]  ;;  %v5546_v7 = vld [vmem:[#allocation14_spill] sm:$0xff] }
 0x2cb   :  { %v5544_v57 = vpack.c.bf16 %v5542_v52, %v5543_v9  ;;  %v2949_v52 = vld [vmem:[%s5432_s8 + $0x68] sm:$0xff] }
 0x2d6   :  { %v3465_v1 = vpop.f32.mrb[76].mxu0 }
 0x2d7   :  { %v2254_v53 = vpop.f32.mrb[77].mxu0 }
 0x2d8   :  { %v3466_v33 = vpop.f32.mrb[78].mxu0 }
 0x2d9   :  { %v2694_v37 = vpack.c.bf16 %v3466_v33, %v3465_v1  ;;  %v2257_v8 = vpop.f32.mrb[79].mxu0 }
 0x2da   :  { %v2693_v34 = vpack.c.bf16 %v2257_v8, %v2254_v53 }
 0x2e6   :  { %v3469_v46 = vpop.f32.mrb[80].mxu0 }
 0x2e7   :  { %v2270_v6 = vpop.f32.mrb[81].mxu0 }
 0x2e8   :  { %v3470_v63 = vpop.f32.mrb[82].mxu0 }
 0x2e9   :  { %v2696_v60 = vpack.c.bf16 %v3470_v63, %v3469_v46  ;;  %v2273_v45 = vpop.f32.mrb[83].mxu0  ;;  %v5548_v46 = vld [vmem:[#allocation15_spill] sm:$0xff] }
 0x2ea   :  { %v2695_v5 = vpack.c.bf16 %v2273_v45, %v2270_v6  ;;  %v5549_v6 = vld [vmem:[#allocation13_spill] sm:$0xff]  ;;  %v5552_v45 = vld [vmem:[#allocation20_spill] sm:$0xff] }
 0x2eb   :  { %v5550_v63 = vpack.c.bf16 %v5548_v46, %v5549_v6 }
 0x2ec   :  { %3318 = vmatprep.subr.bf16.mxu1 %v2695_v5 }
 0x2ed   :  { %3319 = vmatpush3.bf16.msra.mxu1 %v2687_v59 }
 0x2ee   :  { %3320 = vmatprep.subr.bf16.mxu1 %v2696_v60  ;;  %v5551_v60 = vld [vmem:[#allocation22_spill] sm:$0xff] }
 0x2ef   :  { %v5553_v5 = vpack.c.bf16 %v5551_v60, %v5552_v45  ;;  %v2932_v45 = vpop.permute.xlu1 %2931 }
 0x2f1   :  { %3321 = vmatpush3.bf16.msra.mxu1 %v2688_v55 }
 0x2f6   :  { %v3473_v47 = vpop.f32.mrb[84].mxu0 }
 0x2f7   :  { %v2286_v26 = vpop.f32.mrb[85].mxu0 }
 0x2f8   :  { %v3474_v15 = vpop.f32.mrb[86].mxu0 }
 0x2f9   :  { %v2698_v12 = vpack.c.bf16 %v3474_v15, %v3473_v47  ;;  %v2289_v18 = vpop.f32.mrb[87].mxu0 }
 0x2fa   :  { %v2697_v56 = vpack.c.bf16 %v2289_v18, %v2286_v26  ;;  %v2584_v26 = vadd.s32 768, %v3988_v2 }
 0x2fc   :  { %3322 = vmatprep.subr.bf16.mxu1 %v2697_v56  ;;  %vm2593_vm6 = vcmp.ge.s32.totalorder %v2584_v26, %v5198_v4  ;;  %vm2603_vm7 = vcmp.lt.s32.totalorder %v2584_v26, %v5201_v28  ;;  %v2936_v4 = vld [vmem:[%s5432_s8] sm:$0xff]  ;;  %v2937_v28 = vld [vmem:[%s5432_s8 + $0x8] sm:$0xff] }
 0x2fd   :  { %3323 = vmatpush3.bf16.msra.mxu1 %v2689_v43  ;;  %v5536_v43 = vld [vmem:[#allocation7_spill] sm:$0xff]  ;;  %vm2611_vm8 = vmand %vm2593_vm6, %vm2603_vm7  ;;  %v2952_v44 = vpack.c.bf16 %v2937_v28, %v2936_v4 }
 0x2fe   :  { %3324 = vmatprep.subr.bf16.mxu1 %v2698_v12  ;;  %v5538_v16 = vpack.c.bf16 %v5536_v43, %v5537_v49  ;;  %vm3169_vm9 = vmpackc.low %vm2611_vm8, %vm2611_vm8  ;;  %v2945_v43 = vld [vmem:[%s5432_s8 + $0x48] sm:$0xff] }
 0x301   :  { %3325 = vmatpush3.bf16.msra.mxu1 %v2690_v11 }
 0x306   :  { %v3477_v36 = vpop.f32.mrb[88].mxu0 }
 0x307   :  { %v2302_v32 = vpop.f32.mrb[89].mxu0 }
 0x308   :  { %v3478_v39 = vpop.f32.mrb[90].mxu0 }
 0x309   :  { %v2700_v21 = vpack.c.bf16 %v3478_v39, %v3477_v36  ;;  %v2305_v30 = vpop.f32.mrb[91].mxu0 }
 0x30a   :  { %v2699_v35 = vpack.c.bf16 %v2305_v30, %v2302_v32 }
 0x30c   :  { %3326 = vmatprep.subr.bf16.mxu1 %v2699_v35  ;;  %v5554_v35 = vld [vmem:[#allocation21_spill] sm:$0xff] }
 0x30d   :  { %3327 = vmatpush3.bf16.msra.mxu1 %v2691_v0 }
 0x30e   :  { %3328 = vmatprep.subr.bf16.mxu1 %v2700_v21 }
 0x311   :  { %3329 = vmatpush3.bf16.msra.mxu1 %v2692_v51  ;;  %v5545_v51 = vld [vmem:[#allocation16_spill] sm:$0xff] }
 0x312   :  { %v5547_v0 = vpack.c.bf16 %v5545_v51, %v5546_v7  ;;  %v2951_v51 = vld [vmem:[%s5432_s8 + $0x78] sm:$0xff] }
 0x316   :  { %v3481_v55 = vpop.f32.mrb[92].mxu0 }
 0x317   :  { %v2318_v59 = vpop.f32.mrb[93].mxu0 }
 0x318   :  { %v3482_v40 = vpop.f32.mrb[94].mxu0 }
 0x319   :  { %v2702_v22 = vpack.c.bf16 %v3482_v40, %v3481_v55  ;;  %v2321_v17 = vpop.f32.mrb[95].mxu0  ;;  %v5555_v55 = vld [vmem:[#allocation19_spill] sm:$0xff] }
 0x31a   :  { %v2701_v27 = vpack.c.bf16 %v2321_v17, %v2318_v59  ;;  %v5556_v59 = vpack.c.bf16 %v5554_v35, %v5555_v55 }
 0x31c   :  { %3330 = vmatprep.subr.bf16.mxu1 %v2701_v27 }
 0x31d   :  { %3331 = vmatpush3.bf16.msra.mxu1 %v2693_v34 }
 0x31e   :  { %3332 = vmatprep.subr.bf16.mxu1 %v2702_v22 }
 0x321   :  { %3333 = vmatpush3.bf16.msra.mxu1 %v2694_v37 }
 0x322   :  { %3340 = vmatprep.subr.bf16.mxu1 %v5535_v29  ;;  %v2940_v29 = vld [vmem:[%s5432_s8 + $0x20] sm:$0xff] }
 0x324   :  { %3166 = vmatmul.mubr.msk.bf16.vlgmr.msra.gmra.mrb[36].mxu1 %vm3165_vm4, %v3595_v14 }
 0x325   :  { %3168 = vmatprep.mubr.msk.bf16.mxu1 %vm3167_vm5, %v3595_v14 }
 0x327   :  { %v3485_v20 = vpop.f32.mrb[96].mxu0 }
 0x328   :  { %v2334_v61 = vpop.f32.mrb[97].mxu0 }
 0x329   :  { %v3486_v50 = vpop.f32.mrb[98].mxu0 }
 0x32a   :  { %v2704_v42 = vpack.c.bf16 %v3486_v50, %v3485_v20  ;;  %v2337_v11 = vpop.f32.mrb[99].mxu0  ;;  %v2941_v20 = vld [vmem:[%s5432_s8 + $0x28] sm:$0xff]  ;;  %v2942_v50 = vld [vmem:[%s5432_s8 + $0x30] sm:$0xff] }
 0x32b   :  { %v2703_v10 = vpack.c.bf16 %v2337_v11, %v2334_v61  ;;  %v2954_v61 = vpack.c.bf16 %v2941_v20, %v2940_v29 }
 0x32d   :  { %3341 = vmatpush3.bf16.msra.mxu1 %v2703_v10  ;;  %v2944_v10 = vld [vmem:[%s5432_s8 + $0x40] sm:$0xff] }
 0x32e   :  { %3342 = vmatprep.subr.bf16.mxu1 %v5538_v16  ;;  %v2956_v49 = vpack.c.bf16 %v2945_v43, %v2944_v10  ;;  %v2946_v16 = vld [vmem:[%s5432_s8 + $0x50] sm:$0xff] }
 0x32f   :  { %v2957_v24 = vpack.c.bf16 %v2947_v23, %v2946_v16 }
 0x331   :  { %3343 = vmatpush3.bf16.msra.mxu1 %v2704_v42  ;;  %v2943_v42 = vld [vmem:[%s5432_s8 + $0x38] sm:$0xff] }
 0x332   :  { %3344 = vmatprep.subr.bf16.mxu1 %v5541_v41  ;;  %v2955_v11 = vpack.c.bf16 %v2943_v42, %v2942_v50 }
 0x337   :  { %v3489_v58 = vpop.f32.mrb[100].mxu0 }
 0x338   :  { %v2350_v3 = vpop.f32.mrb[101].mxu0 }
 0x339   :  { %v3490_v31 = vpop.f32.mrb[102].mxu0 }
 0x33a   :  { %v2706_v62 = vpack.c.bf16 %v3490_v31, %v3489_v58  ;;  %v2353_v48 = vpop.f32.mrb[103].mxu0 }
 0x33b   :  { %v2705_v19 = vpack.c.bf16 %v2353_v48, %v2350_v3 }
 0x33d   :  { %3345 = vmatpush3.bf16.msra.mxu1 %v2705_v19  ;;  %v2948_v19 = vld [vmem:[%s5432_s8 + $0x60] sm:$0xff] }
 0x33e   :  { %3346 = vmatprep.subr.bf16.mxu1 %v5544_v57  ;;  %v2958_v9 = vpack.c.bf16 %v2949_v52, %v2948_v19  ;;  %v2950_v57 = vld [vmem:[%s5432_s8 + $0x70] sm:$0xff] }
 0x33f   :  { %v2959_v7 = vpack.c.bf16 %v2951_v51, %v2950_v57 }
 0x341   :  { %3347 = vmatpush3.bf16.msra.mxu1 %v2706_v62 }
 0x342   :  { %3348 = vmatprep.subr.bf16.mxu1 %v5547_v0 }
 0x347   :  { %v3493_v1 = vpop.f32.mrb[104].mxu0 }
 0x348   :  { %v2366_v53 = vpop.f32.mrb[105].mxu0 }
 0x349   :  { %v3494_v33 = vpop.f32.mrb[106].mxu0 }
 0x34a   :  { %v2708_v37 = vpack.c.bf16 %v3494_v33, %v3493_v1  ;;  %v2369_v8 = vpop.f32.mrb[107].mxu0 }
 0x34b   :  { %v2707_v34 = vpack.c.bf16 %v2369_v8, %v2366_v53 }
 0x34d   :  { %3349 = vmatpush3.bf16.msra.mxu1 %v2707_v34 }
 0x34e   :  { %3350 = vmatprep.subr.bf16.mxu1 %v5550_v63 }
 0x351   :  { %3351 = vmatpush3.bf16.msra.mxu1 %v2708_v37 }
 0x352   :  { %3352 = vmatprep.subr.bf16.mxu1 %v5553_v5 }
 0x357   :  { %v3497_v47 = vpop.f32.mrb[108].mxu0 }
 0x358   :  { %v2382_v15 = vpop.f32.mrb[109].mxu0 }
 0x359   :  { %v3498_v12 = vpop.f32.mrb[110].mxu0 }
 0x35a   :  { %v2710_v18 = vpack.c.bf16 %v3498_v12, %v3497_v47  ;;  %v2385_v56 = vpop.f32.mrb[111].mxu0 }
 0x35b   :  { %v2709_v36 = vpack.c.bf16 %v2385_v56, %v2382_v15  ;;  %v2759_v32 = vpop.f32.mrb[24].mxu1 }
 0x35c   :  { %v3521_v39 = vpop.f32.mrb[25].mxu1 }
 0x35d   :  { %v2762_v21 = vpop.f32.mrb[26].mxu1  ;;  %3353 = vmatpush3.bf16.msra.mxu1 %v2709_v36 }
 0x35e   :  { %v3522_v30 = vpop.f32.mrb[27].mxu1  ;;  %3354 = vmatprep.subr.bf16.mxu1 %v5556_v59 }
 0x361   :  { %3355 = vmatpush3.bf16.msra.mxu1 %v2710_v18 }
 0x362   :  { %3523 = vmatprep.subr.bf16.mxu1 %v5485_v38 }
 0x364   :  { %3170 = vmatmul.mubr.msk.bf16.vlgmr.msra.gmra.mrb[40].mxu1 %vm3169_vm9, %v3595_v14  ;;  %v2939_v14 = vld [vmem:[%s5432_s8 + $0x18] sm:$0xff]  ;;  %s3007_s8 = sshll.u32 %s3596_s2, 4  ;;  %s3008_s8 = int_to_ptr.vmem [resolvable:$true] %s3007_s8 }
 0x365   :  { %3539 = vmatprep.mubr.msk.bf16.mxu1 %vm3594_vm3, %v5485_v38  ;;  %3524 = vmatpush3.bf16.msra.mxu1 %v2952_v44  ;;  %v2953_v13 = vpack.c.bf16 %v2939_v14, %v2938_v25  ;;  %s3568_s29 = scalar_lea.vmem %s3008_s8, 128  ;;  %p3573_p1 = scmp.lt.s32.totalorder %s3008_s8, %s3008_s8 }
 0x366   :  { %3525 = vmatprep.subr.bf16.mxu1 %v5485_v38  ;;  %p3569_p0 = scmp.ne.s32.totalorder %s3008_s8, %s3568_s29  ;;  %p3574_p2 = scmp.lt.s32.totalorder %s3568_s29, %s3568_s29 }
 0x368   :  { %p3575_p3 = por %p3574_p2, %p3573_p1 }
 0x369   :  { %3526 = vmatpush3.bf16.msra.mxu1 %v2953_v13 }
 0x36a   :  { %3527 = vmatprep.subr.bf16.mxu1 %v5485_v38  ;;  %p3576_p4 = pnand %p3575_p3, %p3569_p0 }
 0x36d   :  { %3528 = vmatpush3.bf16.msra.mxu1 %v2954_v61 }
 0x36e   :  { %3529 = vmatprep.subr.bf16.mxu1 %v5485_v38 }
 0x371   :  { %3530 = vmatpush3.bf16.msra.mxu1 %v2955_v11 }
 0x372   :  { %3531 = vmatprep.subr.bf16.mxu1 %v5485_v38 }
 0x375   :  { %3532 = vmatpush3.bf16.msra.mxu1 %v2956_v49 }
 0x376   :  { %3533 = vmatprep.subr.bf16.mxu1 %v5485_v38 }
 0x379   :  { %3534 = vmatpush3.bf16.msra.mxu1 %v2957_v24 }
 0x37a   :  { %3535 = vmatprep.subr.bf16.mxu1 %v5485_v38 }
 0x37b   :  { %v3290_v2 = vpop.f32.mrb[28].mxu1 }
 0x37c   :  { %v3291_v40 = vpop.f32.mrb[29].mxu1 }
 0x37d   :  { %v3292_v22 = vadd.f32 %v3291_v40, %v3290_v2  ;;  %v3293_v17 = vpop.f32.mrb[30].mxu1  ;;  %3536 = vmatpush3.bf16.msra.mxu1 %v2958_v9 }
 0x37e   :  { %v3294_v27 = vpop.f32.mrb[31].mxu1  ;;  %3537 = vmatprep.subr.bf16.mxu1 %v5485_v38 }
 0x37f   :  { %v2803_v54 = vadd.f32 %v3292_v22, %v2759_v32 }
 0x381   :  { %3538 = vmatpush3.bf16.msra.mxu1 %v2959_v7 }
 0x39b   :  { %v3312_v41 = vpop.f32.mrb[32].mxu1 }
 0x39c   :  { %v3313_v58 = vpop.f32.mrb[33].mxu1 }
 0x39d   :  { %v3314_v3 = vadd.f32 %v3313_v58, %v3312_v41  ;;  %v3315_v31 = vpop.f32.mrb[34].mxu1 }
 0x39e   :  { %v3316_v62 = vpop.f32.mrb[35].mxu1 }
 0x39f   :  { %v2843_v48 = vadd.f32 %v3314_v3, %v2803_v54 }
 0x3f7   :  { %v3334_v0 = vpop.f32.mrb[36].mxu1 }
 0x3f8   :  { %v3335_v1 = vpop.f32.mrb[37].mxu1 }
 0x3f9   :  { %v3336_v53 = vadd.f32 %v3335_v1, %v3334_v0  ;;  %v3337_v33 = vpop.f32.mrb[38].mxu1 }
 0x3fa   :  { %v3338_v37 = vpop.f32.mrb[39].mxu1 }
 0x3fb   :  { %v2883_v8 = vadd.f32 %v3336_v53, %v2843_v48 }
 0x437   :  { %v3356_v34 = vpop.f32.mrb[40].mxu1 }
 0x438   :  { %v3357_v46 = vpop.f32.mrb[41].mxu1 }
 0x439   :  { %v3358_v6 = vadd.f32 %v3357_v46, %v3356_v34  ;;  %v3359_v38 = vpop.f32.mrb[42].mxu1 }
 0x43a   :  { %v3360_v63 = vpop.f32.mrb[43].mxu1 }
 0x43b   :  { %v2923_v60 = vadd.f32 %v3358_v6, %v2883_v8 }
 0x43d   :  { %v2934_v5 = vmul.f32 %v2932_v45, %v2923_v60 }
 0x43f   :  { %v2935_v47 = vpack.c.bf16 %v2934_v5, %v2934_v5 }
 0x441   :  { %3540 = vmatmul.mubr.bf16.vlgmr.msra.gmra.mrb[44].mxu1 %v2935_v47 }
 0x514   :  { %v2994_v26 = vpop.f32.mrb[44].mxu1 }
 0x515   :  { %3000 = vst [vmem:[#allocation2] sm:$0xff] %v2994_v26  ;;  %v3541_v15 = vpop.f32.mrb[45].mxu1 }
 0x516   :  { %v2997_v12 = vpop.f32.mrb[46].mxu1 }
 0x517   :  { %3579 = shalt.err (!%p3576_p4)
}
 0x518   :  { %s3580_s11 = scalar_lea.hbm %s5433_s9, 128 }
 0x519   :  { %p3581_p5 = scmp.ne.s32.totalorder %s5433_s9, %s3580_s11  ;;  %p3584_p6 = scmp.lt.u32.totalorder %s3580_s11, %s5433_s9 }
 0x51b   :  { %p3586_p7 = pnand %p3584_p6, %p3581_p5 }
 0x51d   :  { %3589 = shalt.err (!%p3586_p7)
}
 0x51e   :  { %3010 = dma.vmem_to_hbm [thread:$0]  %s3008_s8, 128, %s5433_s9, [#allocation3]   ;;  %v3542_v18 = vpop.f32.mrb[47].mxu1 }
 0x51f   :  { %3590 = dma.done.wait [#allocation3], 128  }
 0x520   :  { %3591 = vsyncadd [#allocation3], 4294967168 }
 0x521   :  { %3014 = vsyncpa [#allocation3], 1 }

</bundles_post_ra>
